<compile_context>
chip_gen: v6e
topology: v6e:2x2x1
jax: 0.10.0
libtpu: 0.0.40
codegen_flags: <defaults>
</compile_context>

<pallas_src>
import functools

import jax
import jax.numpy as jnp
from jax import lax
from jax.experimental import pallas as pl
from jax.experimental.pallas import tpu as pltpu


def _round_up(x, m):
    return (x + m - 1) // m * m


def _bottleneck_kernel(rows, Wp, guard, mm_dtype,
                       x_ref, mask_ref,
                       w1_ref, b1_ref,
                       w2_ref, b2_ref,
                       w3_ref, b3_ref,
                       o_ref,
                       y1_ref, acc_ref):
    """One batch block per grid step.

    x_ref   : (rows, Cin_p)   rows = batch_block * Hp * Wp (spatially zero-padded input)
    mask_ref: (rows, 1)       1.0 on interior pixels, 0.0 on the conv-padding border
    w1      : (Cin_p, P_p)        b1: (1, P_p)      (BN scale already folded into w)
    w2      : (3, 3, P_p, P_p)    b2: (1, P_p)
    w3      : (P_p, Cout_p)       b3: (1, Cout_p)
    o_ref   : (rows, Cout_p)
    y1_ref  : (guard + rows + guard, P_p) f32 scratch (conv1 output with guard rows)
    acc_ref : (rows, P_p) f32 scratch (conv2 accumulator)
    """
    pp = y1_ref.shape[1]

    # ---- conv1 (1x1) + bn1 + relu; conv-pad border forced to zero -----------
    y1 = jnp.dot(x_ref[...].astype(mm_dtype), w1_ref[...],
                 preferred_element_type=jnp.float32)
    y1 = jnp.maximum(y1 + b1_ref[...], 0.0) * mask_ref[...]

    # zero guard rows (only ever read by discarded border rows), single slab store of y1
    zg = jnp.zeros((guard, pp), y1_ref.dtype)
    y1_ref[0:guard, :] = zg
    y1_ref[guard + rows:guard + rows + guard, :] = zg
    y1_ref[guard:guard + rows, :] = y1

    # ---- conv2 (3x3, stride 1, pad 1): 9 row-shifted whole-slab matmuls -----
    first = True
    for ky in range(3):
        for kx in range(3):
            start = guard + (ky - 1) * Wp + (kx - 1)          # static row shift
            slab = y1_ref[start:start + rows, :].astype(mm_dtype)
            contrib = jnp.dot(slab, w2_ref[ky, kx],
                              preferred_element_type=jnp.float32)
            if first:
                acc_ref[...] = contrib
                first = False
            else:
                acc_ref[...] += contrib

    y2 = jnp.maximum(acc_ref[...] + b2_ref[...], 0.0)

    # ---- conv3 (1x1) + bn3 + identity residual + relu ------------------------
    y3 = jnp.dot(y2.astype(mm_dtype), w3_ref[...],
                 preferred_element_type=jnp.float32)
    o_ref[...] = jnp.maximum(y3 + b3_ref[...] + x_ref[...], 0.0)


def _fold_bn(gamma, beta, mean, var, eps):
    scale = gamma / jnp.sqrt(var + eps)
    bias = beta - mean * scale
    return scale, bias


def _pad2(a, r, c):
    return jnp.pad(a, ((0, r - a.shape[0]), (0, c - a.shape[1])))


def bottleneck_forward(x_nchw, params, eps=1e-5,
                       matmul_dtype=jnp.float32, batch_block=None):
    """params: dict of PyTorch-shaped weights / BN running stats (see __main__)."""
    N, Cin, H, W = x_nchw.shape
    P = params["w1"].shape[0]            # planes
    Cout = params["w3"].shape[0]         # planes * expansion
    assert Cin == Cout, "identity residual requires inplanes == planes * expansion"
    # TODO(synk): stride > 1 / downsample residual branch not implemented.

    Hp, Wp = H + 2, W + 2
    Cin_p = _round_up(Cin, 128)
    P_p = _round_up(P, 128)
    Cout_p = _round_up(Cout, 128)
    guard = _round_up(Wp + 1, 8)
    mm_bytes = jnp.dtype(matmul_dtype).itemsize

    def vmem_need(bb):
        rws = bb * Hp * Wp
        return (2 * rws * (Cin_p + Cout_p) * 4                        # dbl-buffered x / out
                + 2 * rws * 128 * 4                                   # mask block (lane pad)
                + (rws + 2 * guard) * P_p * 4 + rws * P_p * 4         # y1 + acc scratch
                + 2 * (Cin_p * P_p + 9 * P_p * P_p + P_p * Cout_p) * mm_bytes
                + 2 * 3 * 8 * max(P_p, Cout_p) * 4)                   # biases (generous)

    if batch_block is None:
        cands = [b for b in range(N, 0, -1)
                 if N % b == 0 and (b == N or (b * Hp * Wp) % 8 == 0)]
        batch_block = next((b for b in cands if vmem_need(b) <= 48 * 1024 * 1024),
                           cands[-1])
    B_blk = batch_block
    assert N % B_blk == 0
    rows = B_blk * Hp * Wp
    assert B_blk == N or rows % 8 == 0, \
        "row block must equal the full row extent or be a multiple of 8"

    # ---- fold BN scales into conv weights; OIHW -> matmul layouts, lane-pad ----
    s1, b1v = _fold_bn(params["g1"], params["be1"], params["m1"], params["v1"], eps)
    s2, b2v = _fold_bn(params["g2"], params["be2"], params["m2"], params["v2"], eps)
    s3, b3v = _fold_bn(params["g3"], params["be3"], params["m3"], params["v3"], eps)

    w1 = jnp.transpose(params["w1"][:, :, 0, 0], (1, 0)) * s1[None, :]        # (Cin, P)
    w1 = _pad2(w1, Cin_p, P_p).astype(matmul_dtype)
    w2 = jnp.transpose(params["w2"], (2, 3, 1, 0)) * s2[None, None, None, :]  # (3,3,in,out)
    w2 = jnp.pad(w2, ((0, 0), (0, 0), (0, P_p - P), (0, P_p - P))).astype(matmul_dtype)
    w3 = jnp.transpose(params["w3"][:, :, 0, 0], (1, 0)) * s3[None, :]        # (P, Cout)
    w3 = _pad2(w3, P_p, Cout_p).astype(matmul_dtype)

    def pad_bias(b, cp):
        return jnp.pad(b, (0, cp - b.shape[0])).reshape(1, cp).astype(jnp.float32)

    b1 = pad_bias(b1v, P_p)
    b2 = pad_bias(b2v, P_p)
    b3 = pad_bias(b3v, Cout_p)

    # ---- input: NCHW -> NHWC, zero-pad spatial (3x3 halo) and channels (lanes) ----
    x_nhwc = jnp.transpose(x_nchw, (0, 2, 3, 1)).astype(jnp.float32)
    x_pad = jnp.pad(x_nhwc, ((0, 0), (1, 1), (1, 1), (0, Cin_p - Cin)))
    x_flat = x_pad.reshape(N * Hp * Wp, Cin_p)

    # interior mask (1 on the original HxW pixels, 0 on the conv-padding border)
    m2d = jnp.zeros((Hp, Wp), jnp.float32).at[1:H + 1, 1:W + 1].set(1.0)
    mask = jnp.tile(m2d.reshape(Hp * Wp, 1), (B_blk, 1))                      # (rows, 1)

    kernel = functools.partial(_bottleneck_kernel, rows, Wp, guard, matmul_dtype)

    vmem_limit = int(min(max(vmem_need(B_blk) + (8 << 20), 32 << 20), 64 << 20))

    out_flat = pl.pallas_call(
        kernel,
        out_shape=jax.ShapeDtypeStruct((N * Hp * Wp, Cout_p), jnp.float32),
        grid_spec=pltpu.PrefetchScalarGridSpec(
            num_scalar_prefetch=0,
            grid=(N // B_blk,),
            in_specs=[
                pl.BlockSpec((rows, Cin_p), lambda b: (b, 0)),        # x (padded)
                pl.BlockSpec((rows, 1), lambda b: (0, 0)),            # interior mask
                pl.BlockSpec((Cin_p, P_p), lambda b: (0, 0)),         # w1 (scale folded)
                pl.BlockSpec((1, P_p), lambda b: (0, 0)),             # b1
                pl.BlockSpec((3, 3, P_p, P_p), lambda b: (0, 0, 0, 0)),  # w2 (scale folded)
                pl.BlockSpec((1, P_p), lambda b: (0, 0)),             # b2
                pl.BlockSpec((P_p, Cout_p), lambda b: (0, 0)),        # w3 (scale folded)
                pl.BlockSpec((1, Cout_p), lambda b: (0, 0)),          # b3
            ],
            out_specs=pl.BlockSpec((rows, Cout_p), lambda b: (b, 0)),
            scratch_shapes=[
                pltpu.VMEM((guard + rows + guard, P_p), jnp.float32),  # y1 (+ guards)
                pltpu.VMEM((rows, P_p), jnp.float32),                  # conv2 accumulator
            ],
        ),
        compiler_params=pltpu.CompilerParams(
            dimension_semantics=("parallel",),
            vmem_limit_bytes=vmem_limit),
    )(x_flat, mask, w1, b1, w2, b2, w3, b3)

    # (N*Hp*Wp, Cout_p) -> NHWC interior -> NCHW
    out = out_flat.reshape(N, Hp, Wp, Cout_p)[:, 1:H + 1, 1:W + 1, :Cout]
    return jnp.transpose(out, (0, 3, 1, 2))


def bottleneck_reference(x_nchw, params, eps=1e-5):
    """Pure-JAX reference mirroring the PyTorch forward (NCHW / OIHW)."""
    def conv(x, w, pad):
        return lax.conv_general_dilated(
            x, w, window_strides=(1, 1), padding=pad,
            dimension_numbers=("NCHW", "OIHW", "NCHW"))

    def bn(x, g, b, m, v):
        sc = g / jnp.sqrt(v + eps)
        bi = b - m * sc
        return x * sc[None, :, None, None] + bi[None, :, None, None]

    out = jax.nn.relu(bn(conv(x_nchw, params["w1"], "VALID"),
                         params["g1"], params["be1"], params["m1"], params["v1"]))
    out = jax.nn.relu(bn(conv(out, params["w2"], [(1, 1), (1, 1)]),
                         params["g2"], params["be2"], params["m2"], params["v2"]))
    out = bn(conv(out, params["w3"], "VALID"),
             params["g3"], params["be3"], params["m3"], params["v3"])
    return jax.nn.relu(out + x_nchw)


if __name__ == "__main__":
    # Small deterministic config: inplanes=16, planes=4 (expansion 4 -> out 16)
    N, inplanes, planes, H, W = 2, 16, 4, 8, 8
    Cout = planes * 4

    key = jax.random.PRNGKey(0)
    ks = jax.random.split(key, 16)
    params = {
        "w1": 0.1 * jax.random.normal(ks[0], (planes, inplanes, 1, 1), jnp.float32),
        "g1": 1.0 + 0.1 * jax.random.normal(ks[1], (planes,), jnp.float32),
        "be1": 0.1 * jax.random.normal(ks[2], (planes,), jnp.float32),
        "m1": 0.1 * jax.random.normal(ks[3], (planes,), jnp.float32),
        "v1": jax.random.uniform(ks[4], (planes,), jnp.float32, 0.5, 1.5),
        "w2": 0.1 * jax.random.normal(ks[5], (planes, planes, 3, 3), jnp.float32),
        "g2": 1.0 + 0.1 * jax.random.normal(ks[6], (planes,), jnp.float32),
        "be2": 0.1 * jax.random.normal(ks[7], (planes,), jnp.float32),
        "m2": 0.1 * jax.random.normal(ks[8], (planes,), jnp.float32),
        "v2": jax.random.uniform(ks[9], (planes,), jnp.float32, 0.5, 1.5),
        "w3": 0.1 * jax.random.normal(ks[10], (Cout, planes, 1, 1), jnp.float32),
        "g3": 1.0 + 0.1 * jax.random.normal(ks[11], (Cout,), jnp.float32),
        "be3": 0.1 * jax.random.normal(ks[12], (Cout,), jnp.float32),
        "m3": 0.1 * jax.random.normal(ks[13], (Cout,), jnp.float32),
        "v3": jax.random.uniform(ks[14], (Cout,), jnp.float32, 0.5, 1.5),
    }
    x = jax.random.normal(ks[15], (N, inplanes, H, W), jnp.float32)

    ref = jax.block_until_ready(bottleneck_reference(x, params))

    # f32 MXU operands (tight check)
    out_f32 = jax.block_until_ready(
        bottleneck_forward(x, params, matmul_dtype=jnp.float32))
    assert out_f32.shape == (N, Cout, H, W)
    err32 = float(jnp.max(jnp.abs(out_f32 - ref)))
    assert jnp.allclose(out_f32, ref, atol=2e-3, rtol=2e-3), f"f32 max abs err = {err32}"

    # bf16 MXU operands, f32 accumulate / elementwise (v6e / v7x fast path, looser check)
    out_bf16 = jax.block_until_ready(
        bottleneck_forward(x, params, matmul_dtype=jnp.bfloat16))
    errbf = float(jnp.max(jnp.abs(out_bf16 - ref)))
    assert jnp.allclose(out_bf16, ref, atol=5e-2, rtol=5e-2), f"bf16 max abs err = {errbf}"

    print("KERNEL_OK")
</pallas_src>

<mosaic_0001>
module attributes {stable_mosaic.version = 11 : i64} {
  func.func @_bottleneck_kernel(%arg0: i32, %arg1: memref<200x128xf32, #tpu.memory_space<vmem>>, %arg2: memref<200x1xf32, #tpu.memory_space<vmem>>, %arg3: memref<128x128xf32, #tpu.memory_space<vmem>>, %arg4: memref<1x128xf32, #tpu.memory_space<vmem>>, %arg5: memref<3x3x128x128xf32, #tpu.memory_space<vmem>>, %arg6: memref<1x128xf32, #tpu.memory_space<vmem>>, %arg7: memref<128x128xf32, #tpu.memory_space<vmem>>, %arg8: memref<1x128xf32, #tpu.memory_space<vmem>>, %arg9: memref<200x128xf32, #tpu.memory_space<vmem>>, %arg10: memref<232x128xf32, #tpu.memory_space<vmem>>, %arg11: memref<200x128xf32, #tpu.memory_space<vmem>>) attributes {dimension_semantics = [#tpu.dimension_semantics<parallel>], iteration_bounds = array<i64: 1>, scalar_prefetch = 0 : i64, scratch_operands = 2 : i64, tpu.core_type = #tpu.core_type<tc>, window_params = [{transform_indices = @transform_0, window_bounds = array<i64: 200, 128>}, {pipeline_mode = #tpu.pipeline_mode<synchronous>, transform_indices = @transform_1, window_bounds = array<i64: 200, 1>}, {pipeline_mode = #tpu.pipeline_mode<synchronous>, transform_indices = @transform_2, window_bounds = array<i64: 128, 128>}, {pipeline_mode = #tpu.pipeline_mode<synchronous>, transform_indices = @transform_3, window_bounds = array<i64: 1, 128>}, {pipeline_mode = #tpu.pipeline_mode<synchronous>, transform_indices = @transform_4, window_bounds = array<i64: 3, 3, 128, 128>}, {pipeline_mode = #tpu.pipeline_mode<synchronous>, transform_indices = @transform_5, window_bounds = array<i64: 1, 128>}, {pipeline_mode = #tpu.pipeline_mode<synchronous>, transform_indices = @transform_6, window_bounds = array<i64: 128, 128>}, {pipeline_mode = #tpu.pipeline_mode<synchronous>, transform_indices = @transform_7, window_bounds = array<i64: 1, 128>}, {transform_indices = @transform_8, window_bounds = array<i64: 200, 128>}]} {
    %c0 = arith.constant 0 : index
    %c0_0 = arith.constant 0 : index
    %0 = vector.load %arg1[%c0, %c0_0] : memref<200x128xf32, #tpu.memory_space<vmem>>, vector<200x128xf32>
    %c0_1 = arith.constant 0 : index
    %c0_2 = arith.constant 0 : index
    %1 = vector.load %arg3[%c0_1, %c0_2] : memref<128x128xf32, #tpu.memory_space<vmem>>, vector<128x128xf32>
    %cst = arith.constant dense<0.000000e+00> : vector<200x128xf32>
    %2 = tpu.matmul %0, %1, %cst {dimension_numbers = #tpu.dot_dimension_numbers<[1], [0], [0], [1], [0, 0, 1, 1], [], []>} : vector<200x128xf32>, vector<128x128xf32>, vector<200x128xf32> -> vector<200x128xf32>
    %c0_3 = arith.constant 0 : index
    %c0_4 = arith.constant 0 : index
    %3 = vector.load %arg4[%c0_3, %c0_4] : memref<1x128xf32, #tpu.memory_space<vmem>>, vector<1x128xf32>
    %4 = vector.broadcast %3 : vector<1x128xf32> to vector<200x128xf32>
    %5 = arith.addf %2, %4 : vector<200x128xf32>
    %cst_5 = arith.constant 0.000000e+00 : f32
    %6 = vector.broadcast %cst_5 : f32 to vector<200x128xf32>
    %7 = arith.maximumf %5, %6 : vector<200x128xf32>
    %c0_6 = arith.constant 0 : index
    %c0_7 = arith.constant 0 : index
    %8 = vector.load %arg2[%c0_6, %c0_7] : memref<200x1xf32, #tpu.memory_space<vmem>>, vector<200x1xf32>
    %9 = vector.broadcast %8 : vector<200x1xf32> to vector<200x128xf32>
    %10 = arith.mulf %7, %9 : vector<200x128xf32>
    %cst_8 = arith.constant 0.000000e+00 : f32
    %11 = vector.broadcast %cst_8 : f32 to vector<16x128xf32>
    %c0_9 = arith.constant 0 : index
    %c0_10 = arith.constant 0 : index
    %12 = vector.load %arg10[%c0_9, %c0_10] : memref<232x128xf32, #tpu.memory_space<vmem>>, vector<16x128xf32>
    tpu.vector_store %arg10[%c0_9, %c0_10], %11 {strides = array<i32>} : memref<232x128xf32, #tpu.memory_space<vmem>>, vector<16x128xf32>,
    %c216 = arith.constant 216 : index
    %c0_11 = arith.constant 0 : index
    %13 = vector.load %arg10[%c216, %c0_11] : memref<232x128xf32, #tpu.memory_space<vmem>>, vector<16x128xf32>
    tpu.vector_store %arg10[%c216, %c0_11], %11 {strides = array<i32>} : memref<232x128xf32, #tpu.memory_space<vmem>>, vector<16x128xf32>,
    %c16 = arith.constant 16 : index
    %c0_12 = arith.constant 0 : index
    %14 = vector.load %arg10[%c16, %c0_12] : memref<232x128xf32, #tpu.memory_space<vmem>>, vector<200x128xf32>
    tpu.vector_store %arg10[%c16, %c0_12], %10 {strides = array<i32>} : memref<232x128xf32, #tpu.memory_space<vmem>>, vector<200x128xf32>,
    %c5 = arith.constant 5 : index
    %c0_13 = arith.constant 0 : index
    %15 = vector.load %arg10[%c5, %c0_13] : memref<232x128xf32, #tpu.memory_space<vmem>>, vector<200x128xf32>
    %c0_14 = arith.constant 0 : index
    %c0_15 = arith.constant 0 : index
    %c0_16 = arith.constant 0 : index
    %c0_17 = arith.constant 0 : index
    %16 = vector.load %arg5[%c0_14, %c0_15, %c0_16, %c0_17] : memref<3x3x128x128xf32, #tpu.memory_space<vmem>>, vector<1x1x128x128xf32>
    %17 = vector.shape_cast %16 : vector<1x1x128x128xf32> to vector<128x128xf32>
    %cst_18 = arith.constant dense<0.000000e+00> : vector<200x128xf32>
    %18 = tpu.matmul %15, %17, %cst_18 {dimension_numbers = #tpu.dot_dimension_numbers<[1], [0], [0], [1], [0, 0, 1, 1], [], []>} : vector<200x128xf32>, vector<128x128xf32>, vector<200x128xf32> -> vector<200x128xf32>
    %c0_19 = arith.constant 0 : index
    %c0_20 = arith.constant 0 : index
    %19 = vector.load %arg11[%c0_19, %c0_20] : memref<200x128xf32, #tpu.memory_space<vmem>>, vector<200x128xf32>
    tpu.vector_store %arg11[%c0_19, %c0_20], %18 {strides = array<i32>} : memref<200x128xf32, #tpu.memory_space<vmem>>, vector<200x128xf32>,
    %c6 = arith.constant 6 : index
    %c0_21 = arith.constant 0 : index
    %20 = vector.load %arg10[%c6, %c0_21] : memref<232x128xf32, #tpu.memory_space<vmem>>, vector<200x128xf32>
    %c0_22 = arith.constant 0 : index
    %c1 = arith.constant 1 : index
    %c0_23 = arith.constant 0 : index
    %c0_24 = arith.constant 0 : index
    %21 = vector.load %arg5[%c0_22, %c1, %c0_23, %c0_24] : memref<3x3x128x128xf32, #tpu.memory_space<vmem>>, vector<1x1x128x128xf32>
    %22 = vector.shape_cast %21 : vector<1x1x128x128xf32> to vector<128x128xf32>
    %cst_25 = arith.constant dense<0.000000e+00> : vector<200x128xf32>
    %23 = tpu.matmul %20, %22, %cst_25 {dimension_numbers = #tpu.dot_dimension_numbers<[1], [0], [0], [1], [0, 0, 1, 1], [], []>} : vector<200x128xf32>, vector<128x128xf32>, vector<200x128xf32> -> vector<200x128xf32>
    %c0_26 = arith.constant 0 : index
    %c0_27 = arith.constant 0 : index
    %24 = vector.load %arg11[%c0_26, %c0_27] : memref<200x128xf32, #tpu.memory_space<vmem>>, vector<200x128xf32>
    %25 = arith.addf %24, %23 : vector<200x128xf32>
    %c0_28 = arith.constant 0 : index
    %c0_29 = arith.constant 0 : index
    %26 = vector.load %arg11[%c0_28, %c0_29] : memref<200x128xf32, #tpu.memory_space<vmem>>, vector<200x128xf32>
    tpu.vector_store %arg11[%c0_28, %c0_29], %25 {strides = array<i32>} : memref<200x128xf32, #tpu.memory_space<vmem>>, vector<200x128xf32>,
    %c7 = arith.constant 7 : index
    %c0_30 = arith.constant 0 : index
    %27 = vector.load %arg10[%c7, %c0_30] : memref<232x128xf32, #tpu.memory_space<vmem>>, vector<200x128xf32>
    %c0_31 = arith.constant 0 : index
    %c2 = arith.constant 2 : index
    %c0_32 = arith.constant 0 : index
    %c0_33 = arith.constant 0 : index
    %28 = vector.load %arg5[%c0_31, %c2, %c0_32, %c0_33] : memref<3x3x128x128xf32, #tpu.memory_space<vmem>>, vector<1x1x128x128xf32>
    %29 = vector.shape_cast %28 : vector<1x1x128x128xf32> to vector<128x128xf32>
    %cst_34 = arith.constant dense<0.000000e+00> : vector<200x128xf32>
    %30 = tpu.matmul %27, %29, %cst_34 {dimension_numbers = #tpu.dot_dimension_numbers<[1], [0], [0], [1], [0, 0, 1, 1], [], []>} : vector<200x128xf32>, vector<128x128xf32>, vector<200x128xf32> -> vector<200x128xf32>
    %c0_35 = arith.constant 0 : index
    %c0_36 = arith.constant 0 : index
    %31 = vector.load %arg11[%c0_35, %c0_36] : memref<200x128xf32, #tpu.memory_space<vmem>>, vector<200x128xf32>
    %32 = arith.addf %31, %30 : vector<200x128xf32>
    %c0_37 = arith.constant 0 : index
    %c0_38 = arith.constant 0 : index
    %33 = vector.load %arg11[%c0_37, %c0_38] : memref<200x128xf32, #tpu.memory_space<vmem>>, vector<200x128xf32>
    tpu.vector_store %arg11[%c0_37, %c0_38], %32 {strides = array<i32>} : memref<200x128xf32, #tpu.memory_space<vmem>>, vector<200x128xf32>,
    %c15 = arith.constant 15 : index
    %c0_39 = arith.constant 0 : index
    %34 = vector.load %arg10[%c15, %c0_39] : memref<232x128xf32, #tpu.memory_space<vmem>>, vector<200x128xf32>
    %c1_40 = arith.constant 1 : index
    %c0_41 = arith.constant 0 : index
    %c0_42 = arith.constant 0 : index
    %c0_43 = arith.constant 0 : index
    %35 = vector.load %arg5[%c1_40, %c0_41, %c0_42, %c0_43] : memref<3x3x128x128xf32, #tpu.memory_space<vmem>>, vector<1x1x128x128xf32>
    %36 = vector.shape_cast %35 : vector<1x1x128x128xf32> to vector<128x128xf32>
    %cst_44 = arith.constant dense<0.000000e+00> : vector<200x128xf32>
    %37 = tpu.matmul %34, %36, %cst_44 {dimension_numbers = #tpu.dot_dimension_numbers<[1], [0], [0], [1], [0, 0, 1, 1], [], []>} : vector<200x128xf32>, vector<128x128xf32>, vector<200x128xf32> -> vector<200x128xf32>
    %c0_45 = arith.constant 0 : index
    %c0_46 = arith.constant 0 : index
    %38 = vector.load %arg11[%c0_45, %c0_46] : memref<200x128xf32, #tpu.memory_space<vmem>>, vector<200x128xf32>
    %39 = arith.addf %38, %37 : vector<200x128xf32>
    %c0_47 = arith.constant 0 : index
    %c0_48 = arith.constant 0 : index
    %40 = vector.load %arg11[%c0_47, %c0_48] : memref<200x128xf32, #tpu.memory_space<vmem>>, vector<200x128xf32>
    tpu.vector_store %arg11[%c0_47, %c0_48], %39 {strides = array<i32>} : memref<200x128xf32, #tpu.memory_space<vmem>>, vector<200x128xf32>,
    %c16_49 = arith.constant 16 : index
    %c0_50 = arith.constant 0 : index
    %41 = vector.load %arg10[%c16_49, %c0_50] : memref<232x128xf32, #tpu.memory_space<vmem>>, vector<200x128xf32>
    %c1_51 = arith.constant 1 : index
    %c1_52 = arith.constant 1 : index
    %c0_53 = arith.constant 0 : index
    %c0_54 = arith.constant 0 : index
    %42 = vector.load %arg5[%c1_51, %c1_52, %c0_53, %c0_54] : memref<3x3x128x128xf32, #tpu.memory_space<vmem>>, vector<1x1x128x128xf32>
    %43 = vector.shape_cast %42 : vector<1x1x128x128xf32> to vector<128x128xf32>
    %cst_55 = arith.constant dense<0.000000e+00> : vector<200x128xf32>
    %44 = tpu.matmul %41, %43, %cst_55 {dimension_numbers = #tpu.dot_dimension_numbers<[1], [0], [0], [1], [0, 0, 1, 1], [], []>} : vector<200x128xf32>, vector<128x128xf32>, vector<200x128xf32> -> vector<200x128xf32>
    %c0_56 = arith.constant 0 : index
    %c0_57 = arith.constant 0 : index
    %45 = vector.load %arg11[%c0_56, %c0_57] : memref<200x128xf32, #tpu.memory_space<vmem>>, vector<200x128xf32>
    %46 = arith.addf %45, %44 : vector<200x128xf32>
    %c0_58 = arith.constant 0 : index
    %c0_59 = arith.constant 0 : index
    %47 = vector.load %arg11[%c0_58, %c0_59] : memref<200x128xf32, #tpu.memory_space<vmem>>, vector<200x128xf32>
    tpu.vector_store %arg11[%c0_58, %c0_59], %46 {strides = array<i32>} : memref<200x128xf32, #tpu.memory_space<vmem>>, vector<200x128xf32>,
    %c17 = arith.constant 17 : index
    %c0_60 = arith.constant 0 : index
    %48 = vector.load %arg10[%c17, %c0_60] : memref<232x128xf32, #tpu.memory_space<vmem>>, vector<200x128xf32>
    %c1_61 = arith.constant 1 : index
    %c2_62 = arith.constant 2 : index
    %c0_63 = arith.constant 0 : index
    %c0_64 = arith.constant 0 : index
    %49 = vector.load %arg5[%c1_61, %c2_62, %c0_63, %c0_64] : memref<3x3x128x128xf32, #tpu.memory_space<vmem>>, vector<1x1x128x128xf32>
    %50 = vector.shape_cast %49 : vector<1x1x128x128xf32> to vector<128x128xf32>
    %cst_65 = arith.constant dense<0.000000e+00> : vector<200x128xf32>
    %51 = tpu.matmul %48, %50, %cst_65 {dimension_numbers = #tpu.dot_dimension_numbers<[1], [0], [0], [1], [0, 0, 1, 1], [], []>} : vector<200x128xf32>, vector<128x128xf32>, vector<200x128xf32> -> vector<200x128xf32>
    %c0_66 = arith.constant 0 : index
    %c0_67 = arith.constant 0 : index
    %52 = vector.load %arg11[%c0_66, %c0_67] : memref<200x128xf32, #tpu.memory_space<vmem>>, vector<200x128xf32>
    %53 = arith.addf %52, %51 : vector<200x128xf32>
    %c0_68 = arith.constant 0 : index
    %c0_69 = arith.constant 0 : index
    %54 = vector.load %arg11[%c0_68, %c0_69] : memref<200x128xf32, #tpu.memory_space<vmem>>, vector<200x128xf32>
    tpu.vector_store %arg11[%c0_68, %c0_69], %53 {strides = array<i32>} : memref<200x128xf32, #tpu.memory_space<vmem>>, vector<200x128xf32>,
    %c25 = arith.constant 25 : index
    %c0_70 = arith.constant 0 : index
    %55 = vector.load %arg10[%c25, %c0_70] : memref<232x128xf32, #tpu.memory_space<vmem>>, vector<200x128xf32>
    %c2_71 = arith.constant 2 : index
    %c0_72 = arith.constant 0 : index
    %c0_73 = arith.constant 0 : index
    %c0_74 = arith.constant 0 : index
    %56 = vector.load %arg5[%c2_71, %c0_72, %c0_73, %c0_74] : memref<3x3x128x128xf32, #tpu.memory_space<vmem>>, vector<1x1x128x128xf32>
    %57 = vector.shape_cast %56 : vector<1x1x128x128xf32> to vector<128x128xf32>
    %cst_75 = arith.constant dense<0.000000e+00> : vector<200x128xf32>
    %58 = tpu.matmul %55, %57, %cst_75 {dimension_numbers = #tpu.dot_dimension_numbers<[1], [0], [0], [1], [0, 0, 1, 1], [], []>} : vector<200x128xf32>, vector<128x128xf32>, vector<200x128xf32> -> vector<200x128xf32>
    %c0_76 = arith.constant 0 : index
    %c0_77 = arith.constant 0 : index
    %59 = vector.load %arg11[%c0_76, %c0_77] : memref<200x128xf32, #tpu.memory_space<vmem>>, vector<200x128xf32>
    %60 = arith.addf %59, %58 : vector<200x128xf32>
    %c0_78 = arith.constant 0 : index
    %c0_79 = arith.constant 0 : index
    %61 = vector.load %arg11[%c0_78, %c0_79] : memref<200x128xf32, #tpu.memory_space<vmem>>, vector<200x128xf32>
    tpu.vector_store %arg11[%c0_78, %c0_79], %60 {strides = array<i32>} : memref<200x128xf32, #tpu.memory_space<vmem>>, vector<200x128xf32>,
    %c26 = arith.constant 26 : index
    %c0_80 = arith.constant 0 : index
    %62 = vector.load %arg10[%c26, %c0_80] : memref<232x128xf32, #tpu.memory_space<vmem>>, vector<200x128xf32>
    %c2_81 = arith.constant 2 : index
    %c1_82 = arith.constant 1 : index
    %c0_83 = arith.constant 0 : index
    %c0_84 = arith.constant 0 : index
    %63 = vector.load %arg5[%c2_81, %c1_82, %c0_83, %c0_84] : memref<3x3x128x128xf32, #tpu.memory_space<vmem>>, vector<1x1x128x128xf32>
    %64 = vector.shape_cast %63 : vector<1x1x128x128xf32> to vector<128x128xf32>
    %cst_85 = arith.constant dense<0.000000e+00> : vector<200x128xf32>
    %65 = tpu.matmul %62, %64, %cst_85 {dimension_numbers = #tpu.dot_dimension_numbers<[1], [0], [0], [1], [0, 0, 1, 1], [], []>} : vector<200x128xf32>, vector<128x128xf32>, vector<200x128xf32> -> vector<200x128xf32>
    %c0_86 = arith.constant 0 : index
    %c0_87 = arith.constant 0 : index
    %66 = vector.load %arg11[%c0_86, %c0_87] : memref<200x128xf32, #tpu.memory_space<vmem>>, vector<200x128xf32>
    %67 = arith.addf %66, %65 : vector<200x128xf32>
    %c0_88 = arith.constant 0 : index
    %c0_89 = arith.constant 0 : index
    %68 = vector.load %arg11[%c0_88, %c0_89] : memref<200x128xf32, #tpu.memory_space<vmem>>, vector<200x128xf32>
    tpu.vector_store %arg11[%c0_88, %c0_89], %67 {strides = array<i32>} : memref<200x128xf32, #tpu.memory_space<vmem>>, vector<200x128xf32>,
    %c27 = arith.constant 27 : index
    %c0_90 = arith.constant 0 : index
    %69 = vector.load %arg10[%c27, %c0_90] : memref<232x128xf32, #tpu.memory_space<vmem>>, vector<200x128xf32>
    %c2_91 = arith.constant 2 : index
    %c2_92 = arith.constant 2 : index
    %c0_93 = arith.constant 0 : index
    %c0_94 = arith.constant 0 : index
    %70 = vector.load %arg5[%c2_91, %c2_92, %c0_93, %c0_94] : memref<3x3x128x128xf32, #tpu.memory_space<vmem>>, vector<1x1x128x128xf32>
    %71 = vector.shape_cast %70 : vector<1x1x128x128xf32> to vector<128x128xf32>
    %cst_95 = arith.constant dense<0.000000e+00> : vector<200x128xf32>
    %72 = tpu.matmul %69, %71, %cst_95 {dimension_numbers = #tpu.dot_dimension_numbers<[1], [0], [0], [1], [0, 0, 1, 1], [], []>} : vector<200x128xf32>, vector<128x128xf32>, vector<200x128xf32> -> vector<200x128xf32>
    %c0_96 = arith.constant 0 : index
    %c0_97 = arith.constant 0 : index
    %73 = vector.load %arg11[%c0_96, %c0_97] : memref<200x128xf32, #tpu.memory_space<vmem>>, vector<200x128xf32>
    %74 = arith.addf %73, %72 : vector<200x128xf32>
    %c0_98 = arith.constant 0 : index
    %c0_99 = arith.constant 0 : index
    %75 = vector.load %arg11[%c0_98, %c0_99] : memref<200x128xf32, #tpu.memory_space<vmem>>, vector<200x128xf32>
    tpu.vector_store %arg11[%c0_98, %c0_99], %74 {strides = array<i32>} : memref<200x128xf32, #tpu.memory_space<vmem>>, vector<200x128xf32>,
    %c0_100 = arith.constant 0 : index
    %c0_101 = arith.constant 0 : index
    %76 = vector.load %arg11[%c0_100, %c0_101] : memref<200x128xf32, #tpu.memory_space<vmem>>, vector<200x128xf32>
    %c0_102 = arith.constant 0 : index
    %c0_103 = arith.constant 0 : index
    %77 = vector.load %arg6[%c0_102, %c0_103] : memref<1x128xf32, #tpu.memory_space<vmem>>, vector<1x128xf32>
    %78 = vector.broadcast %77 : vector<1x128xf32> to vector<200x128xf32>
    %79 = arith.addf %76, %78 : vector<200x128xf32>
    %cst_104 = arith.constant 0.000000e+00 : f32
    %80 = vector.broadcast %cst_104 : f32 to vector<200x128xf32>
    %81 = arith.maximumf %79, %80 : vector<200x128xf32>
    %c0_105 = arith.constant 0 : index
    %c0_106 = arith.constant 0 : index
    %82 = vector.load %arg7[%c0_105, %c0_106] : memref<128x128xf32, #tpu.memory_space<vmem>>, vector<128x128xf32>
    %cst_107 = arith.constant dense<0.000000e+00> : vector<200x128xf32>
    %83 = tpu.matmul %81, %82, %cst_107 {dimension_numbers = #tpu.dot_dimension_numbers<[1], [0], [0], [1], [0, 0, 1, 1], [], []>} : vector<200x128xf32>, vector<128x128xf32>, vector<200x128xf32> -> vector<200x128xf32>
    %c0_108 = arith.constant 0 : index
    %c0_109 = arith.constant 0 : index
    %84 = vector.load %arg8[%c0_108, %c0_109] : memref<1x128xf32, #tpu.memory_space<vmem>>, vector<1x128xf32>
    %85 = vector.broadcast %84 : vector<1x128xf32> to vector<200x128xf32>
    %86 = arith.addf %83, %85 : vector<200x128xf32>
    %c0_110 = arith.constant 0 : index
    %c0_111 = arith.constant 0 : index
    %87 = vector.load %arg1[%c0_110, %c0_111] : memref<200x128xf32, #tpu.memory_space<vmem>>, vector<200x128xf32>
    %88 = arith.addf %86, %87 : vector<200x128xf32>
    %cst_112 = arith.constant 0.000000e+00 : f32
    %89 = vector.broadcast %cst_112 : f32 to vector<200x128xf32>
    %90 = arith.maximumf %88, %89 : vector<200x128xf32>
    %c0_113 = arith.constant 0 : index
    %c0_114 = arith.constant 0 : index
    %91 = vector.load %arg9[%c0_113, %c0_114] : memref<200x128xf32, #tpu.memory_space<vmem>>, vector<200x128xf32>
    tpu.vector_store %arg9[%c0_113, %c0_114], %90 {strides = array<i32>} : memref<200x128xf32, #tpu.memory_space<vmem>>, vector<200x128xf32>,
    return
  }
  func.func @transform_0(%arg0: i32) -> (i32, i32) {
    %c0_i32 = arith.constant 0 : i32
    %c0_i32_0 = arith.constant 0 : i32
    return %arg0, %c0_i32 : i32, i32
  }
  func.func @transform_1(%arg0: i32) -> (i32, i32) {
    %c0_i32 = arith.constant 0 : i32
    %c0_i32_0 = arith.constant 0 : i32
    %c0_i32_1 = arith.constant 0 : i32
    return %c0_i32, %c0_i32_0 : i32, i32
  }
  func.func @transform_2(%arg0: i32) -> (i32, i32) {
    %c0_i32 = arith.constant 0 : i32
    %c0_i32_0 = arith.constant 0 : i32
    %c0_i32_1 = arith.constant 0 : i32
    return %c0_i32, %c0_i32_0 : i32, i32
  }
  func.func @transform_3(%arg0: i32) -> (i32, i32) {
    %c0_i32 = arith.constant 0 : i32
    %c0_i32_0 = arith.constant 0 : i32
    %c0_i32_1 = arith.constant 0 : i32
    return %c0_i32, %c0_i32_0 : i32, i32
  }
  func.func @transform_4(%arg0: i32) -> (i32, i32, i32, i32) {
    %c0_i32 = arith.constant 0 : i32
    %c0_i32_0 = arith.constant 0 : i32
    %c0_i32_1 = arith.constant 0 : i32
    %c0_i32_2 = arith.constant 0 : i32
    %c0_i32_3 = arith.constant 0 : i32
    return %c0_i32, %c0_i32_0, %c0_i32_1, %c0_i32_2 : i32, i32, i32, i32
  }
  func.func @transform_5(%arg0: i32) -> (i32, i32) {
    %c0_i32 = arith.constant 0 : i32
    %c0_i32_0 = arith.constant 0 : i32
    %c0_i32_1 = arith.constant 0 : i32
    return %c0_i32, %c0_i32_0 : i32, i32
  }
  func.func @transform_6(%arg0: i32) -> (i32, i32) {
    %c0_i32 = arith.constant 0 : i32
    %c0_i32_0 = arith.constant 0 : i32
    %c0_i32_1 = arith.constant 0 : i32
    return %c0_i32, %c0_i32_0 : i32, i32
  }
  func.func @transform_7(%arg0: i32) -> (i32, i32) {
    %c0_i32 = arith.constant 0 : i32
    %c0_i32_0 = arith.constant 0 : i32
    %c0_i32_1 = arith.constant 0 : i32
    return %c0_i32, %c0_i32_0 : i32, i32
  }
  func.func @transform_8(%arg0: i32) -> (i32, i32) {
    %c0_i32 = arith.constant 0 : i32
    %c0_i32_0 = arith.constant 0 : i32
    return %arg0, %c0_i32 : i32, i32
  }
}

</mosaic_0001>

<bundles_post_ra>
// kernel: tpu_custom_call.1
= control target key start
LH: loop header
LB: loop body
LE: loop exit
PB: predicated region body
PF: predicated region fallthrough
CT: control target
= control target key end

     0   :  { %13 = vsyncpa [#allocation5], 0  ;;  %s7003_s0 = inlined_call_operand.vmem [shape: f32[200,128], index: 0, kind: input, shape index: {}]   ;;  %s7004_s1 = inlined_call_operand.vmem [shape: f32[200,1], index: 1, kind: input, shape index: {}]   ;;  %s7005_s2 = inlined_call_operand.hbm [shape: f32[128,128], index: 2, kind: input, shape index: {}]   ;;  %s7006_s3 = inlined_call_operand.vmem [shape: f32[1,128], index: 3, kind: input, shape index: {}]   ;;  %s7007_s4 = inlined_call_operand.hbm [shape: f32[3,3,128,128], index: 4, kind: input, shape index: {}]   ;;  %s7008_s5 = inlined_call_operand.vmem [shape: f32[1,128], index: 5, kind: input, shape index: {}]   ;;  %s7009_s6 = inlined_call_operand.hbm [shape: f32[128,128], index: 6, kind: input, shape index: {}]   ;;  %s7010_s7 = inlined_call_operand.vmem [shape: f32[1,128], index: 7, kind: input, shape index: {}]   ;;  %s7011_s8 = inlined_call_operand.hbm [shape: f32[200,128], index: 8, kind: output, shape index: {}]  }
   0x1   :  { %14 = vsyncpa [#allocation8], 0 }
   0x2   :  { %15 = vsyncpa [#allocation6], 0  ;;  %s5427_s27 = smov [#allocation7]   ;;  %s5428_s29 = smov [#allocation4]  }
   0x3   :  { %s39_s28 = sshll.u32 %s5427_s27, 4  ;;  %s25_s30 = sshll.u32 %s5428_s29, 4  ;;  %s40_s28 = int_to_ptr.vmem [resolvable:$true] %s39_s28  ;;  %s26_s30 = int_to_ptr.vmem [resolvable:$true] %s25_s30 }
   0x4   :  { %s5349_s9 = scalar_lea.vmem %s40_s28, 18432  ;;  %p5354_p1 = scmp.lt.s32.totalorder %s40_s28, %s40_s28 }
   0x5   :  { %p5350_p0 = scmp.ne.s32.totalorder %s40_s28, %s5349_s9  ;;  %p5355_p2 = scmp.lt.s32.totalorder %s5349_s9, %s5349_s9 }
   0x7   :  { %p5356_p3 = por %p5355_p2, %p5354_p1 }
   0x9   :  { %p5357_p4 = pnand %p5356_p3, %p5350_p0 }
   0xb   :  { %5360 = shalt.err (!%p5357_p4)
}
   0xc   :  { %s5429_s10 = smov 128   ;;  %s5430_s11 = smov 8  }
   0xd   :  { %45 = dma.hbm_to_vmem [thread:$0]  %s7007_s4, 18432, %s40_s28, [#allocation8], %s5429_s10, %s5429_s10, %s5430_s11  }
   0xe   :  { %s5369_s14 = scalar_lea.vmem %s26_s30, 2048  ;;  %p5374_p6 = scmp.lt.s32.totalorder %s26_s30, %s26_s30 }
   0xf   :  { %p5370_p5 = scmp.ne.s32.totalorder %s26_s30, %s5369_s14  ;;  %p5375_p7 = scmp.lt.s32.totalorder %s5369_s14, %s5369_s14 }
  0x11   :  { %p5376_p8 = por %p5375_p7, %p5374_p6 }
  0x13   :  { %p5377_p9 = pnand %p5376_p8, %p5370_p5 }
  0x15   :  { %5380 = shalt.err (!%p5377_p9)
}
  0x16   :  { %31 = dma.hbm_to_vmem [thread:$0]  %s7005_s2, 2048, %s26_s30, [#allocation5], %s5429_s10, %s5429_s10, %s5430_s11  }
  0x17   :  { %s5431_s17 = smov [#allocation9]  }
  0x18   :  { %s53_s18 = sshll.u32 %s5431_s17, 4  ;;  %s54_s18 = int_to_ptr.vmem [resolvable:$true] %s53_s18 }
  0x19   :  { %s5389_s19 = scalar_lea.vmem %s54_s18, 2048  ;;  %p5394_p11 = scmp.lt.s32.totalorder %s54_s18, %s54_s18 }
  0x1a   :  { %p5390_p10 = scmp.ne.s32.totalorder %s54_s18, %s5389_s19  ;;  %p5395_p12 = scmp.lt.s32.totalorder %s5389_s19, %s5389_s19 }
  0x1c   :  { %p5396_p13 = por %p5395_p12, %p5394_p11 }
  0x1e   :  { %p5397_p0 = pnand %p5396_p13, %p5390_p10 }
  0x20   :  { %5400 = shalt.err (!%p5397_p0)
}
  0x21   :  { %59 = dma.hbm_to_vmem [thread:$0]  %s7009_s6, 2048, %s54_s18, [#allocation8], %s5429_s10, %s5429_s10, %s5430_s11  }
  0x22   :  { %5421 = dma.done.wait [#allocation5], 2048  }
  0x23   :  { %5422 = vsyncadd [#allocation5], 4294965248 }
  0x24   :  { %5423 = dma.done.wait [#allocation8], 20480  }
  0x25   :  { %5424 = vsyncadd [#allocation8], 4294946816  ;;  %v5432_v0 = vmov 0.0   ;;  %vm5433_vm0 = vmmov 0   ;;  %v5434_v1 = vmov 0   ;;  %v111_v2 = vld [vmem:[#allocation4 + $0x78] sm:$0xff] }
  0x26   :  { %4117 = vmatprep.subr.mxu0 %v5432_v0  ;;  %509 = vst [vmem:[#allocation2] sm:$0xff] %v5432_v0  ;;  %510 = vst [vmem:[#allocation2 + $0x8] sm:$0xff] %v5432_v0  ;;  %5294 = vmatprep.subr.mxu1 %v5432_v0  ;;  %v110_v3 = vld [vmem:[#allocation4 + $0x70] sm:$0xff]  ;;  %v109_v4 = vld [vmem:[#allocation4 + $0x68] sm:$0xff] }
  0x27   :  { %511 = vst [vmem:[#allocation2 + $0xd8] sm:$0xff] %v5432_v0  ;;  %512 = vst [vmem:[#allocation2 + $0xe0] sm:$0xff] %v5432_v0  ;;  %4149 = vmatprep.mubr.msk.f32.mxu0 %vm5433_vm0, %v5432_v0  ;;  %4188 = vmatprep.mubr.msk.f32.mxu1 %vm5433_vm0, %v5432_v0  ;;  %v108_v5 = vld [vmem:[#allocation4 + $0x60] sm:$0xff]  ;;  %v107_v6 = vld [vmem:[#allocation4 + $0x58] sm:$0xff] }
  0x28   :  { %5335 = vset.pattern.permute.xlu0 %v5434_v1  ;;  %5336 = vset.pattern.permute.xlu1 %v5434_v1  ;;  %v106_v7 = vld [vmem:[#allocation4 + $0x50] sm:$0xff]  ;;  %v105_v8 = vld [vmem:[#allocation4 + $0x48] sm:$0xff]  ;;  %v104_v9 = vld [vmem:[#allocation4 + $0x40] sm:$0xff] }
  0x29   :  { %4118 = vmatpush3.msra.mxu0 %v111_v2  ;;  %5310 = vmatpush3.msra.mxu1 %v111_v2  ;;  %v103_v10 = vld [vmem:[#allocation4 + $0x38] sm:$0xff]  ;;  %v102_v11 = vld [vmem:[#allocation4 + $0x30] sm:$0xff]  ;;  %v101_v12 = vld [vmem:[#allocation4 + $0x28] sm:$0xff] }
  0x2a   :  { %4119 = vmatprep.subr.mxu0 %v5432_v0  ;;  %5295 = vmatprep.subr.mxu1 %v5432_v0  ;;  %v100_v13 = vld [vmem:[#allocation4 + $0x20] sm:$0xff]  ;;  %v99_v14 = vld [vmem:[#allocation4 + $0x18] sm:$0xff]  ;;  %v98_v15 = vld [vmem:[#allocation4 + $0x10] sm:$0xff] }
  0x2b   :  { %4120 = vmatpush3.msra.mxu0 %v110_v3  ;;  %5311 = vmatpush3.msra.mxu1 %v110_v3  ;;  %v97_v16 = vld [vmem:[#allocation4 + $0x8] sm:$0xff]  ;;  %v96_v17 = vld [vmem:[#allocation4] sm:$0xff]  ;;  %v71_v18 = vld [vmem:[%s7003_s0] sm:$0xff] }
  0x2c   :  { %4121 = vmatprep.subr.mxu0 %v5432_v0  ;;  %5296 = vmatprep.subr.mxu1 %v5432_v0  ;;  %v84_v19 = vld [vmem:[%s7003_s0 + $0x68] sm:$0xff]  ;;  %v334_v20 = vld [vmem:[%s7004_s1] sm:$0xff]  ;;  %v336_v21 = vld [vmem:[%s7004_s1 + $0x10] sm:$0xff] }
  0x2d   :  { %4122 = vmatpush3.msra.mxu0 %v109_v4  ;;  %5312 = vmatpush3.msra.mxu1 %v109_v4  ;;  %v72_v22 = vld [vmem:[%s7003_s0 + $0x8] sm:$0xff]  ;;  %v85_v23 = vld [vmem:[%s7003_s0 + $0x70] sm:$0xff]  ;;  %v337_v25 = vld [vmem:[%s7004_s1 + $0x18] sm:$0xff] }
  0x2e   :  { %4123 = vmatprep.subr.mxu0 %v5432_v0  ;;  %5297 = vmatprep.subr.mxu1 %v5432_v0  ;;  %v335_v24 = vld [vmem:[%s7004_s1 + $0x8] sm:$0xff]  ;;  %v578_v26 = vld [vmem:[#allocation7 + $0x78] sm:$0xff]  ;;  %v73_v27 = vld [vmem:[%s7003_s0 + $0x10] sm:$0xff] }
  0x2f   :  { %4124 = vmatpush3.msra.mxu0 %v108_v5  ;;  %5313 = vmatpush3.msra.mxu1 %v108_v5  ;;  %v86_v28 = vld [vmem:[%s7003_s0 + $0x78] sm:$0xff]  ;;  %v338_v29 = vld [vmem:[%s7004_s1 + $0x20] sm:$0xff]  ;;  %v339_v30 = vld [vmem:[%s7004_s1 + $0x28] sm:$0xff] }
  0x30   :  { %4125 = vmatprep.subr.mxu0 %v5432_v0  ;;  %5298 = vmatprep.subr.mxu1 %v5432_v0  ;;  %v74_v31 = vld [vmem:[%s7003_s0 + $0x18] sm:$0xff]  ;;  %v87_v32 = vld [vmem:[%s7003_s0 + $0x80] sm:$0xff]  ;;  %v340_v33 = vld [vmem:[%s7004_s1 + $0x30] sm:$0xff] }
  0x31   :  { %4126 = vmatpush3.msra.mxu0 %v107_v6  ;;  %5314 = vmatpush3.msra.mxu1 %v107_v6  ;;  %v341_v34 = vld [vmem:[%s7004_s1 + $0x38] sm:$0xff]  ;;  %v75_v36 = vld [vmem:[%s7003_s0 + $0x20] sm:$0xff]  ;;  %v88_v37 = vld [vmem:[%s7003_s0 + $0x88] sm:$0xff] }
  0x32   :  { %4127 = vmatprep.subr.mxu0 %v5432_v0  ;;  %5299 = vmatprep.subr.mxu1 %v5432_v0  ;;  %v577_v35 = vld [vmem:[#allocation7 + $0x70] sm:$0xff]  ;;  %v342_v38 = vld [vmem:[%s7004_s1 + $0x40] sm:$0xff]  ;;  %v343_v39 = vld [vmem:[%s7004_s1 + $0x48] sm:$0xff] }
  0x33   :  { %4128 = vmatpush3.msra.mxu0 %v106_v7  ;;  %5315 = vmatpush3.msra.mxu1 %v106_v7  ;;  %v76_v40 = vld [vmem:[%s7003_s0 + $0x28] sm:$0xff]  ;;  %v89_v41 = vld [vmem:[%s7003_s0 + $0x90] sm:$0xff]  ;;  %v345_v43 = vld [vmem:[%s7004_s1 + $0x58] sm:$0xff] }
  0x34   :  { %4129 = vmatprep.subr.mxu0 %v5432_v0  ;;  %5300 = vmatprep.subr.mxu1 %v5432_v0  ;;  %v344_v42 = vld [vmem:[%s7004_s1 + $0x50] sm:$0xff]  ;;  %v90_v46 = vld [vmem:[%s7003_s0 + $0x98] sm:$0xff]  ;;  %v835_v47 = vld [vmem:[#allocation7 + $0xf8] sm:$0xff] }
  0x35   :  { %4130 = vmatpush3.msra.mxu0 %v105_v8  ;;  %5316 = vmatpush3.msra.mxu1 %v105_v8  ;;  %v576_v44 = vld [vmem:[#allocation7 + $0x68] sm:$0xff]  ;;  %v346_v48 = vld [vmem:[%s7004_s1 + $0x60] sm:$0xff]  ;;  %v347_v49 = vld [vmem:[%s7004_s1 + $0x68] sm:$0xff] }
  0x36   :  { %4131 = vmatprep.subr.mxu0 %v5432_v0  ;;  %5301 = vmatprep.subr.mxu1 %v5432_v0  ;;  %v77_v45 = vld [vmem:[%s7003_s0 + $0x30] sm:$0xff]  ;;  %v78_v50 = vld [vmem:[%s7003_s0 + $0x38] sm:$0xff]  ;;  %v91_v51 = vld [vmem:[%s7003_s0 + $0xa0] sm:$0xff] }
  0x37   :  { %4132 = vmatpush3.msra.mxu0 %v104_v9  ;;  %5317 = vmatpush3.msra.mxu1 %v104_v9  ;;  %v348_v52 = vld [vmem:[%s7004_s1 + $0x70] sm:$0xff]  ;;  %v349_v53 = vld [vmem:[%s7004_s1 + $0x78] sm:$0xff]  ;;  %v575_v54 = vld [vmem:[#allocation7 + $0x60] sm:$0xff] }
  0x38   :  { %4133 = vmatprep.subr.mxu0 %v5432_v0  ;;  %5302 = vmatprep.subr.mxu1 %v5432_v0  ;;  %v834_v55 = vld [vmem:[#allocation7 + $0xf0] sm:$0xff]  ;;  %v79_v56 = vld [vmem:[%s7003_s0 + $0x40] sm:$0xff]  ;;  %v92_v57 = vld [vmem:[%s7003_s0 + $0xa8] sm:$0xff] }
  0x39   :  { %4134 = vmatpush3.msra.mxu0 %v103_v10  ;;  %5318 = vmatpush3.msra.mxu1 %v103_v10  ;;  %v350_v58 = vld [vmem:[%s7004_s1 + $0x80] sm:$0xff]  ;;  %v351_v59 = vld [vmem:[%s7004_s1 + $0x88] sm:$0xff]  ;;  %v93_v61 = vld [vmem:[%s7003_s0 + $0xb0] sm:$0xff] }
  0x3a   :  { %4135 = vmatprep.subr.mxu0 %v5432_v0  ;;  %5303 = vmatprep.subr.mxu1 %v5432_v0  ;;  %v80_v60 = vld [vmem:[%s7003_s0 + $0x48] sm:$0xff]  ;;  %v352_v62 = vld [vmem:[%s7004_s1 + $0x90] sm:$0xff]  ;;  %v353_v63 = vld [vmem:[%s7004_s1 + $0x98] sm:$0xff] }
  0x3b   :  { %4136 = vmatpush3.msra.mxu0 %v102_v11  ;;  %5319 = vmatpush3.msra.mxu1 %v102_v11  ;;  %v574_v1 = vld [vmem:[#allocation7 + $0x58] sm:$0xff]  ;;  %v833_v2 = vld [vmem:[#allocation7 + $0xe8] sm:$0xff]  ;;  %v94_v4 = vld [vmem:[%s7003_s0 + $0xb8] sm:$0xff] }
  0x3c   :  { %4137 = vmatprep.subr.mxu0 %v5432_v0  ;;  %5304 = vmatprep.subr.mxu1 %v5432_v0  ;;  %v81_v3 = vld [vmem:[%s7003_s0 + $0x50] sm:$0xff]  ;;  %v354_v5 = vld [vmem:[%s7004_s1 + $0xa0] sm:$0xff]  ;;  %v355_v6 = vld [vmem:[%s7004_s1 + $0xa8] sm:$0xff] }
  0x3d   :  { %4138 = vmatpush3.msra.mxu0 %v101_v12  ;;  %5320 = vmatpush3.msra.mxu1 %v101_v12  ;;  %v82_v7 = vld [vmem:[%s7003_s0 + $0x58] sm:$0xff]  ;;  %v95_v8 = vld [vmem:[%s7003_s0 + $0xc0] sm:$0xff]  ;;  %v356_v10 = vld [vmem:[%s7004_s1 + $0xb0] sm:$0xff] }
  0x3e   :  { %4139 = vmatprep.subr.mxu0 %v5432_v0  ;;  %5305 = vmatprep.subr.mxu1 %v5432_v0  ;;  %v573_v9 = vld [vmem:[#allocation7 + $0x50] sm:$0xff]  ;;  %v832_v12 = vld [vmem:[#allocation7 + $0xe0] sm:$0xff] }
  0x3f   :  { %4140 = vmatpush3.msra.mxu0 %v100_v13  ;;  %5321 = vmatpush3.msra.mxu1 %v100_v13  ;;  %v357_v11 = vld [vmem:[%s7004_s1 + $0xb8] sm:$0xff]  ;;  %v83_v13 = vld [vmem:[%s7003_s0 + $0x60] sm:$0xff] }
  0x40   :  { %4141 = vmatprep.subr.mxu0 %v5432_v0  ;;  %5306 = vmatprep.subr.mxu1 %v5432_v0 }
  0x41   :  { %4142 = vmatpush3.msra.mxu0 %v99_v14  ;;  %5322 = vmatpush3.msra.mxu1 %v99_v14  ;;  %v572_v14 = vld [vmem:[#allocation7 + $0x48] sm:$0xff] }
  0x42   :  { %4143 = vmatprep.subr.mxu0 %v5432_v0  ;;  %5307 = vmatprep.subr.mxu1 %v5432_v0 }
  0x43   :  { %4144 = vmatpush3.msra.mxu0 %v98_v15  ;;  %5323 = vmatpush3.msra.mxu1 %v98_v15  ;;  %v358_v15 = vld [vmem:[%s7004_s1 + $0xc0] sm:$0xff] }
  0x44   :  { %4145 = vmatprep.subr.mxu0 %v5432_v0  ;;  %5308 = vmatprep.subr.mxu1 %v5432_v0 }
  0x45   :  { %4146 = vmatpush3.msra.mxu0 %v97_v16  ;;  %5324 = vmatpush3.msra.mxu1 %v97_v16  ;;  %v571_v16 = vld [vmem:[#allocation7 + $0x40] sm:$0xff] }
  0x46   :  { %4147 = vmatprep.subr.mxu0 %v5432_v0  ;;  %5309 = vmatprep.subr.mxu1 %v5432_v0 }
  0x47   :  { %4148 = vmatpush3.msra.mxu0 %v96_v17  ;;  %5325 = vmatpush3.msra.mxu1 %v96_v17  ;;  %v831_v17 = vld [vmem:[#allocation7 + $0xd8] sm:$0xff] }
  0x48   :  { %4150 = vmatmul.mubr.f32.vlgmr.msra.gmra.mxu0 %v71_v18  ;;  %4189 = vmatmul.mubr.f32.vlgmr.msra.gmra.mxu1 %v84_v19  ;;  %v570_v18 = vld [vmem:[#allocation7 + $0x38] sm:$0xff]  ;;  %v830_v19 = vld [vmem:[#allocation7 + $0xd0] sm:$0xff] }
  0x49   :  { %4152 = vmatprep.mubr.msk.f32.mxu0 %vm5433_vm0, %v5432_v0  ;;  %4191 = vmatprep.mubr.msk.f32.mxu1 %vm5433_vm0, %v5432_v0 }
  0x4a   :  { %361 = vperm.xlu0 %5335, %v334_v20   ;;  %371 = vperm.xlu1 %5336, %v336_v21   ;;  %v569_v20 = vld [vmem:[#allocation7 + $0x30] sm:$0xff]  ;;  %v829_v21 = vld [vmem:[#allocation7 + $0xc8] sm:$0xff] }
  0x4b   :  { %4224 = vmatprep.subr.mxu1 %v5432_v0  ;;  %4331 = vmatprep.subr.mxu0 %v5432_v0 }
  0x4c   :  { %4153 = vmatmul.mubr.f32.gmra.mxu0 %v72_v22  ;;  %4192 = vmatmul.mubr.f32.gmra.mxu1 %v85_v23  ;;  %v568_v22 = vld [vmem:[#allocation7 + $0x28] sm:$0xff]  ;;  %v828_v23 = vld [vmem:[#allocation7 + $0xc0] sm:$0xff] }
  0x4d   :  { %4155 = vmatprep.mubr.msk.f32.mxu0 %vm5433_vm0, %v5432_v0  ;;  %4194 = vmatprep.mubr.msk.f32.mxu1 %vm5433_vm0, %v5432_v0 }
  0x4e   :  { %366 = vperm.xlu0 %5335, %v335_v24   ;;  %376 = vperm.xlu1 %5336, %v337_v25   ;;  %v567_v24 = vld [vmem:[#allocation7 + $0x20] sm:$0xff]  ;;  %v827_v25 = vld [vmem:[#allocation7 + $0xb8] sm:$0xff] }
  0x4f   :  { %4225 = vmatpush3.msra.mxu1 %v578_v26  ;;  %4332 = vmatpush3.msra.mxu0 %v835_v47  ;;  %v566_v26 = vld [vmem:[#allocation7 + $0x18] sm:$0xff] }
  0x50   :  { %4156 = vmatmul.mubr.f32.gmra.mxu0 %v73_v27  ;;  %4195 = vmatmul.mubr.f32.gmra.mxu1 %v86_v28  ;;  %v826_v27 = vld [vmem:[#allocation7 + $0xb0] sm:$0xff]  ;;  %v825_v28 = vld [vmem:[#allocation7 + $0xa8] sm:$0xff]  ;;  %v1134_v47 = vld [vmem:[#allocation7 + $0x138] sm:$0xff] }
  0x51   :  { %4158 = vmatprep.mubr.msk.f32.mxu0 %vm5433_vm0, %v5432_v0  ;;  %4197 = vmatprep.mubr.msk.f32.mxu1 %vm5433_vm0, %v5432_v0 }
  0x52   :  { %381 = vperm.xlu0 %5335, %v338_v29   ;;  %386 = vperm.xlu1 %5336, %v339_v30   ;;  %v824_v29 = vld [vmem:[#allocation7 + $0xa0] sm:$0xff]  ;;  %v565_v30 = vld [vmem:[#allocation7 + $0x10] sm:$0xff] }
  0x53   :  { %4226 = vmatprep.subr.mxu1 %v5432_v0  ;;  %4333 = vmatprep.subr.mxu0 %v5432_v0 }
  0x54   :  { %4159 = vmatmul.mubr.f32.gmra.mxu0 %v74_v31  ;;  %4198 = vmatmul.mubr.f32.gmra.mxu1 %v87_v32  ;;  %v823_v31 = vld [vmem:[#allocation7 + $0x98] sm:$0xff]  ;;  %v564_v32 = vld [vmem:[#allocation7 + $0x8] sm:$0xff] }
  0x55   :  { %4161 = vmatprep.mubr.msk.f32.mxu0 %vm5433_vm0, %v5432_v0  ;;  %4200 = vmatprep.mubr.msk.f32.mxu1 %vm5433_vm0, %v5432_v0 }
  0x56   :  { %391 = vperm.xlu0 %5335, %v340_v33   ;;  %396 = vperm.xlu1 %5336, %v341_v34   ;;  %v822_v33 = vld [vmem:[#allocation7 + $0x90] sm:$0xff]  ;;  %v563_v34 = vld [vmem:[#allocation7] sm:$0xff] }
  0x57   :  { %4227 = vmatpush3.msra.mxu1 %v577_v35  ;;  %4334 = vmatpush3.msra.mxu0 %v834_v55  ;;  %v821_v35 = vld [vmem:[#allocation7 + $0x88] sm:$0xff]  ;;  %v1446_v55 = vld [vmem:[#allocation7 + $0x1e0] sm:$0xff] }
  0x58   :  { %4162 = vmatmul.mubr.f32.gmra.mxu0 %v75_v36  ;;  %4201 = vmatmul.mubr.f32.gmra.mxu1 %v88_v37  ;;  %v538_v36 = vld [vmem:[#allocation2 + $0x5] sm:$0xff] }
  0x59   :  { %4164 = vmatprep.mubr.msk.f32.mxu0 %vm5433_vm0, %v5432_v0  ;;  %4203 = vmatprep.mubr.msk.f32.mxu1 %vm5433_vm0, %v5432_v0  ;;  %v820_v37 = vld [vmem:[#allocation7 + $0x80] sm:$0xff] }
  0x5a   :  { %401 = vperm.xlu0 %5335, %v342_v38   ;;  %406 = vperm.xlu1 %5336, %v343_v39   ;;  %v794_v38 = vld [vmem:[#allocation2 + $0x6] sm:$0xff] }
  0x5b   :  { %4228 = vmatprep.subr.mxu1 %v5432_v0  ;;  %4335 = vmatprep.subr.mxu0 %v5432_v0  ;;  %v1142_v39 = vld [vmem:[#allocation7 + $0x178] sm:$0xff] }
  0x5c   :  { %4165 = vmatmul.mubr.f32.gmra.mxu0 %v76_v40  ;;  %4204 = vmatmul.mubr.f32.gmra.mxu1 %v89_v41  ;;  %v1141_v40 = vld [vmem:[#allocation7 + $0x170] sm:$0xff]  ;;  %v1140_v41 = vld [vmem:[#allocation7 + $0x168] sm:$0xff] }
  0x5d   :  { %4167 = vmatprep.mubr.msk.f32.mxu0 %vm5433_vm0, %v5432_v0  ;;  %4206 = vmatprep.mubr.msk.f32.mxu1 %vm5433_vm0, %v5432_v0 }
  0x5e   :  { %411 = vperm.xlu0 %5335, %v344_v42   ;;  %416 = vperm.xlu1 %5336, %v345_v43   ;;  %v1139_v42 = vld [vmem:[#allocation7 + $0x160] sm:$0xff]  ;;  %v1138_v43 = vld [vmem:[#allocation7 + $0x158] sm:$0xff] }
  0x5f   :  { %4229 = vmatpush3.msra.mxu1 %v576_v44  ;;  %4336 = vmatpush3.msra.mxu0 %v833_v2  ;;  %v1137_v44 = vld [vmem:[#allocation7 + $0x150] sm:$0xff] }
  0x60   :  { %4168 = vmatmul.mubr.f32.gmra.mxu0 %v77_v45  ;;  %4207 = vmatmul.mubr.f32.gmra.mxu1 %v90_v46  ;;  %v1136_v45 = vld [vmem:[#allocation7 + $0x148] sm:$0xff]  ;;  %v1135_v46 = vld [vmem:[#allocation7 + $0x140] sm:$0xff] }
  0x61   :  { %4170 = vmatprep.mubr.msk.f32.mxu0 %vm5433_vm0, %v5432_v0  ;;  %4209 = vmatprep.mubr.msk.f32.mxu1 %vm5433_vm0, %v5432_v0 }
  0x62   :  { %421 = vperm.xlu0 %5335, %v346_v48   ;;  %426 = vperm.xlu1 %5336, %v347_v49   ;;  %v1133_v48 = vld [vmem:[#allocation7 + $0x130] sm:$0xff]  ;;  %v1132_v49 = vld [vmem:[#allocation7 + $0x128] sm:$0xff] }
  0x63   :  { %4230 = vmatprep.subr.mxu1 %v5432_v0  ;;  %4337 = vmatprep.subr.mxu0 %v5432_v0 }
  0x64   :  { %4171 = vmatmul.mubr.f32.gmra.mxu0 %v78_v50  ;;  %4210 = vmatmul.mubr.f32.gmra.mxu1 %v91_v51  ;;  %v1131_v50 = vld [vmem:[#allocation7 + $0x120] sm:$0xff]  ;;  %v1449_v51 = vld [vmem:[#allocation7 + $0x1f8] sm:$0xff] }
  0x65   :  { %4173 = vmatprep.mubr.msk.f32.mxu0 %vm5433_vm0, %v5432_v0  ;;  %4212 = vmatprep.mubr.msk.f32.mxu1 %vm5433_vm0, %v5432_v0 }
  0x66   :  { %431 = vperm.xlu0 %5335, %v348_v52   ;;  %436 = vperm.xlu1 %5336, %v349_v53   ;;  %v1448_v52 = vld [vmem:[#allocation7 + $0x1f0] sm:$0xff]  ;;  %v1447_v53 = vld [vmem:[#allocation7 + $0x1e8] sm:$0xff] }
  0x67   :  { %4231 = vmatpush3.msra.mxu1 %v575_v54  ;;  %4338 = vmatpush3.msra.mxu0 %v832_v12  ;;  %v1130_v54 = vld [vmem:[#allocation7 + $0x118] sm:$0xff]  ;;  %v1435_v12 = vld [vmem:[#allocation7 + $0x188] sm:$0xff] }
  0x68   :  { %4174 = vmatmul.mubr.f32.gmra.mxu0 %v79_v56  ;;  %4213 = vmatmul.mubr.f32.gmra.mxu1 %v92_v57  ;;  %v1445_v56 = vld [vmem:[#allocation7 + $0x1d8] sm:$0xff]  ;;  %v1444_v57 = vld [vmem:[#allocation7 + $0x1d0] sm:$0xff] }
  0x69   :  { %4176 = vmatprep.mubr.msk.f32.mxu0 %vm5433_vm0, %v5432_v0  ;;  %4215 = vmatprep.mubr.msk.f32.mxu1 %vm5433_vm0, %v5432_v0 }
  0x6a   :  { %441 = vperm.xlu0 %5335, %v350_v58   ;;  %446 = vperm.xlu1 %5336, %v351_v59   ;;  %v1443_v58 = vld [vmem:[#allocation7 + $0x1c8] sm:$0xff]  ;;  %v1129_v59 = vld [vmem:[#allocation7 + $0x110] sm:$0xff] }
  0x6b   :  { %4232 = vmatprep.subr.mxu1 %v5432_v0  ;;  %4339 = vmatprep.subr.mxu0 %v5432_v0 }
  0x6c   :  { %4177 = vmatmul.mubr.f32.gmra.mxu0 %v80_v60  ;;  %4216 = vmatmul.mubr.f32.gmra.mxu1 %v93_v61  ;;  %v1442_v60 = vld [vmem:[#allocation7 + $0x1c0] sm:$0xff] }
  0x6d   :  { %4179 = vmatprep.mubr.msk.f32.mxu0 %vm5433_vm0, %v5432_v0  ;;  %4218 = vmatprep.mubr.msk.f32.mxu1 %vm5433_vm0, %v5432_v0 }
  0x6e   :  { %451 = vperm.xlu0 %5335, %v352_v62   ;;  %456 = vperm.xlu1 %5336, %v353_v63   ;;  %v1441_v63 = vld [vmem:[#allocation7 + $0x1b8] sm:$0xff] }
  0x6f   :  { %4233 = vmatpush3.msra.mxu1 %v574_v1  ;;  %4340 = vmatpush3.msra.mxu0 %v831_v17  ;;  %v1440_v1 = vld [vmem:[#allocation7 + $0x1b0] sm:$0xff] }
  0x70   :  { %4180 = vmatmul.mubr.f32.gmra.mxu0 %v81_v3  ;;  %4219 = vmatmul.mubr.f32.gmra.mxu1 %v94_v4  ;;  %v1128_v3 = vld [vmem:[#allocation7 + $0x108] sm:$0xff] }
  0x71   :  { %4182 = vmatprep.mubr.msk.f32.mxu0 %vm5433_vm0, %v5432_v0  ;;  %4221 = vmatprep.mubr.msk.f32.mxu1 %vm5433_vm0, %v5432_v0  ;;  %v1439_v4 = vld [vmem:[#allocation7 + $0x1a8] sm:$0xff] }
  0x72   :  { %461 = vperm.xlu0 %5335, %v354_v5   ;;  %466 = vperm.xlu1 %5336, %v355_v6   ;;  %v1438_v5 = vld [vmem:[#allocation7 + $0x1a0] sm:$0xff] }
  0x73   :  { %4234 = vmatprep.subr.mxu1 %v5432_v0  ;;  %4341 = vmatprep.subr.mxu0 %v5432_v0 }
  0x74   :  { %4183 = vmatmul.mubr.f32.gmra.mxu0 %v82_v7  ;;  %4222 = vmatmul.mubr.f32.gmra.mxu1 %v95_v8  ;;  %v1437_v7 = vld [vmem:[#allocation7 + $0x198] sm:$0xff]  ;;  %v1127_v8 = vld [vmem:[#allocation7 + $0x100] sm:$0xff] }
  0x75   :  { %4185 = vmatprep.mubr.msk.f32.mxu0 %vm5433_vm0, %v5432_v0  ;;  %4235 = vmatpush3.msra.mxu1 %v573_v9  ;;  %v1436_v9 = vld [vmem:[#allocation7 + $0x190] sm:$0xff] }
  0x76   :  { %471 = vperm.xlu0 %5335, %v356_v10   ;;  %476 = vperm.xlu1 %5336, %v357_v11  }
  0x77   :  { %4236 = vmatprep.subr.mxu1 %v5432_v0  ;;  %4342 = vmatpush3.msra.mxu0 %v830_v19 }
  0x78   :  { %4186 = vmatmul.mubr.f32.gmra.mxu0 %v83_v13  ;;  %4237 = vmatpush3.msra.mxu1 %v572_v14  ;;  %v1434_v13 = vld [vmem:[#allocation7 + $0x180] sm:$0xff] }
  0x79   :  { %4238 = vmatprep.subr.mxu1 %v5432_v0  ;;  %4343 = vmatprep.subr.mxu0 %v5432_v0 }
  0x7a   :  { %481 = vperm.xlu0 %5335, %v358_v15   ;;  %4239 = vmatpush3.msra.mxu1 %v571_v16 }
  0x7b   :  { %4240 = vmatprep.subr.mxu1 %v5432_v0  ;;  %4344 = vmatpush3.msra.mxu0 %v829_v21 }
  0x7c   :  { %4241 = vmatpush3.msra.mxu1 %v570_v18  ;;  %4345 = vmatprep.subr.mxu0 %v5432_v0 }
  0x7d   :  { %4242 = vmatprep.subr.mxu1 %v5432_v0  ;;  %4346 = vmatpush3.msra.mxu0 %v828_v23 }
  0x7e   :  { %4243 = vmatpush3.msra.mxu1 %v569_v20  ;;  %4347 = vmatprep.subr.mxu0 %v5432_v0  ;;  %v5832_v20 = vld [vmem:[%s7006_s3] ss:$0 sm:$0xff]  ;;  %s5435_s3 = smov [#allocation10]  }
  0x7f   :  { %4244 = vmatprep.subr.mxu1 %v5432_v0  ;;  %4348 = vmatpush3.msra.mxu0 %v827_v25  ;;  %s3650_s28 = sshll.u32 %s5435_s3, 4  ;;  %s3651_s28 = int_to_ptr.vmem [resolvable:$true] %s3650_s28 }
  0x80   :  { %4245 = vmatpush3.msra.mxu1 %v568_v22  ;;  %4349 = vmatprep.subr.mxu0 %v5432_v0  ;;  %p5406_p2 = scmp.lt.s32.totalorder %s3651_s28, %s3651_s28 }
  0x81   :  { %4246 = vmatprep.subr.mxu1 %v5432_v0  ;;  %4350 = vmatpush3.msra.mxu0 %v826_v27 }
  0x82   :  { %4247 = vmatpush3.msra.mxu1 %v567_v24  ;;  %4351 = vmatprep.subr.mxu0 %v5432_v0 }
  0x83   :  { %4248 = vmatprep.subr.mxu1 %v5432_v0  ;;  %4256 = vmatprep.mubr.msk.f32.mxu1 %vm5433_vm0, %v5432_v0 }
  0x84   :  { %4249 = vmatpush3.msra.mxu1 %v566_v26  ;;  %4363 = vmatprep.mubr.msk.f32.mxu0 %vm5433_vm0, %v5432_v0 }
  0x85   :  { %4250 = vmatprep.subr.mxu1 %v5432_v0  ;;  %4352 = vmatpush3.msra.mxu0 %v825_v28 }
  0x86   :  { %4353 = vmatprep.subr.mxu0 %v5432_v0  ;;  %4251 = vmatpush3.msra.mxu1 %v565_v30 }
  0x87   :  { %4354 = vmatpush3.msra.mxu0 %v824_v29  ;;  %4252 = vmatprep.subr.mxu1 %v5432_v0 }
  0x88   :  { %4355 = vmatprep.subr.mxu0 %v5432_v0  ;;  %4253 = vmatpush3.msra.mxu1 %v564_v32 }
  0x89   :  { %4356 = vmatpush3.msra.mxu0 %v823_v31  ;;  %4254 = vmatprep.subr.mxu1 %v5432_v0 }
  0x8a   :  { %4357 = vmatprep.subr.mxu0 %v5432_v0  ;;  %4255 = vmatpush3.msra.mxu1 %v563_v34 }
  0x8b   :  { %4358 = vmatpush3.msra.mxu0 %v822_v33  ;;  %4257 = vmatmul.mubr.f32.vlgmr.msra.gmra.mxu1 %v538_v36 }
  0x8c   :  { %4359 = vmatprep.subr.mxu0 %v5432_v0  ;;  %4438 = vmatprep.subr.mxu1 %v5432_v0 }
  0x8d   :  { %4360 = vmatpush3.msra.mxu0 %v821_v35  ;;  %4259 = vmatprep.mubr.msk.f32.mxu1 %vm5433_vm0, %v5432_v0 }
  0x8e   :  { %4361 = vmatprep.subr.mxu0 %v5432_v0  ;;  %4439 = vmatpush3.msra.mxu1 %v1142_v39 }
  0x8f   :  { %4362 = vmatpush3.msra.mxu0 %v820_v37  ;;  %4440 = vmatprep.subr.mxu1 %v5432_v0 }
  0x90   :  { %4364 = vmatmul.mubr.f32.vlgmr.msra.gmra.mxu0 %v794_v38  ;;  %4545 = vmatprep.subr.mxu0 %v5432_v0 }
  0x91   :  { %4366 = vmatprep.mubr.msk.f32.mxu0 %vm5433_vm0, %v5432_v0  ;;  %4441 = vmatpush3.msra.mxu1 %v1141_v40 }
  0x92   :  { %4442 = vmatprep.subr.mxu1 %v5432_v0  ;;  %4546 = vmatpush3.msra.mxu0 %v1449_v51 }
  0x93   :  { %4443 = vmatpush3.msra.mxu1 %v1140_v41  ;;  %4547 = vmatprep.subr.mxu0 %v5432_v0 }
  0x94   :  { %4444 = vmatprep.subr.mxu1 %v5432_v0  ;;  %4548 = vmatpush3.msra.mxu0 %v1448_v52 }
  0x95   :  { %4445 = vmatpush3.msra.mxu1 %v1139_v42  ;;  %4549 = vmatprep.subr.mxu0 %v5432_v0 }
  0x96   :  { %4446 = vmatprep.subr.mxu1 %v5432_v0  ;;  %4550 = vmatpush3.msra.mxu0 %v1447_v53 }
  0x97   :  { %4447 = vmatpush3.msra.mxu1 %v1138_v43  ;;  %4551 = vmatprep.subr.mxu0 %v5432_v0 }
  0x98   :  { %4448 = vmatprep.subr.mxu1 %v5432_v0  ;;  %4552 = vmatpush3.msra.mxu0 %v1446_v55 }
  0x99   :  { %4449 = vmatpush3.msra.mxu1 %v1137_v44  ;;  %4553 = vmatprep.subr.mxu0 %v5432_v0 }
  0x9a   :  { %4450 = vmatprep.subr.mxu1 %v5432_v0  ;;  %4554 = vmatpush3.msra.mxu0 %v1445_v56 }
  0x9b   :  { %4451 = vmatpush3.msra.mxu1 %v1136_v45  ;;  %4555 = vmatprep.subr.mxu0 %v5432_v0 }
  0x9c   :  { %4452 = vmatprep.subr.mxu1 %v5432_v0  ;;  %4556 = vmatpush3.msra.mxu0 %v1444_v57 }
  0x9d   :  { %4453 = vmatpush3.msra.mxu1 %v1135_v46  ;;  %4557 = vmatprep.subr.mxu0 %v5432_v0 }
  0x9e   :  { %4454 = vmatprep.subr.mxu1 %v5432_v0  ;;  %4558 = vmatpush3.msra.mxu0 %v1443_v58 }
  0x9f   :  { %4455 = vmatpush3.msra.mxu1 %v1134_v47  ;;  %4559 = vmatprep.subr.mxu0 %v5432_v0 }
  0xa0   :  { %4456 = vmatprep.subr.mxu1 %v5432_v0  ;;  %4560 = vmatpush3.msra.mxu0 %v1442_v60 }
  0xa1   :  { %4457 = vmatpush3.msra.mxu1 %v1133_v48  ;;  %4561 = vmatprep.subr.mxu0 %v5432_v0 }
  0xa2   :  { %4458 = vmatprep.subr.mxu1 %v5432_v0  ;;  %4562 = vmatpush3.msra.mxu0 %v1441_v63 }
  0xa3   :  { %4459 = vmatpush3.msra.mxu1 %v1132_v49  ;;  %4563 = vmatprep.subr.mxu0 %v5432_v0 }
  0xa4   :  { %4460 = vmatprep.subr.mxu1 %v5432_v0  ;;  %4564 = vmatpush3.msra.mxu0 %v1440_v1 }
  0xa5   :  { %4461 = vmatpush3.msra.mxu1 %v1131_v50  ;;  %4565 = vmatprep.subr.mxu0 %v5432_v0 }
  0xa6   :  { %4462 = vmatprep.subr.mxu1 %v5432_v0  ;;  %4566 = vmatpush3.msra.mxu0 %v1439_v4 }
  0xa7   :  { %4463 = vmatpush3.msra.mxu1 %v1130_v54  ;;  %4567 = vmatprep.subr.mxu0 %v5432_v0 }
  0xa8   :  { %4464 = vmatprep.subr.mxu1 %v5432_v0  ;;  %4568 = vmatpush3.msra.mxu0 %v1438_v5 }
  0xa9   :  { %4465 = vmatpush3.msra.mxu1 %v1129_v59  ;;  %4569 = vmatprep.subr.mxu0 %v5432_v0 }
  0xaa   :  { %4466 = vmatprep.subr.mxu1 %v5432_v0  ;;  %4570 = vmatpush3.msra.mxu0 %v1437_v7 }
  0xab   :  { %4467 = vmatpush3.msra.mxu1 %v1128_v3  ;;  %4571 = vmatprep.subr.mxu0 %v5432_v0 }
  0xac   :  { %4468 = vmatprep.subr.mxu1 %v5432_v0  ;;  %4572 = vmatpush3.msra.mxu0 %v1436_v9 }
  0xad   :  { %4469 = vmatpush3.msra.mxu1 %v1127_v8  ;;  %4573 = vmatprep.subr.mxu0 %v5432_v0 }
  0xae   :  { %4652 = vmatprep.subr.mxu1 %v5432_v0  ;;  %4574 = vmatpush3.msra.mxu0 %v1435_v12 }
  0xaf   :  { %4575 = vmatprep.subr.mxu0 %v5432_v0 }
  0xb0   :  { %4576 = vmatpush3.msra.mxu0 %v1434_v13 }
  0xb1   :  { %4759 = vmatprep.subr.mxu0 %v5432_v0 }
  0xc5   :  { %v362_v61 = vpop.permute.xlu0 %361  ;;  %v5798_v62 = vpop.permute.xlu1 %371 }
  0xc9   :  { %v367_v2 = vpop.permute.xlu0 %366  ;;  %v5803_v6 = vpop.permute.xlu1 %376 }
  0xcd   :  { %v5808_v10 = vpop.permute.xlu0 %381  ;;  %v5812_v11 = vpop.permute.xlu1 %386 }
  0xd1   :  { %v5816_v14 = vpop.permute.xlu0 %391  ;;  %v5819_v15 = vpop.permute.xlu1 %396 }
  0xd5   :  { %v5821_v16 = vpop.permute.xlu0 %401  ;;  %v5823_v17 = vpop.permute.xlu1 %406 }
  0xd9   :  { %v5825_v18 = vpop.permute.xlu0 %411  ;;  %v5827_v19 = vpop.permute.xlu1 %416 }
  0xdd   :  { %v5834_v23 = vpop.permute.xlu0 %421  ;;  %v427_v28 = vpop.permute.xlu1 %426 }
  0xe1   :  { %v432_v39 = vpop.permute.xlu0 %431  ;;  %v437_v50 = vpop.permute.xlu1 %436 }
  0xe5   :  { %v442_v1 = vpop.permute.xlu0 %441 }
 0x108   :  { %v185_v21 = vpop.f32.mrf.mxu0  ;;  %v250_v22 = vpop.f32.mrf.mxu1 }
 0x109   :  { %v186_v24 = vadd.f32 %v5832_v20, %v185_v21  ;;  %v251_v25 = vadd.f32 %v5832_v20, %v250_v22 }
 0x10a   :  { %v4151_v26 = vpop.f32.mrf.mxu0  ;;  %v4190_v27 = vpop.f32.mrf.mxu1 }
 0x10b   :  { %v309_v29 = vmax.f32 %v186_v24, 0.0  ;;  %v322_v30 = vmax.f32 %v251_v25, 0.0  ;;  %v447_v24 = vpop.permute.xlu1 %446 }
 0x10c   :  { %v190_v31 = vpop.f32.mrf.mxu0  ;;  %v255_v32 = vpop.f32.mrf.mxu1 }
 0x10d   :  { %v484_v33 = vmul.f32 %v362_v61, %v309_v29  ;;  %v497_v34 = vmul.f32 %v427_v28, %v322_v30  ;;  %v191_v35 = vadd.f32 %v5832_v20, %v190_v31  ;;  %v256_v36 = vadd.f32 %v5832_v20, %v255_v32 }
 0x10e   :  { %v4154_v37 = vpop.f32.mrf.mxu0  ;;  %v4193_v38 = vpop.f32.mrf.mxu1 }
 0x10f   :  { %513 = vst [vmem:[#allocation2 + $0x10] sm:$0xff] %v484_v33  ;;  %526 = vst [vmem:[#allocation2 + $0x78] sm:$0xff] %v497_v34  ;;  %v310_v40 = vmax.f32 %v191_v35, 0.0  ;;  %v323_v41 = vmax.f32 %v256_v36, 0.0  ;;  %v452_v36 = vpop.permute.xlu0 %451 }
 0x110   :  { %v195_v42 = vpop.f32.mrf.mxu0  ;;  %v260_v43 = vpop.f32.mrf.mxu1 }
 0x111   :  { %v485_v44 = vmul.f32 %v367_v2, %v310_v40  ;;  %v498_v45 = vmul.f32 %v432_v39, %v323_v41  ;;  %v196_v46 = vadd.f32 %v5832_v20, %v195_v42  ;;  %v261_v47 = vadd.f32 %v5832_v20, %v260_v43  ;;  %v5859_v40 = vld [vmem:[#allocation2] sm:$0xff] }
 0x112   :  { %v4157_v48 = vpop.f32.mrf.mxu0  ;;  %v4196_v49 = vpop.f32.mrf.mxu1 }
 0x113   :  { %514 = vst [vmem:[#allocation2 + $0x18] sm:$0xff] %v485_v44  ;;  %527 = vst [vmem:[#allocation2 + $0x80] sm:$0xff] %v498_v45  ;;  %v311_v51 = vmax.f32 %v196_v46, 0.0  ;;  %v324_v52 = vmax.f32 %v261_v47, 0.0  ;;  %v457_v48 = vpop.permute.xlu1 %456 }
 0x114   :  { %v200_v53 = vpop.f32.mrf.mxu0  ;;  %v265_v54 = vpop.f32.mrf.mxu1 }
 0x115   :  { %v486_v55 = vmul.f32 %v5798_v62, %v311_v51  ;;  %v499_v56 = vmul.f32 %v437_v50, %v324_v52  ;;  %v201_v57 = vadd.f32 %v5832_v20, %v200_v53  ;;  %v266_v58 = vadd.f32 %v5832_v20, %v265_v54 }
 0x116   :  { %v4160_v59 = vpop.f32.mrf.mxu0  ;;  %v4199_v60 = vpop.f32.mrf.mxu1  ;;  %v539_v61 = vld [vmem:[#allocation2 + $0xd] sm:$0xff] }
 0x117   :  { %v795_v63 = vld [vmem:[#allocation2 + $0xe] sm:$0xff]  ;;  %515 = vst [vmem:[#allocation2 + $0x20] sm:$0xff] %v486_v55  ;;  %528 = vst [vmem:[#allocation2 + $0x88] sm:$0xff] %v499_v56  ;;  %v312_v2 = vmax.f32 %v201_v57, 0.0  ;;  %v325_v3 = vmax.f32 %v266_v58, 0.0  ;;  %4260 = vmatmul.mubr.f32.gmra.mxu1 %v539_v61  ;;  %v462_v60 = vpop.permute.xlu0 %461 }
 0x118   :  { %4367 = vmatmul.mubr.f32.gmra.mxu0 %v795_v63  ;;  %v205_v4 = vpop.f32.mrf.mxu0  ;;  %v270_v5 = vpop.f32.mrf.mxu1  ;;  %4262 = vmatprep.mubr.msk.f32.mxu1 %vm5433_vm0, %v5432_v0 }
 0x119   :  { %4369 = vmatprep.mubr.msk.f32.mxu0 %vm5433_vm0, %v5432_v0  ;;  %v487_v62 = vmul.f32 %v5803_v6, %v312_v2  ;;  %v500_v7 = vmul.f32 %v442_v1, %v325_v3  ;;  %v206_v8 = vadd.f32 %v5832_v20, %v205_v4  ;;  %v271_v9 = vadd.f32 %v5832_v20, %v270_v5 }
 0x11a   :  { %v4163_v12 = vpop.f32.mrf.mxu0  ;;  %v4202_v13 = vpop.f32.mrf.mxu1  ;;  %v540_v21 = vld [vmem:[#allocation2 + $0x15] sm:$0xff] }
 0x11b   :  { %v796_v22 = vld [vmem:[#allocation2 + $0x16] sm:$0xff]  ;;  %516 = vst [vmem:[#allocation2 + $0x28] sm:$0xff] %v487_v62  ;;  %529 = vst [vmem:[#allocation2 + $0x90] sm:$0xff] %v500_v7  ;;  %v313_v25 = vmax.f32 %v206_v8, 0.0  ;;  %v326_v26 = vmax.f32 %v271_v9, 0.0  ;;  %4263 = vmatmul.mubr.f32.gmra.mxu1 %v540_v21  ;;  %v467_v12 = vpop.permute.xlu1 %466 }
 0x11c   :  { %4370 = vmatmul.mubr.f32.gmra.mxu0 %v796_v22  ;;  %v210_v27 = vpop.f32.mrf.mxu0  ;;  %v275_v28 = vpop.f32.mrf.mxu1  ;;  %4265 = vmatprep.mubr.msk.f32.mxu1 %vm5433_vm0, %v5432_v0 }
 0x11d   :  { %4372 = vmatprep.mubr.msk.f32.mxu0 %vm5433_vm0, %v5432_v0  ;;  %v488_v6 = vmul.f32 %v5808_v10, %v313_v25  ;;  %v501_v29 = vmul.f32 %v447_v24, %v326_v26  ;;  %v211_v30 = vadd.f32 %v5832_v20, %v210_v27  ;;  %v276_v31 = vadd.f32 %v5832_v20, %v275_v28 }
 0x11e   :  { %v4166_v32 = vpop.f32.mrf.mxu0  ;;  %v4205_v33 = vpop.f32.mrf.mxu1  ;;  %v541_v34 = vld [vmem:[#allocation2 + $0x1d] sm:$0xff] }
 0x11f   :  { %v797_v35 = vld [vmem:[#allocation2 + $0x1e] sm:$0xff]  ;;  %517 = vst [vmem:[#allocation2 + $0x30] sm:$0xff] %v488_v6  ;;  %530 = vst [vmem:[#allocation2 + $0x98] sm:$0xff] %v501_v29  ;;  %v314_v37 = vmax.f32 %v211_v30, 0.0  ;;  %v327_v38 = vmax.f32 %v276_v31, 0.0  ;;  %4266 = vmatmul.mubr.f32.gmra.mxu1 %v541_v34  ;;  %v472_v31 = vpop.permute.xlu0 %471 }
 0x120   :  { %4373 = vmatmul.mubr.f32.gmra.mxu0 %v797_v35  ;;  %v215_v39 = vpop.f32.mrf.mxu0  ;;  %v280_v0 = vpop.f32.mrf.mxu1  ;;  %4268 = vmatprep.mubr.msk.f32.mxu1 %vm5433_vm0, %v5859_v40 }
 0x121   :  { %4375 = vmatprep.mubr.msk.f32.mxu0 %vm5433_vm0, %v5859_v40  ;;  %v489_v10 = vmul.f32 %v5812_v11, %v314_v37  ;;  %v502_v41 = vmul.f32 %v452_v36, %v327_v38  ;;  %v216_v42 = vadd.f32 %v5832_v20, %v215_v39  ;;  %v281_v43 = vadd.f32 %v5832_v20, %v280_v0 }
 0x122   :  { %v4169_v44 = vpop.f32.mrf.mxu0  ;;  %v4208_v45 = vpop.f32.mrf.mxu1  ;;  %v542_v46 = vld [vmem:[#allocation2 + $0x25] sm:$0xff] }
 0x123   :  { %v798_v47 = vld [vmem:[#allocation2 + $0x26] sm:$0xff]  ;;  %518 = vst [vmem:[#allocation2 + $0x38] sm:$0xff] %v489_v10  ;;  %531 = vst [vmem:[#allocation2 + $0xa0] sm:$0xff] %v502_v41  ;;  %v315_v49 = vmax.f32 %v216_v42, 0.0  ;;  %v328_v50 = vmax.f32 %v281_v43, 0.0  ;;  %4269 = vmatmul.mubr.f32.gmra.mxu1 %v542_v46  ;;  %v477_v42 = vpop.permute.xlu1 %476 }
 0x124   :  { %4376 = vmatmul.mubr.f32.gmra.mxu0 %v798_v47  ;;  %v220_v51 = vpop.f32.mrf.mxu0  ;;  %v285_v52 = vpop.f32.mrf.mxu1  ;;  %4271 = vmatprep.mubr.msk.f32.mxu1 %vm5433_vm0, %v5859_v40 }
 0x125   :  { %4378 = vmatprep.mubr.msk.f32.mxu0 %vm5433_vm0, %v5859_v40  ;;  %v490_v11 = vmul.f32 %v5816_v14, %v315_v49  ;;  %v503_v53 = vmul.f32 %v457_v48, %v328_v50  ;;  %v221_v54 = vadd.f32 %v5832_v20, %v220_v51  ;;  %v286_v55 = vadd.f32 %v5832_v20, %v285_v52 }
 0x126   :  { %v4172_v56 = vpop.f32.mrf.mxu0  ;;  %v4211_v57 = vpop.f32.mrf.mxu1  ;;  %v543_v58 = vld [vmem:[#allocation2 + $0x2d] sm:$0xff] }
 0x127   :  { %v799_v59 = vld [vmem:[#allocation2 + $0x2e] sm:$0xff]  ;;  %519 = vst [vmem:[#allocation2 + $0x40] sm:$0xff] %v490_v11  ;;  %532 = vst [vmem:[#allocation2 + $0xa8] sm:$0xff] %v503_v53  ;;  %v316_v61 = vmax.f32 %v221_v54, 0.0  ;;  %v329_v63 = vmax.f32 %v286_v55, 0.0  ;;  %4272 = vmatmul.mubr.f32.gmra.mxu1 %v543_v58  ;;  %v482_v55 = vpop.permute.xlu0 %481 }
 0x128   :  { %4379 = vmatmul.mubr.f32.gmra.mxu0 %v799_v59  ;;  %v225_v1 = vpop.f32.mrf.mxu0  ;;  %v290_v2 = vpop.f32.mrf.mxu1  ;;  %4274 = vmatprep.mubr.msk.f32.mxu1 %vm5433_vm0, %v5859_v40 }
 0x129   :  { %4381 = vmatprep.mubr.msk.f32.mxu0 %vm5433_vm0, %v5859_v40  ;;  %v491_v14 = vmul.f32 %v5819_v15, %v316_v61  ;;  %v504_v3 = vmul.f32 %v462_v60, %v329_v63  ;;  %v226_v4 = vadd.f32 %v5832_v20, %v225_v1  ;;  %v291_v5 = vadd.f32 %v5832_v20, %v290_v2 }
 0x12a   :  { %v4175_v62 = vpop.f32.mrf.mxu0  ;;  %v4214_v7 = vpop.f32.mrf.mxu1  ;;  %v544_v8 = vld [vmem:[#allocation2 + $0x35] sm:$0xff] }
 0x12b   :  { %v800_v9 = vld [vmem:[#allocation2 + $0x36] sm:$0xff]  ;;  %520 = vst [vmem:[#allocation2 + $0x48] sm:$0xff] %v491_v14  ;;  %533 = vst [vmem:[#allocation2 + $0xb0] sm:$0xff] %v504_v3  ;;  %v317_v13 = vmax.f32 %v226_v4, 0.0  ;;  %v330_v21 = vmax.f32 %v291_v5, 0.0  ;;  %4275 = vmatmul.mubr.f32.gmra.mxu1 %v544_v8  ;;  %v809_v7 = vld [vmem:[#allocation2 + $0x7e] sm:$0xff] }
 0x12c   :  { %4382 = vmatmul.mubr.f32.gmra.mxu0 %v800_v9  ;;  %v230_v22 = vpop.f32.mrf.mxu0  ;;  %v295_v24 = vpop.f32.mrf.mxu1  ;;  %4277 = vmatprep.mubr.msk.f32.mxu1 %vm5433_vm0, %v5859_v40  ;;  %v553_v62 = vld [vmem:[#allocation2 + $0x7d] sm:$0xff]  ;;  %v554_v9 = vld [vmem:[#allocation2 + $0x85] sm:$0xff] }
 0x12d   :  { %4384 = vmatprep.mubr.msk.f32.mxu0 %vm5433_vm0, %v5859_v40  ;;  %v492_v15 = vmul.f32 %v5821_v16, %v317_v13  ;;  %v505_v25 = vmul.f32 %v467_v12, %v330_v21  ;;  %v231_v26 = vadd.f32 %v5832_v20, %v230_v22  ;;  %v296_v27 = vadd.f32 %v5832_v20, %v295_v24  ;;  %v810_v12 = vld [vmem:[#allocation2 + $0x86] sm:$0xff] }
 0x12e   :  { %v4178_v28 = vpop.f32.mrf.mxu0  ;;  %v4217_v6 = vpop.f32.mrf.mxu1  ;;  %v545_v29 = vld [vmem:[#allocation2 + $0x3d] sm:$0xff] }
 0x12f   :  { %v801_v30 = vld [vmem:[#allocation2 + $0x3e] sm:$0xff]  ;;  %521 = vst [vmem:[#allocation2 + $0x50] sm:$0xff] %v492_v15  ;;  %534 = vst [vmem:[#allocation2 + $0xb8] sm:$0xff] %v505_v25  ;;  %v318_v32 = vmax.f32 %v231_v26, 0.0  ;;  %v331_v33 = vmax.f32 %v296_v27, 0.0  ;;  %4278 = vmatmul.mubr.f32.gmra.mxu1 %v545_v29  ;;  %v555_v15 = vld [vmem:[#allocation2 + $0x8d] sm:$0xff] }
 0x130   :  { %4385 = vmatmul.mubr.f32.gmra.mxu0 %v801_v30  ;;  %v235_v34 = vpop.f32.mrf.mxu0  ;;  %v300_v35 = vpop.f32.mrf.mxu1  ;;  %4280 = vmatprep.mubr.msk.f32.mxu1 %vm5433_vm0, %v5859_v40  ;;  %v811_v25 = vld [vmem:[#allocation2 + $0x8e] sm:$0xff]  ;;  %v812_v27 = vld [vmem:[#allocation2 + $0x96] sm:$0xff]  ;;  %v813_v6 = vld [vmem:[#allocation2 + $0x9e] sm:$0xff] }
 0x131   :  { %4387 = vmatprep.mubr.msk.f32.mxu0 %vm5433_vm0, %v5859_v40  ;;  %v493_v16 = vmul.f32 %v5823_v17, %v318_v32  ;;  %v506_v36 = vmul.f32 %v472_v31, %v331_v33  ;;  %v236_v37 = vadd.f32 %v5832_v20, %v235_v34  ;;  %v301_v38 = vadd.f32 %v5832_v20, %v300_v35  ;;  %v556_v26 = vld [vmem:[#allocation2 + $0x95] sm:$0xff]  ;;  %v557_v28 = vld [vmem:[#allocation2 + $0x9d] sm:$0xff]  ;;  %v558_v29 = vld [vmem:[#allocation2 + $0xa5] sm:$0xff] }
 0x132   :  { %v4181_v39 = vpop.f32.mrf.mxu0  ;;  %v4220_v0 = vpop.f32.mrf.mxu1  ;;  %v546_v10 = vld [vmem:[#allocation2 + $0x45] sm:$0xff]  ;;  %v559_v31 = vld [vmem:[#allocation2 + $0xad] sm:$0xff] }
 0x133   :  { %v802_v41 = vld [vmem:[#allocation2 + $0x46] sm:$0xff]  ;;  %522 = vst [vmem:[#allocation2 + $0x58] sm:$0xff] %v493_v16  ;;  %535 = vst [vmem:[#allocation2 + $0xc0] sm:$0xff] %v506_v36  ;;  %v319_v43 = vmax.f32 %v236_v37, 0.0  ;;  %v332_v44 = vmax.f32 %v301_v38, 0.0  ;;  %4281 = vmatmul.mubr.f32.gmra.mxu1 %v546_v10  ;;  %v815_v32 = vld [vmem:[#allocation2 + $0xae] sm:$0xff] }
 0x134   :  { %4388 = vmatmul.mubr.f32.gmra.mxu0 %v802_v41  ;;  %v240_v45 = vpop.f32.mrf.mxu0  ;;  %v305_v46 = vpop.f32.mrf.mxu1  ;;  %4283 = vmatprep.mubr.msk.f32.mxu1 %vm5433_vm0, %v5859_v40  ;;  %v814_v30 = vld [vmem:[#allocation2 + $0xa6] sm:$0xff]  ;;  %v1408_v0 = vld [vmem:[#allocation2 + $0xf] sm:$0xff]  ;;  %v1755_v10 = vld [vmem:[#allocation7 + $0x270] sm:$0xff] }
 0x135   :  { %4390 = vmatprep.mubr.msk.f32.mxu0 %vm5433_vm0, %v5859_v40  ;;  %v494_v17 = vmul.f32 %v5825_v18, %v319_v43  ;;  %v507_v47 = vmul.f32 %v477_v42, %v332_v44  ;;  %v241_v48 = vadd.f32 %v5832_v20, %v240_v45  ;;  %v306_v49 = vadd.f32 %v5832_v20, %v305_v46  ;;  %v1101_v38 = vld [vmem:[#allocation2 + $0x7] sm:$0xff]  ;;  %v1409_v42 = vld [vmem:[#allocation2 + $0x17] sm:$0xff]  ;;  %v1410_v45 = vld [vmem:[#allocation2 + $0x1f] sm:$0xff] }
 0x136   :  { %v4184_v50 = vpop.f32.mrf.mxu0  ;;  %v547_v51 = vld [vmem:[#allocation2 + $0x4d] sm:$0xff]  ;;  %v4223_v11 = vpop.f32.mrf.mxu1  ;;  %v560_v33 = vld [vmem:[#allocation2 + $0xb5] sm:$0xff]  ;;  %v1756_v39 = vld [vmem:[#allocation7 + $0x278] sm:$0xff] }
 0x137   :  { %v803_v52 = vld [vmem:[#allocation2 + $0x4e] sm:$0xff]  ;;  %523 = vst [vmem:[#allocation2 + $0x60] sm:$0xff] %v494_v17  ;;  %536 = vst [vmem:[#allocation2 + $0xc8] sm:$0xff] %v507_v47  ;;  %v320_v53 = vmax.f32 %v241_v48, 0.0  ;;  %v333_v54 = vmax.f32 %v306_v49, 0.0  ;;  %4284 = vmatmul.mubr.f32.gmra.mxu1 %v547_v51  ;;  %v816_v34 = vld [vmem:[#allocation2 + $0xb6] sm:$0xff] }
 0x138   :  { %4391 = vmatmul.mubr.f32.gmra.mxu0 %v803_v52  ;;  %v245_v56 = vpop.f32.mrf.mxu0  ;;  %4286 = vmatprep.mubr.msk.f32.mxu1 %vm5433_vm0, %v5859_v40  ;;  %v2063_v41 = vld [vmem:[#allocation7 + $0x2f8] sm:$0xff]  ;;  %v1754_v43 = vld [vmem:[#allocation7 + $0x268] sm:$0xff]  ;;  %v2062_v44 = vld [vmem:[#allocation7 + $0x2f0] sm:$0xff] }
 0x139   :  { %4393 = vmatprep.mubr.msk.f32.mxu0 %vm5433_vm0, %v5859_v40  ;;  %v495_v18 = vmul.f32 %v5827_v19, %v320_v53  ;;  %v508_v57 = vmul.f32 %v482_v55, %v333_v54  ;;  %v246_v58 = vadd.f32 %v5832_v20, %v245_v56  ;;  %v1753_v46 = vld [vmem:[#allocation7 + $0x260] sm:$0xff]  ;;  %v2061_v17 = vld [vmem:[#allocation7 + $0x2e8] sm:$0xff]  ;;  %v1752_v48 = vld [vmem:[#allocation7 + $0x258] sm:$0xff] }
 0x13a   :  { %v4187_v59 = vpop.f32.mrf.mxu0  ;;  %v548_v60 = vld [vmem:[#allocation2 + $0x55] sm:$0xff]  ;;  %v561_v35 = vld [vmem:[#allocation2 + $0xbd] sm:$0xff]  ;;  %v1411_v47 = vld [vmem:[#allocation2 + $0x27] sm:$0xff] }
 0x13b   :  { %v804_v61 = vld [vmem:[#allocation2 + $0x56] sm:$0xff]  ;;  %524 = vst [vmem:[#allocation2 + $0x68] sm:$0xff] %v495_v18  ;;  %537 = vst [vmem:[#allocation2 + $0xd0] sm:$0xff] %v508_v57  ;;  %v321_v63 = vmax.f32 %v246_v58, 0.0  ;;  %4287 = vmatmul.mubr.f32.gmra.mxu1 %v548_v60  ;;  %v817_v16 = vld [vmem:[#allocation2 + $0xbe] sm:$0xff] }
 0x13c   :  { %4394 = vmatmul.mubr.f32.gmra.mxu0 %v804_v61  ;;  %4289 = vmatprep.mubr.msk.f32.mxu1 %vm5433_vm0, %v5859_v40  ;;  %v2060_v49 = vld [vmem:[#allocation7 + $0x2e0] sm:$0xff]  ;;  %v1751_v51 = vld [vmem:[#allocation7 + $0x250] sm:$0xff]  ;;  %v2059_v52 = vld [vmem:[#allocation7 + $0x2d8] sm:$0xff] }
 0x13d   :  { %4396 = vmatprep.mubr.msk.f32.mxu0 %vm5433_vm0, %v5859_v40  ;;  %v496_v1 = vmul.f32 %v5834_v23, %v321_v63  ;;  %v1412_v50 = vld [vmem:[#allocation2 + $0x2f] sm:$0xff]  ;;  %v1413_v11 = vld [vmem:[#allocation2 + $0x37] sm:$0xff]  ;;  %v1414_v55 = vld [vmem:[#allocation2 + $0x3f] sm:$0xff] }
 0x13e   :  { %v549_v19 = vld [vmem:[#allocation2 + $0x5d] sm:$0xff]  ;;  %v562_v36 = vld [vmem:[#allocation2 + $0xc5] sm:$0xff]  ;;  %v1750_v53 = vld [vmem:[#allocation7 + $0x248] sm:$0xff] }
 0x13f   :  { %v805_v2 = vld [vmem:[#allocation2 + $0x5e] sm:$0xff]  ;;  %525 = vst [vmem:[#allocation2 + $0x70] sm:$0xff] %v496_v1  ;;  %4290 = vmatmul.mubr.f32.gmra.mxu1 %v549_v19  ;;  %v818_v37 = vld [vmem:[#allocation2 + $0xc6] sm:$0xff]  ;;  %v2057_v18 = vld [vmem:[#allocation7 + $0x2c8] sm:$0xff] }
 0x140   :  { %4397 = vmatmul.mubr.f32.gmra.mxu0 %v805_v2  ;;  %4292 = vmatprep.mubr.msk.f32.mxu1 %vm5433_vm0, %v5859_v40  ;;  %v2058_v54 = vld [vmem:[#allocation7 + $0x2d0] sm:$0xff]  ;;  %v1749_v56 = vld [vmem:[#allocation7 + $0x240] sm:$0xff]  ;;  %v1748_v58 = vld [vmem:[#allocation7 + $0x238] sm:$0xff] }
 0x141   :  { %4399 = vmatprep.mubr.msk.f32.mxu0 %vm5433_vm0, %v5859_v40  ;;  %v1415_v57 = vld [vmem:[#allocation2 + $0x47] sm:$0xff]  ;;  %v1416_v60 = vld [vmem:[#allocation2 + $0x4f] sm:$0xff]  ;;  %v1747_v61 = vld [vmem:[#allocation7 + $0x230] sm:$0xff] }
 0x142   :  { %v550_v20 = vld [vmem:[#allocation2 + $0x65] sm:$0xff]  ;;  %v1417_v1 = vld [vmem:[#allocation2 + $0x57] sm:$0xff] }
 0x143   :  { %v806_v14 = vld [vmem:[#allocation2 + $0x66] sm:$0xff]  ;;  %4293 = vmatmul.mubr.f32.gmra.mxu1 %v550_v20  ;;  %v1746_v19 = vld [vmem:[#allocation7 + $0x228] sm:$0xff]  ;;  %v2054_v2 = vld [vmem:[#allocation7 + $0x2b0] sm:$0xff] }
 0x144   :  { %4400 = vmatmul.mubr.f32.gmra.mxu0 %v806_v14  ;;  %4295 = vmatprep.mubr.msk.f32.mxu1 %vm5433_vm0, %v5859_v40  ;;  %v2056_v59 = vld [vmem:[#allocation7 + $0x2c0] sm:$0xff]  ;;  %v2055_v63 = vld [vmem:[#allocation7 + $0x2b8] sm:$0xff] }
 0x145   :  { %4402 = vmatprep.mubr.msk.f32.mxu0 %vm5433_vm0, %v5859_v40  ;;  %v1418_v20 = vld [vmem:[#allocation2 + $0x5f] sm:$0xff]  ;;  %v1745_v14 = vld [vmem:[#allocation7 + $0x220] sm:$0xff] }
 0x146   :  { %v551_v23 = vld [vmem:[#allocation2 + $0x6d] sm:$0xff]  ;;  %v552_v4 = vld [vmem:[#allocation2 + $0x75] sm:$0xff] }
 0x147   :  { %v807_v3 = vld [vmem:[#allocation2 + $0x6e] sm:$0xff]  ;;  %4296 = vmatmul.mubr.f32.gmra.mxu1 %v551_v23  ;;  %v808_v5 = vld [vmem:[#allocation2 + $0x76] sm:$0xff] }
 0x148   :  { %4403 = vmatmul.mubr.f32.gmra.mxu0 %v807_v3  ;;  %4298 = vmatprep.mubr.msk.f32.mxu1 %vm5433_vm0, %v5859_v40  ;;  %v2053_v23 = vld [vmem:[#allocation7 + $0x2a8] sm:$0xff]  ;;  %v1419_v3 = vld [vmem:[#allocation2 + $0x67] sm:$0xff] }
 0x149   :  { %4405 = vmatprep.mubr.msk.f32.mxu0 %vm5433_vm0, %v5859_v40 }
 0x14b   :  { %4299 = vmatmul.mubr.f32.gmra.mxu1 %v552_v4  ;;  %v645_v8 = vpop.f32.mrf.mxu1  ;;  %v1744_v4 = vld [vmem:[#allocation7 + $0x218] sm:$0xff] }
 0x14c   :  { %4406 = vmatmul.mubr.f32.gmra.mxu0 %v808_v5  ;;  %4301 = vmatprep.mubr.msk.f32.mxu1 %vm5433_vm0, %v5859_v40  ;;  %v2052_v5 = vld [vmem:[#allocation7 + $0x2a0] sm:$0xff] }
 0x14d   :  { %4408 = vmatprep.mubr.msk.f32.mxu0 %vm5433_vm0, %v5859_v40  ;;  %v4258_v13 = vpop.f32.mrf.mxu1 }
 0x14e   :  { %v2050_v13 = vld [vmem:[#allocation7 + $0x290] sm:$0xff] }
 0x14f   :  { %4302 = vmatmul.mubr.f32.gmra.mxu1 %v553_v62  ;;  %v1420_v62 = vld [vmem:[#allocation2 + $0x6f] sm:$0xff] }
 0x150   :  { %4409 = vmatmul.mubr.f32.gmra.mxu0 %v809_v7  ;;  %4304 = vmatprep.mubr.msk.f32.mxu1 %vm5433_vm0, %v5859_v40  ;;  %v902_v21 = vpop.f32.mrf.mxu0  ;;  %v1743_v7 = vld [vmem:[#allocation7 + $0x210] sm:$0xff] }
 0x151   :  { %4411 = vmatprep.mubr.msk.f32.mxu0 %vm5433_vm0, %v5859_v40  ;;  %v5938_v22 = vadd.f32 %v902_v21, %v645_v8  ;;  %v2051_v8 = vld [vmem:[#allocation7 + $0x298] sm:$0xff] }
 0x152   :  { %v4365_v24 = vpop.f32.mrf.mxu0  ;;  %v1422_v21 = vld [vmem:[#allocation2 + $0x7f] sm:$0xff] }
 0x153   :  { %4305 = vmatmul.mubr.f32.gmra.mxu1 %v554_v9  ;;  %v1421_v9 = vld [vmem:[#allocation2 + $0x77] sm:$0xff]  ;;  %v1741_v24 = vld [vmem:[#allocation7 + $0x200] sm:$0xff] }
 0x154   :  { %4412 = vmatmul.mubr.f32.gmra.mxu0 %v810_v12  ;;  %4307 = vmatprep.mubr.msk.f32.mxu1 %vm5433_vm0, %v5859_v40  ;;  %v1742_v12 = vld [vmem:[#allocation7 + $0x208] sm:$0xff] }
 0x155   :  { %4414 = vmatprep.mubr.msk.f32.mxu0 %vm5433_vm0, %v5859_v40 }
 0x157   :  { %4308 = vmatmul.mubr.f32.gmra.mxu1 %v555_v15  ;;  %v2049_v15 = vld [vmem:[#allocation7 + $0x288] sm:$0xff] }
 0x158   :  { %4415 = vmatmul.mubr.f32.gmra.mxu0 %v811_v25  ;;  %4310 = vmatprep.mubr.msk.f32.mxu1 %vm5433_vm0, %v5859_v40  ;;  %v1423_v25 = vld [vmem:[#allocation2 + $0x87] sm:$0xff] }
 0x159   :  { %4417 = vmatprep.mubr.msk.f32.mxu0 %vm5433_vm0, %v5859_v40 }
 0x15b   :  { %4311 = vmatmul.mubr.f32.gmra.mxu1 %v556_v26  ;;  %v2048_v26 = vld [vmem:[#allocation7 + $0x280] sm:$0xff] }
 0x15c   :  { %4418 = vmatmul.mubr.f32.gmra.mxu0 %v812_v27  ;;  %4313 = vmatprep.mubr.msk.f32.mxu1 %vm5433_vm0, %v5859_v40  ;;  %v1424_v27 = vld [vmem:[#allocation2 + $0x8f] sm:$0xff] }
 0x15d   :  { %4420 = vmatprep.mubr.msk.f32.mxu0 %vm5433_vm0, %v5859_v40 }
 0x15f   :  { %4314 = vmatmul.mubr.f32.gmra.mxu1 %v557_v28  ;;  %v1425_v28 = vld [vmem:[#allocation2 + $0x97] sm:$0xff] }
 0x160   :  { %4421 = vmatmul.mubr.f32.gmra.mxu0 %v813_v6  ;;  %4316 = vmatprep.mubr.msk.f32.mxu1 %vm5433_vm0, %v5859_v40  ;;  %v1426_v6 = vld [vmem:[#allocation2 + $0x9f] sm:$0xff] }
 0x161   :  { %4423 = vmatprep.mubr.msk.f32.mxu0 %vm5433_vm0, %v5859_v40 }
 0x163   :  { %4317 = vmatmul.mubr.f32.gmra.mxu1 %v558_v29  ;;  %v1427_v29 = vld [vmem:[#allocation2 + $0xa7] sm:$0xff] }
 0x164   :  { %4424 = vmatmul.mubr.f32.gmra.mxu0 %v814_v30  ;;  %4319 = vmatprep.mubr.msk.f32.mxu1 %vm5433_vm0, %v5859_v40  ;;  %v1428_v30 = vld [vmem:[#allocation2 + $0xaf] sm:$0xff] }
 0x165   :  { %4426 = vmatprep.mubr.msk.f32.mxu0 %vm5433_vm0, %v5859_v40 }
 0x167   :  { %4320 = vmatmul.mubr.f32.gmra.mxu1 %v559_v31  ;;  %v1429_v31 = vld [vmem:[#allocation2 + $0xb7] sm:$0xff] }
 0x168   :  { %4427 = vmatmul.mubr.f32.gmra.mxu0 %v815_v32  ;;  %4322 = vmatprep.mubr.msk.f32.mxu1 %vm5433_vm0, %v5859_v40  ;;  %v1430_v32 = vld [vmem:[#allocation2 + $0xbf] sm:$0xff] }
 0x169   :  { %4429 = vmatprep.mubr.msk.f32.mxu0 %vm5433_vm0, %v5859_v40 }
 0x16b   :  { %4323 = vmatmul.mubr.f32.gmra.mxu1 %v560_v33  ;;  %v1431_v33 = vld [vmem:[#allocation2 + $0xc7] sm:$0xff] }
 0x16c   :  { %4430 = vmatmul.mubr.f32.gmra.mxu0 %v816_v34  ;;  %4325 = vmatprep.mubr.msk.f32.mxu1 %vm5433_vm0, %v5859_v40  ;;  %v1432_v34 = vld [vmem:[#allocation2 + $0xcf] sm:$0xff] }
 0x16d   :  { %4432 = vmatprep.mubr.msk.f32.mxu0 %vm5433_vm0, %v5859_v40 }
 0x16f   :  { %4326 = vmatmul.mubr.f32.gmra.mxu1 %v561_v35 }
 0x170   :  { %4433 = vmatmul.mubr.f32.gmra.mxu0 %v817_v16  ;;  %4328 = vmatprep.mubr.msk.f32.mxu1 %vm5433_vm0, %v5859_v40 }
 0x171   :  { %4435 = vmatprep.mubr.msk.f32.mxu0 %vm5433_vm0, %v5859_v40 }
 0x173   :  { %4329 = vmatmul.mubr.f32.gmra.mxu1 %v562_v36 }
 0x174   :  { %4436 = vmatmul.mubr.f32.gmra.mxu0 %v818_v37  ;;  %4470 = vmatprep.mubr.msk.f32.mxu1 %vm5433_vm0, %v5859_v40 }
 0x175   :  { %4577 = vmatprep.mubr.msk.f32.mxu0 %vm5433_vm0, %v5859_v40 }
 0x177   :  { %4471 = vmatmul.mubr.f32.vlgmr.msra.gmra.mxu1 %v1101_v38 }
 0x178   :  { %4578 = vmatmul.mubr.f32.vlgmr.msra.gmra.mxu0 %v1408_v0  ;;  %4653 = vmatpush3.msra.mxu1 %v1756_v39  ;;  %v2370_v39 = vld [vmem:[#allocation7 + $0x378] sm:$0xff] }
 0x179   :  { %4473 = vmatprep.mubr.msk.f32.mxu1 %vm5433_vm0, %v5859_v40  ;;  %4580 = vmatprep.mubr.msk.f32.mxu0 %vm5433_vm0, %v5859_v40 }
 0x17a   :  { %4654 = vmatprep.subr.mxu1 %v5859_v40  ;;  %4760 = vmatpush3.msra.mxu0 %v2063_v41 }
 0x17b   :  { %4655 = vmatpush3.msra.mxu1 %v1755_v10  ;;  %4761 = vmatprep.subr.mxu0 %v5859_v40  ;;  %v2022_v10 = vld [vmem:[#allocation2 + $0x11] sm:$0xff] }
 0x17c   :  { %4474 = vmatmul.mubr.f32.gmra.mxu1 %v1408_v0  ;;  %4581 = vmatmul.mubr.f32.gmra.mxu0 %v1409_v42  ;;  %v1715_v0 = vld [vmem:[#allocation2 + $0x10] sm:$0xff] }
 0x17d   :  { %4476 = vmatprep.mubr.msk.f32.mxu1 %vm5433_vm0, %v5859_v40  ;;  %4583 = vmatprep.mubr.msk.f32.mxu0 %vm5433_vm0, %v5859_v40 }
 0x17e   :  { %4656 = vmatprep.subr.mxu1 %v5859_v40  ;;  %4762 = vmatpush3.msra.mxu0 %v2062_v44  ;;  %v2677_v44 = vld [vmem:[#allocation7 + $0x3f8] sm:$0xff] }
 0x17f   :  { %4657 = vmatpush3.msra.mxu1 %v1754_v43  ;;  %4763 = vmatprep.subr.mxu0 %v5859_v40  ;;  %v2369_v43 = vld [vmem:[#allocation7 + $0x370] sm:$0xff] }
 0x180   :  { %4477 = vmatmul.mubr.f32.gmra.mxu1 %v1409_v42  ;;  %4584 = vmatmul.mubr.f32.gmra.mxu0 %v1410_v45 }
 0x181   :  { %4479 = vmatprep.mubr.msk.f32.mxu1 %vm5433_vm0, %v5859_v40  ;;  %4586 = vmatprep.mubr.msk.f32.mxu0 %vm5433_vm0, %v5859_v40 }
 0x182   :  { %4658 = vmatprep.subr.mxu1 %v5859_v40  ;;  %4764 = vmatpush3.msra.mxu0 %v2061_v17 }
 0x183   :  { %4659 = vmatpush3.msra.mxu1 %v1753_v46  ;;  %4765 = vmatprep.subr.mxu0 %v5859_v40 }
 0x184   :  { %4480 = vmatmul.mubr.f32.gmra.mxu1 %v1410_v45  ;;  %4587 = vmatmul.mubr.f32.gmra.mxu0 %v1411_v47 }
 0x185   :  { %4482 = vmatprep.mubr.msk.f32.mxu1 %vm5433_vm0, %v5859_v40  ;;  %4589 = vmatprep.mubr.msk.f32.mxu0 %vm5433_vm0, %v5859_v40 }
 0x186   :  { %4660 = vmatprep.subr.mxu1 %v5859_v40  ;;  %4766 = vmatpush3.msra.mxu0 %v2060_v49 }
 0x187   :  { %4661 = vmatpush3.msra.mxu1 %v1752_v48  ;;  %4767 = vmatprep.subr.mxu0 %v5859_v40  ;;  %v6113_v48 = vld [vmem:[#allocation2 + $0x19] sm:$0xff] }
 0x188   :  { %4483 = vmatmul.mubr.f32.gmra.mxu1 %v1411_v47  ;;  %4590 = vmatmul.mubr.f32.gmra.mxu0 %v1412_v50  ;;  %v1716_v47 = vld [vmem:[#allocation2 + $0x18] sm:$0xff] }
 0x189   :  { %4485 = vmatprep.mubr.msk.f32.mxu1 %vm5433_vm0, %v5859_v40  ;;  %4592 = vmatprep.mubr.msk.f32.mxu0 %vm5433_vm0, %v5859_v40 }
 0x18a   :  { %4662 = vmatprep.subr.mxu1 %v5859_v40  ;;  %4768 = vmatpush3.msra.mxu0 %v2059_v52  ;;  %v2676_v52 = vld [vmem:[#allocation7 + $0x3f0] sm:$0xff] }
 0x18b   :  { %4663 = vmatpush3.msra.mxu1 %v1751_v51  ;;  %4769 = vmatprep.subr.mxu0 %v5859_v40  ;;  %v2368_v51 = vld [vmem:[#allocation7 + $0x368] sm:$0xff] }
 0x18c   :  { %4486 = vmatmul.mubr.f32.gmra.mxu1 %v1412_v50  ;;  %4593 = vmatmul.mubr.f32.gmra.mxu0 %v1413_v11 }
 0x18d   :  { %4488 = vmatprep.mubr.msk.f32.mxu1 %vm5433_vm0, %v5859_v40  ;;  %4595 = vmatprep.mubr.msk.f32.mxu0 %vm5433_vm0, %v5859_v40 }
 0x18e   :  { %4664 = vmatprep.subr.mxu1 %v5859_v40  ;;  %4770 = vmatpush3.msra.mxu0 %v2058_v54 }
 0x18f   :  { %4665 = vmatpush3.msra.mxu1 %v1750_v53  ;;  %4771 = vmatprep.subr.mxu0 %v5859_v40 }
 0x190   :  { %4489 = vmatmul.mubr.f32.gmra.mxu1 %v1413_v11  ;;  %4596 = vmatmul.mubr.f32.gmra.mxu0 %v1414_v55 }
 0x191   :  { %4491 = vmatprep.mubr.msk.f32.mxu1 %vm5433_vm0, %v5859_v40  ;;  %4598 = vmatprep.mubr.msk.f32.mxu0 %vm5433_vm0, %v5859_v40 }
 0x192   :  { %4666 = vmatprep.subr.mxu1 %v5859_v40  ;;  %4772 = vmatpush3.msra.mxu0 %v2057_v18 }
 0x193   :  { %4667 = vmatpush3.msra.mxu1 %v1749_v56  ;;  %4773 = vmatprep.subr.mxu0 %v5859_v40  ;;  %v6124_v56 = vld [vmem:[#allocation2 + $0x21] sm:$0xff] }
 0x194   :  { %4492 = vmatmul.mubr.f32.gmra.mxu1 %v1414_v55  ;;  %4599 = vmatmul.mubr.f32.gmra.mxu0 %v1415_v57  ;;  %v1717_v55 = vld [vmem:[#allocation2 + $0x20] sm:$0xff] }
 0x195   :  { %4494 = vmatprep.mubr.msk.f32.mxu1 %vm5433_vm0, %v5859_v40  ;;  %4601 = vmatprep.mubr.msk.f32.mxu0 %vm5433_vm0, %v5859_v40 }
 0x196   :  { %4668 = vmatprep.subr.mxu1 %v5859_v40  ;;  %4774 = vmatpush3.msra.mxu0 %v2056_v59  ;;  %v2675_v59 = vld [vmem:[#allocation7 + $0x3e8] sm:$0xff] }
 0x197   :  { %4669 = vmatpush3.msra.mxu1 %v1748_v58  ;;  %4775 = vmatprep.subr.mxu0 %v5859_v40  ;;  %v2367_v58 = vld [vmem:[#allocation7 + $0x360] sm:$0xff] }
 0x198   :  { %4495 = vmatmul.mubr.f32.gmra.mxu1 %v1415_v57  ;;  %4602 = vmatmul.mubr.f32.gmra.mxu0 %v1416_v60 }
 0x199   :  { %4497 = vmatprep.mubr.msk.f32.mxu1 %vm5433_vm0, %v5859_v40  ;;  %4604 = vmatprep.mubr.msk.f32.mxu0 %vm5433_vm0, %v5859_v40 }
 0x19a   :  { %4670 = vmatprep.subr.mxu1 %v5859_v40  ;;  %4776 = vmatpush3.msra.mxu0 %v2055_v63 }
 0x19b   :  { %4671 = vmatpush3.msra.mxu1 %v1747_v61  ;;  %4777 = vmatprep.subr.mxu0 %v5859_v40 }
 0x19c   :  { %4498 = vmatmul.mubr.f32.gmra.mxu1 %v1416_v60  ;;  %4605 = vmatmul.mubr.f32.gmra.mxu0 %v1417_v1 }
 0x19d   :  { %4500 = vmatprep.mubr.msk.f32.mxu1 %vm5433_vm0, %v5859_v40  ;;  %4607 = vmatprep.mubr.msk.f32.mxu0 %vm5433_vm0, %v5859_v40 }
 0x19e   :  { %4672 = vmatprep.subr.mxu1 %v5859_v40  ;;  %4778 = vmatpush3.msra.mxu0 %v2054_v2 }
 0x19f   :  { %4673 = vmatpush3.msra.mxu1 %v1746_v19  ;;  %4779 = vmatprep.subr.mxu0 %v5859_v40  ;;  %v6135_v19 = vld [vmem:[#allocation2 + $0x29] sm:$0xff] }
 0x1a0   :  { %4501 = vmatmul.mubr.f32.gmra.mxu1 %v1417_v1  ;;  %4608 = vmatmul.mubr.f32.gmra.mxu0 %v1418_v20  ;;  %v1718_v1 = vld [vmem:[#allocation2 + $0x28] sm:$0xff] }
 0x1a1   :  { %4503 = vmatprep.mubr.msk.f32.mxu1 %vm5433_vm0, %v5859_v40  ;;  %4610 = vmatprep.mubr.msk.f32.mxu0 %vm5433_vm0, %v5859_v40 }
 0x1a2   :  { %4674 = vmatprep.subr.mxu1 %v5859_v40  ;;  %4780 = vmatpush3.msra.mxu0 %v2053_v23  ;;  %v2674_v23 = vld [vmem:[#allocation7 + $0x3e0] sm:$0xff] }
 0x1a3   :  { %4675 = vmatpush3.msra.mxu1 %v1745_v14  ;;  %4781 = vmatprep.subr.mxu0 %v5859_v40  ;;  %v2366_v14 = vld [vmem:[#allocation7 + $0x358] sm:$0xff] }
 0x1a4   :  { %4504 = vmatmul.mubr.f32.gmra.mxu1 %v1418_v20  ;;  %4611 = vmatmul.mubr.f32.gmra.mxu0 %v1419_v3 }
 0x1a5   :  { %4506 = vmatprep.mubr.msk.f32.mxu1 %vm5433_vm0, %v5859_v40  ;;  %4613 = vmatprep.mubr.msk.f32.mxu0 %vm5433_vm0, %v5859_v40 }
 0x1a6   :  { %4676 = vmatprep.subr.mxu1 %v5859_v40  ;;  %4782 = vmatpush3.msra.mxu0 %v2052_v5 }
 0x1a7   :  { %4677 = vmatpush3.msra.mxu1 %v1744_v4  ;;  %4783 = vmatprep.subr.mxu0 %v5859_v40 }
 0x1a8   :  { %4507 = vmatmul.mubr.f32.gmra.mxu1 %v1419_v3  ;;  %4614 = vmatmul.mubr.f32.gmra.mxu0 %v1420_v62 }
 0x1a9   :  { %4509 = vmatprep.mubr.msk.f32.mxu1 %vm5433_vm0, %v5859_v40  ;;  %4616 = vmatprep.mubr.msk.f32.mxu0 %vm5433_vm0, %v5859_v40 }
 0x1aa   :  { %4678 = vmatprep.subr.mxu1 %v5859_v40  ;;  %4784 = vmatpush3.msra.mxu0 %v2051_v8  ;;  %v6148_v8 = vld [vmem:[#allocation2 + $0x31] sm:$0xff] }
 0x1ab   :  { %4679 = vmatpush3.msra.mxu1 %v1743_v7  ;;  %4785 = vmatprep.subr.mxu0 %v5859_v40  ;;  %v1719_v7 = vld [vmem:[#allocation2 + $0x30] sm:$0xff] }
 0x1ac   :  { %4510 = vmatmul.mubr.f32.gmra.mxu1 %v1420_v62  ;;  %4617 = vmatmul.mubr.f32.gmra.mxu0 %v1421_v9  ;;  %v6145_v62 = vld [vmem:[#allocation2] sm:$0xff] }
 0x1ad   :  { %4512 = vmatprep.mubr.msk.f32.mxu1 %vm5433_vm0, %v5859_v40  ;;  %4619 = vmatprep.mubr.msk.f32.mxu0 %vm5433_vm0, %v5859_v40 }
 0x1ae   :  { %4680 = vmatprep.subr.mxu1 %v5859_v40  ;;  %4786 = vmatpush3.msra.mxu0 %v2050_v13  ;;  %v2365_v13 = vld [vmem:[#allocation7 + $0x350] sm:$0xff] }
 0x1af   :  { %4681 = vmatpush3.msra.mxu1 %v1742_v12  ;;  %4787 = vmatprep.subr.mxu0 %v5859_v40 }
 0x1b0   :  { %4513 = vmatmul.mubr.f32.gmra.mxu1 %v1421_v9  ;;  %4620 = vmatmul.mubr.f32.gmra.mxu0 %v1422_v21 }
 0x1b1   :  { %4515 = vmatprep.mubr.msk.f32.mxu1 %vm5433_vm0, %v5859_v40  ;;  %4622 = vmatprep.mubr.msk.f32.mxu0 %vm5433_vm0, %v5859_v40 }
 0x1b2   :  { %4682 = vmatprep.subr.mxu1 %v5859_v40  ;;  %4788 = vmatpush3.msra.mxu0 %v2049_v15 }
 0x1b3   :  { %4683 = vmatpush3.msra.mxu1 %v1741_v24  ;;  %4789 = vmatprep.subr.mxu0 %v5859_v40 }
 0x1b4   :  { %4516 = vmatmul.mubr.f32.gmra.mxu1 %v1422_v21  ;;  %4623 = vmatmul.mubr.f32.gmra.mxu0 %v1423_v25  ;;  %v2673_v21 = vld [vmem:[#allocation7 + $0x3d8] sm:$0xff] }
 0x1b5   :  { %4518 = vmatprep.mubr.msk.f32.mxu1 %vm5433_vm0, %v5859_v40  ;;  %4625 = vmatprep.mubr.msk.f32.mxu0 %vm5433_vm0, %v5859_v40 }
 0x1b6   :  { %4866 = vmatprep.subr.mxu1 %v5859_v40  ;;  %4790 = vmatpush3.msra.mxu0 %v2048_v26  ;;  %v6159_v26 = vld [vmem:[#allocation2 + $0x39] sm:$0xff] }
 0x1b7   :  { %4973 = vmatprep.subr.mxu0 %v5859_v40 }
 0x1b8   :  { %4519 = vmatmul.mubr.f32.gmra.mxu1 %v1423_v25  ;;  %4626 = vmatmul.mubr.f32.gmra.mxu0 %v1424_v27  ;;  %v1720_v25 = vld [vmem:[#allocation2 + $0x38] sm:$0xff] }
 0x1b9   :  { %4521 = vmatprep.mubr.msk.f32.mxu1 %vm5433_vm0, %v5859_v40  ;;  %4628 = vmatprep.mubr.msk.f32.mxu0 %vm5433_vm0, %v5859_v40 }
 0x1bc   :  { %4522 = vmatmul.mubr.f32.gmra.mxu1 %v1424_v27  ;;  %4629 = vmatmul.mubr.f32.gmra.mxu0 %v1425_v28 }
 0x1bd   :  { %4524 = vmatprep.mubr.msk.f32.mxu1 %vm5433_vm0, %v5859_v40  ;;  %4631 = vmatprep.mubr.msk.f32.mxu0 %vm5433_vm0, %v5859_v40 }
 0x1c0   :  { %4525 = vmatmul.mubr.f32.gmra.mxu1 %v1425_v28  ;;  %4632 = vmatmul.mubr.f32.gmra.mxu0 %v1426_v6 }
 0x1c1   :  { %4527 = vmatprep.mubr.msk.f32.mxu1 %vm5433_vm0, %v5859_v40  ;;  %4634 = vmatprep.mubr.msk.f32.mxu0 %vm5433_vm0, %v5859_v40 }
 0x1c4   :  { %4528 = vmatmul.mubr.f32.gmra.mxu1 %v1426_v6  ;;  %4635 = vmatmul.mubr.f32.gmra.mxu0 %v1427_v29  ;;  %v2364_v6 = vld [vmem:[#allocation7 + $0x348] sm:$0xff] }
 0x1c5   :  { %4530 = vmatprep.mubr.msk.f32.mxu1 %vm5433_vm0, %v5859_v40  ;;  %4637 = vmatprep.mubr.msk.f32.mxu0 %vm5433_vm0, %v5859_v40 }
 0x1c8   :  { %4531 = vmatmul.mubr.f32.gmra.mxu1 %v1427_v29  ;;  %4638 = vmatmul.mubr.f32.gmra.mxu0 %v1428_v30  ;;  %v2672_v29 = vld [vmem:[#allocation7 + $0x3d0] sm:$0xff] }
 0x1c9   :  { %4533 = vmatprep.mubr.msk.f32.mxu1 %vm5433_vm0, %v5859_v40  ;;  %4640 = vmatprep.mubr.msk.f32.mxu0 %vm5433_vm0, %v5859_v40 }
 0x1cc   :  { %4534 = vmatmul.mubr.f32.gmra.mxu1 %v1428_v30  ;;  %4641 = vmatmul.mubr.f32.gmra.mxu0 %v1429_v31 }
 0x1cd   :  { %4536 = vmatprep.mubr.msk.f32.mxu1 %vm5433_vm0, %v5859_v40  ;;  %4643 = vmatprep.mubr.msk.f32.mxu0 %vm5433_vm0, %v5859_v40 }
 0x1d0   :  { %4537 = vmatmul.mubr.f32.gmra.mxu1 %v1429_v31  ;;  %4644 = vmatmul.mubr.f32.gmra.mxu0 %v1430_v32 }
 0x1d1   :  { %4539 = vmatprep.mubr.msk.f32.mxu1 %vm5433_vm0, %v5859_v40  ;;  %4646 = vmatprep.mubr.msk.f32.mxu0 %vm5433_vm0, %v5859_v40 }
 0x1d4   :  { %4540 = vmatmul.mubr.f32.gmra.mxu1 %v1430_v32  ;;  %4647 = vmatmul.mubr.f32.gmra.mxu0 %v1431_v33 }
 0x1d5   :  { %4542 = vmatprep.mubr.msk.f32.mxu1 %vm5433_vm0, %v5859_v40  ;;  %4649 = vmatprep.mubr.msk.f32.mxu0 %vm5433_vm0, %v5859_v40 }
 0x1d7   :  { %v650_v35 = vpop.f32.mrf.mxu1 }
 0x1d8   :  { %v907_v16 = vpop.f32.mrf.mxu0  ;;  %4543 = vmatmul.mubr.f32.gmra.mxu1 %v1431_v33  ;;  %4650 = vmatmul.mubr.f32.gmra.mxu0 %v1432_v34  ;;  %v1721_v33 = vld [vmem:[#allocation2 + $0x40] sm:$0xff] }
 0x1d9   :  { %v6100_v36 = vadd.f32 %v907_v16, %v650_v35  ;;  %4684 = vmatprep.mubr.msk.f32.mxu1 %vm5433_vm0, %v5859_v40  ;;  %4791 = vmatprep.mubr.msk.f32.mxu0 %vm5433_vm0, %v5859_v40  ;;  %v4261_v37 = vpop.f32.mrf.mxu1  ;;  %v6170_v34 = vld [vmem:[#allocation2 + $0x41] sm:$0xff] }
 0x1da   :  { %v4368_v38 = vpop.f32.mrf.mxu0  ;;  %v2363_v37 = vld [vmem:[#allocation7 + $0x340] sm:$0xff] }
 0x1db   :  { %v655_v41 = vpop.f32.mrf.mxu1  ;;  %v2671_v38 = vld [vmem:[#allocation7 + $0x3c8] sm:$0xff] }
 0x1dc   :  { %v912_v42 = vpop.f32.mrf.mxu0  ;;  %4685 = vmatmul.mubr.f32.vlgmr.msra.gmra.mxu1 %v1715_v0  ;;  %4792 = vmatmul.mubr.f32.vlgmr.msra.gmra.mxu0 %v2022_v10 }
 0x1dd   :  { %v6106_v45 = vadd.f32 %v912_v42, %v655_v41  ;;  %4867 = vmatpush3.msra.mxu1 %v2370_v39  ;;  %4687 = vmatprep.mubr.msk.f32.mxu1 %vm5433_vm0, %v5859_v40  ;;  %v4264_v46 = vpop.f32.mrf.mxu1  ;;  %v1722_v41 = vld [vmem:[#allocation2 + $0x48] sm:$0xff] }
 0x1de   :  { %v4371_v17 = vpop.f32.mrf.mxu0  ;;  %4794 = vmatprep.mubr.msk.f32.mxu0 %vm5433_vm0, %v5859_v40  ;;  %4868 = vmatprep.subr.mxu1 %v5859_v40  ;;  %v6181_v42 = vld [vmem:[#allocation2 + $0x49] sm:$0xff]  ;;  %v2362_v46 = vld [vmem:[#allocation7 + $0x338] sm:$0xff] }
 0x1df   :  { %4869 = vmatpush3.msra.mxu1 %v2369_v43  ;;  %4974 = vmatpush3.msra.mxu0 %v2677_v44  ;;  %v660_v49 = vpop.f32.mrf.mxu1  ;;  %v2670_v17 = vld [vmem:[#allocation7 + $0x3c0] sm:$0xff] }
 0x1e0   :  { %v917_v50 = vpop.f32.mrf.mxu0  ;;  %4688 = vmatmul.mubr.f32.gmra.mxu1 %v1716_v47  ;;  %4795 = vmatmul.mubr.f32.gmra.mxu0 %v6113_v48 }
 0x1e1   :  { %v6116_v11 = vadd.f32 %v917_v50, %v660_v49  ;;  %4690 = vmatprep.mubr.msk.f32.mxu1 %vm5433_vm0, %v5859_v40  ;;  %4797 = vmatprep.mubr.msk.f32.mxu0 %vm5433_vm0, %v5859_v40  ;;  %v4267_v53 = vpop.f32.mrf.mxu1 }
 0x1e2   :  { %v4374_v54 = vpop.f32.mrf.mxu0  ;;  %4870 = vmatprep.subr.mxu1 %v5859_v40  ;;  %4975 = vmatprep.subr.mxu0 %v5859_v40 }
 0x1e3   :  { %4871 = vmatpush3.msra.mxu1 %v2368_v51  ;;  %4976 = vmatpush3.msra.mxu0 %v2676_v52  ;;  %v665_v18 = vpop.f32.mrf.mxu1  ;;  %v1723_v51 = vld [vmem:[#allocation2 + $0x50] sm:$0xff] }
 0x1e4   :  { %v922_v57 = vpop.f32.mrf.mxu0  ;;  %4691 = vmatmul.mubr.f32.gmra.mxu1 %v1717_v55  ;;  %4798 = vmatmul.mubr.f32.gmra.mxu0 %v6124_v56  ;;  %v6192_v52 = vld [vmem:[#allocation2 + $0x51] sm:$0xff] }
 0x1e5   :  { %v6127_v60 = vadd.f32 %v922_v57, %v665_v18  ;;  %4693 = vmatprep.mubr.msk.f32.mxu1 %vm5433_vm0, %v5859_v40  ;;  %4800 = vmatprep.mubr.msk.f32.mxu0 %vm5433_vm0, %v5859_v40  ;;  %v4270_v61 = vpop.f32.mrf.mxu1  ;;  %v2361_v55 = vld [vmem:[#allocation7 + $0x330] sm:$0xff]  ;;  %v2669_v18 = vld [vmem:[#allocation7 + $0x3b8] sm:$0xff] }
 0x1e6   :  { %v4377_v63 = vpop.f32.mrf.mxu0  ;;  %4872 = vmatprep.subr.mxu1 %v5859_v40  ;;  %4977 = vmatprep.subr.mxu0 %v5859_v40  ;;  %v1724_v61 = vld [vmem:[#allocation2 + $0x58] sm:$0xff] }
 0x1e7   :  { %4873 = vmatpush3.msra.mxu1 %v2367_v58  ;;  %4978 = vmatpush3.msra.mxu0 %v2675_v59  ;;  %v670_v2 = vpop.f32.mrf.mxu1  ;;  %v6203_v63 = vld [vmem:[#allocation2 + $0x59] sm:$0xff] }
 0x1e8   :  { %v927_v20 = vpop.f32.mrf.mxu0  ;;  %4694 = vmatmul.mubr.f32.gmra.mxu1 %v1718_v1  ;;  %4801 = vmatmul.mubr.f32.gmra.mxu0 %v6135_v19 }
 0x1e9   :  { %v6138_v3 = vadd.f32 %v927_v20, %v670_v2  ;;  %4696 = vmatprep.mubr.msk.f32.mxu1 %vm5433_vm0, %v5859_v40  ;;  %4803 = vmatprep.mubr.msk.f32.mxu0 %vm5433_vm0, %v5859_v40  ;;  %v4273_v4 = vpop.f32.mrf.mxu1  ;;  %v2360_v20 = vld [vmem:[#allocation7 + $0x328] sm:$0xff] }
 0x1ea   :  { %v4380_v5 = vpop.f32.mrf.mxu0  ;;  %4874 = vmatprep.subr.mxu1 %v5859_v40  ;;  %4979 = vmatprep.subr.mxu0 %v6145_v62 }
 0x1eb   :  { %4875 = vmatpush3.msra.mxu1 %v2366_v14  ;;  %4980 = vmatpush3.msra.mxu0 %v2674_v23  ;;  %v675_v9 = vpop.f32.mrf.mxu1  ;;  %v2668_v14 = vld [vmem:[#allocation7 + $0x3b0] sm:$0xff] }
 0x1ec   :  { %v932_v12 = vpop.f32.mrf.mxu0  ;;  %4697 = vmatmul.mubr.f32.gmra.mxu1 %v1719_v7  ;;  %4804 = vmatmul.mubr.f32.gmra.mxu0 %v6148_v8  ;;  %v1725_v7 = vld [vmem:[#allocation2 + $0x60] sm:$0xff] }
 0x1ed   :  { %v6151_v24 = vadd.f32 %v932_v12, %v675_v9  ;;  %4699 = vmatprep.mubr.msk.f32.mxu1 %vm5433_vm0, %v6145_v62  ;;  %4806 = vmatprep.mubr.msk.f32.mxu0 %vm5433_vm0, %v6145_v62  ;;  %v4276_v40 = vpop.f32.mrf.mxu1  ;;  %v6214_v9 = vld [vmem:[#allocation2 + $0x61] sm:$0xff] }
 0x1ee   :  { %v4383_v15 = vpop.f32.mrf.mxu0  ;;  %4876 = vmatprep.subr.mxu1 %v6145_v62  ;;  %4981 = vmatprep.subr.mxu0 %v6145_v62  ;;  %v2667_v40 = vld [vmem:[#allocation7 + $0x3a8] sm:$0xff] }
 0x1ef   :  { %4877 = vmatpush3.msra.mxu1 %v2365_v13  ;;  %4982 = vmatpush3.msra.mxu0 %v2673_v21  ;;  %v680_v27 = vpop.f32.mrf.mxu1  ;;  %v2359_v21 = vld [vmem:[#allocation7 + $0x320] sm:$0xff] }
 0x1f0   :  { %v937_v28 = vpop.f32.mrf.mxu0  ;;  %4700 = vmatmul.mubr.f32.gmra.mxu1 %v1720_v25  ;;  %4807 = vmatmul.mubr.f32.gmra.mxu0 %v6159_v26 }
 0x1f1   :  { %v6162_v30 = vadd.f32 %v937_v28, %v680_v27  ;;  %4702 = vmatprep.mubr.msk.f32.mxu1 %vm5433_vm0, %v6145_v62  ;;  %4809 = vmatprep.mubr.msk.f32.mxu0 %vm5433_vm0, %v6145_v62  ;;  %v4279_v31 = vpop.f32.mrf.mxu1  ;;  %v1726_v28 = vld [vmem:[#allocation2 + $0x68] sm:$0xff] }
 0x1f2   :  { %v4386_v32 = vpop.f32.mrf.mxu0  ;;  %4878 = vmatprep.subr.mxu1 %v6145_v62  ;;  %4983 = vmatprep.subr.mxu0 %v6145_v62 }
 0x1f3   :  { %4879 = vmatpush3.msra.mxu1 %v2364_v6  ;;  %4984 = vmatpush3.msra.mxu0 %v2672_v29  ;;  %v685_v35 = vpop.f32.mrf.mxu1  ;;  %v6225_v6 = vld [vmem:[#allocation2 + $0x69] sm:$0xff]  ;;  %v2358_v32 = vld [vmem:[#allocation7 + $0x318] sm:$0xff] }
 0x1f4   :  { %v942_v16 = vpop.f32.mrf.mxu0  ;;  %4703 = vmatmul.mubr.f32.gmra.mxu1 %v1721_v33  ;;  %4810 = vmatmul.mubr.f32.gmra.mxu0 %v6170_v34  ;;  %v2666_v33 = vld [vmem:[#allocation7 + $0x3a0] sm:$0xff] }
 0x1f5   :  { %v6173_v39 = vadd.f32 %v942_v16, %v685_v35  ;;  %4705 = vmatprep.mubr.msk.f32.mxu1 %vm5433_vm0, %v6145_v62  ;;  %4812 = vmatprep.mubr.msk.f32.mxu0 %vm5433_vm0, %v6145_v62  ;;  %v4282_v0 = vpop.f32.mrf.mxu1 }
 0x1f6   :  { %v4389_v10 = vpop.f32.mrf.mxu0  ;;  %4880 = vmatprep.subr.mxu1 %v6145_v62  ;;  %4985 = vmatprep.subr.mxu0 %v6145_v62  ;;  %v6236_v0 = vld [vmem:[#allocation2 + $0x71] sm:$0xff] }
 0x1f7   :  { %4881 = vmatpush3.msra.mxu1 %v2363_v37  ;;  %4986 = vmatpush3.msra.mxu0 %v2671_v38  ;;  %v690_v43 = vpop.f32.mrf.mxu1  ;;  %v1727_v38 = vld [vmem:[#allocation2 + $0x70] sm:$0xff] }
 0x1f8   :  { %v947_v44 = vpop.f32.mrf.mxu0  ;;  %4706 = vmatmul.mubr.f32.gmra.mxu1 %v1722_v41  ;;  %4813 = vmatmul.mubr.f32.gmra.mxu0 %v6181_v42 }
 0x1f9   :  { %v6184_v47 = vadd.f32 %v947_v44, %v690_v43  ;;  %4708 = vmatprep.mubr.msk.f32.mxu1 %vm5433_vm0, %v6145_v62  ;;  %4815 = vmatprep.mubr.msk.f32.mxu0 %vm5433_vm0, %v6145_v62  ;;  %v4285_v49 = vpop.f32.mrf.mxu1  ;;  %v2357_v43 = vld [vmem:[#allocation7 + $0x310] sm:$0xff]  ;;  %v2665_v44 = vld [vmem:[#allocation7 + $0x398] sm:$0xff] }
 0x1fa   :  { %v4392_v50 = vpop.f32.mrf.mxu0  ;;  %4882 = vmatprep.subr.mxu1 %v6145_v62  ;;  %4987 = vmatprep.subr.mxu0 %v6145_v62 }
 0x1fb   :  { %4883 = vmatpush3.msra.mxu1 %v2362_v46  ;;  %4988 = vmatpush3.msra.mxu0 %v2670_v17  ;;  %v695_v53 = vpop.f32.mrf.mxu1  ;;  %v1728_v50 = vld [vmem:[#allocation2 + $0x78] sm:$0xff] }
 0x1fc   :  { %v952_v54 = vpop.f32.mrf.mxu0  ;;  %4709 = vmatmul.mubr.f32.gmra.mxu1 %v1723_v51  ;;  %4816 = vmatmul.mubr.f32.gmra.mxu0 %v6192_v52  ;;  %v6247_v51 = vld [vmem:[#allocation2 + $0x79] sm:$0xff] }
 0x1fd   :  { %v6195_v57 = vadd.f32 %v952_v54, %v695_v53  ;;  %4711 = vmatprep.mubr.msk.f32.mxu1 %vm5433_vm0, %v6145_v62  ;;  %4818 = vmatprep.mubr.msk.f32.mxu0 %vm5433_vm0, %v6145_v62  ;;  %v4288_v58 = vpop.f32.mrf.mxu1 }
 0x1fe   :  { %v4395_v59 = vpop.f32.mrf.mxu0  ;;  %4884 = vmatprep.subr.mxu1 %v6145_v62  ;;  %4989 = vmatprep.subr.mxu0 %v6145_v62 }
 0x1ff   :  { %4885 = vmatpush3.msra.mxu1 %v2361_v55  ;;  %4990 = vmatpush3.msra.mxu0 %v2669_v18  ;;  %v700_v1 = vpop.f32.mrf.mxu1  ;;  %v2356_v55 = vld [vmem:[#allocation7 + $0x308] sm:$0xff]  ;;  %v2664_v18 = vld [vmem:[#allocation7 + $0x390] sm:$0xff] }
 0x200   :  { %v957_v2 = vpop.f32.mrf.mxu0  ;;  %4712 = vmatmul.mubr.f32.gmra.mxu1 %v1724_v61  ;;  %4819 = vmatmul.mubr.f32.gmra.mxu0 %v6203_v63 }
 0x201   :  { %v6206_v23 = vadd.f32 %v957_v2, %v700_v1  ;;  %4714 = vmatprep.mubr.msk.f32.mxu1 %vm5433_vm0, %v6145_v62  ;;  %4821 = vmatprep.mubr.msk.f32.mxu0 %vm5433_vm0, %v6145_v62  ;;  %v4291_v4 = vpop.f32.mrf.mxu1  ;;  %v1729_v1 = vld [vmem:[#allocation2 + $0x80] sm:$0xff] }
 0x202   :  { %v4398_v5 = vpop.f32.mrf.mxu0  ;;  %4886 = vmatprep.subr.mxu1 %v6145_v62  ;;  %4991 = vmatprep.subr.mxu0 %v6145_v62  ;;  %v6258_v2 = vld [vmem:[#allocation2 + $0x81] sm:$0xff] }
 0x203   :  { %4887 = vmatpush3.msra.mxu1 %v2360_v20  ;;  %4992 = vmatpush3.msra.mxu0 %v2668_v14  ;;  %v705_v12 = vpop.f32.mrf.mxu1  ;;  %v2355_v4 = vld [vmem:[#allocation7 + $0x300] sm:$0xff]  ;;  %v2663_v5 = vld [vmem:[#allocation7 + $0x388] sm:$0xff] }
 0x204   :  { %v962_v13 = vpop.f32.mrf.mxu0  ;;  %4715 = vmatmul.mubr.f32.gmra.mxu1 %v1725_v7  ;;  %4822 = vmatmul.mubr.f32.gmra.mxu0 %v6214_v9 }
 0x205   :  { %v6217_v15 = vadd.f32 %v962_v13, %v705_v12  ;;  %4717 = vmatprep.mubr.msk.f32.mxu1 %vm5433_vm0, %v6145_v62  ;;  %4824 = vmatprep.mubr.msk.f32.mxu0 %vm5433_vm0, %v6145_v62  ;;  %v4294_v25 = vpop.f32.mrf.mxu1 }
 0x206   :  { %v4401_v27 = vpop.f32.mrf.mxu0  ;;  %4888 = vmatprep.subr.mxu1 %v6145_v62  ;;  %4993 = vmatprep.subr.mxu0 %v6145_v62 }
 0x207   :  { %4889 = vmatpush3.msra.mxu1 %v2359_v21  ;;  %4994 = vmatpush3.msra.mxu0 %v2667_v40  ;;  %v710_v29 = vpop.f32.mrf.mxu1  ;;  %v1730_v21 = vld [vmem:[#allocation2 + $0x88] sm:$0xff] }
 0x208   :  { %v967_v31 = vpop.f32.mrf.mxu0  ;;  %4718 = vmatmul.mubr.f32.gmra.mxu1 %v1726_v28  ;;  %4825 = vmatmul.mubr.f32.gmra.mxu0 %v6225_v6  ;;  %v6269_v40 = vld [vmem:[#allocation2 + $0x89] sm:$0xff] }
 0x209   :  { %v6228_v35 = vadd.f32 %v967_v31, %v710_v29  ;;  %4720 = vmatprep.mubr.msk.f32.mxu1 %vm5433_vm0, %v6145_v62  ;;  %4827 = vmatprep.mubr.msk.f32.mxu0 %vm5433_vm0, %v6145_v62  ;;  %v4297_v16 = vpop.f32.mrf.mxu1  ;;  %v2662_v28 = vld [vmem:[#allocation7 + $0x380] sm:$0xff] }
 0x20a   :  { %v4404_v37 = vpop.f32.mrf.mxu0  ;;  %4890 = vmatprep.subr.mxu1 %v6145_v62  ;;  %4995 = vmatprep.subr.mxu0 %v6145_v62  ;;  %v6280_v16 = vld [vmem:[#allocation2 + $0x91] sm:$0xff] }
 0x20b   :  { %4891 = vmatpush3.msra.mxu1 %v2358_v32  ;;  %4996 = vmatpush3.msra.mxu0 %v2666_v33  ;;  %v715_v10 = vpop.f32.mrf.mxu1  ;;  %v1731_v33 = vld [vmem:[#allocation2 + $0x90] sm:$0xff] }
 0x20c   :  { %v972_v41 = vpop.f32.mrf.mxu0  ;;  %4721 = vmatmul.mubr.f32.gmra.mxu1 %v1727_v38  ;;  %4828 = vmatmul.mubr.f32.gmra.mxu0 %v6236_v0 }
 0x20d   :  { %v6239_v46 = vadd.f32 %v972_v41, %v715_v10  ;;  %4723 = vmatprep.mubr.msk.f32.mxu1 %vm5433_vm0, %v6145_v62  ;;  %4830 = vmatprep.mubr.msk.f32.mxu0 %vm5433_vm0, %v6145_v62  ;;  %v4300_v17 = vpop.f32.mrf.mxu1 }
 0x20e   :  { %v4407_v49 = vpop.f32.mrf.mxu0  ;;  %4892 = vmatprep.subr.mxu1 %v6145_v62  ;;  %4997 = vmatprep.subr.mxu0 %v6145_v62  ;;  %v6290_v17 = vld [vmem:[#allocation2 + $0x99] sm:$0xff] }
 0x20f   :  { %4893 = vmatpush3.msra.mxu1 %v2357_v43  ;;  %4998 = vmatpush3.msra.mxu0 %v2665_v44  ;;  %v720_v53 = vpop.f32.mrf.mxu1  ;;  %v1732_v44 = vld [vmem:[#allocation2 + $0x98] sm:$0xff] }
 0x210   :  { %v977_v54 = vpop.f32.mrf.mxu0  ;;  %4724 = vmatmul.mubr.f32.gmra.mxu1 %v1728_v50  ;;  %4831 = vmatmul.mubr.f32.gmra.mxu0 %v6247_v51 }
 0x211   :  { %v6250_v58 = vadd.f32 %v977_v54, %v720_v53  ;;  %4726 = vmatprep.mubr.msk.f32.mxu1 %vm5433_vm0, %v6145_v62  ;;  %4833 = vmatprep.mubr.msk.f32.mxu0 %vm5433_vm0, %v6145_v62  ;;  %v4303_v59 = vpop.f32.mrf.mxu1 }
 0x212   :  { %v4410_v61 = vpop.f32.mrf.mxu0  ;;  %4894 = vmatprep.subr.mxu1 %v6145_v62  ;;  %4999 = vmatprep.subr.mxu0 %v6145_v62  ;;  %v6299_v59 = vld [vmem:[#allocation2 + $0xa1] sm:$0xff] }
 0x213   :  { %4895 = vmatpush3.msra.mxu1 %v2356_v55  ;;  %5000 = vmatpush3.msra.mxu0 %v2664_v18  ;;  %v725_v20 = vpop.f32.mrf.mxu1  ;;  %v1733_v18 = vld [vmem:[#allocation2 + $0xa0] sm:$0xff] }
 0x214   :  { %v982_v14 = vpop.f32.mrf.mxu0  ;;  %4727 = vmatmul.mubr.f32.gmra.mxu1 %v1729_v1  ;;  %4834 = vmatmul.mubr.f32.gmra.mxu0 %v6258_v2 }
 0x215   :  { %v6261_v7 = vadd.f32 %v982_v14, %v725_v20  ;;  %4729 = vmatprep.mubr.msk.f32.mxu1 %vm5433_vm0, %v6145_v62  ;;  %4836 = vmatprep.mubr.msk.f32.mxu0 %vm5433_vm0, %v6145_v62  ;;  %v4306_v12 = vpop.f32.mrf.mxu1 }
 0x216   :  { %v4413_v13 = vpop.f32.mrf.mxu0  ;;  %4896 = vmatprep.subr.mxu1 %v6145_v62  ;;  %5001 = vmatprep.subr.mxu0 %v6145_v62  ;;  %v6308_v12 = vld [vmem:[#allocation2 + $0xa9] sm:$0xff] }
 0x217   :  { %4897 = vmatpush3.msra.mxu1 %v2355_v4  ;;  %5002 = vmatpush3.msra.mxu0 %v2663_v5  ;;  %v730_v25 = vpop.f32.mrf.mxu1  ;;  %v1734_v5 = vld [vmem:[#allocation2 + $0xa8] sm:$0xff] }
 0x218   :  { %v987_v27 = vpop.f32.mrf.mxu0  ;;  %4730 = vmatmul.mubr.f32.gmra.mxu1 %v1730_v21  ;;  %4837 = vmatmul.mubr.f32.gmra.mxu0 %v6269_v40 }
 0x219   :  { %v6272_v29 = vadd.f32 %v987_v27, %v730_v25  ;;  %4732 = vmatprep.mubr.msk.f32.mxu1 %vm5433_vm0, %v6145_v62  ;;  %4839 = vmatprep.mubr.msk.f32.mxu0 %vm5433_vm0, %v6145_v62  ;;  %v4309_v31 = vpop.f32.mrf.mxu1 }
 0x21a   :  { %v4416_v32 = vpop.f32.mrf.mxu0  ;;  %5003 = vmatprep.subr.mxu0 %v6145_v62  ;;  %5080 = vmatprep.subr.mxu1 %v6145_v62  ;;  %v1735_v31 = vld [vmem:[#allocation2 + $0xb0] sm:$0xff] }
 0x21b   :  { %5004 = vmatpush3.msra.mxu0 %v2662_v28  ;;  %v735_v37 = vpop.f32.mrf.mxu1  ;;  %v6317_v32 = vld [vmem:[#allocation2 + $0xb1] sm:$0xff] }
 0x21c   :  { %v992_v38 = vpop.f32.mrf.mxu0  ;;  %4733 = vmatmul.mubr.f32.gmra.mxu1 %v1731_v33  ;;  %4840 = vmatmul.mubr.f32.gmra.mxu0 %v6280_v16 }
 0x21d   :  { %v6283_v10 = vadd.f32 %v992_v38, %v735_v37  ;;  %4735 = vmatprep.mubr.msk.f32.mxu1 %vm5433_vm0, %v6145_v62  ;;  %4842 = vmatprep.mubr.msk.f32.mxu0 %vm5433_vm0, %v6145_v62  ;;  %v4312_v41 = vpop.f32.mrf.mxu1 }
 0x21e   :  { %v4419_v43 = vpop.f32.mrf.mxu0  ;;  %5187 = vmatprep.subr.mxu0 %v6145_v62 }
 0x21f   :  { %v740_v49 = vpop.f32.mrf.mxu1 }
 0x220   :  { %v997_v50 = vpop.f32.mrf.mxu0  ;;  %4736 = vmatmul.mubr.f32.gmra.mxu1 %v1732_v44  ;;  %4843 = vmatmul.mubr.f32.gmra.mxu0 %v6290_v17  ;;  %v1736_v44 = vld [vmem:[#allocation2 + $0xb8] sm:$0xff] }
 0x221   :  { %v6293_v53 = vadd.f32 %v997_v50, %v740_v49  ;;  %4738 = vmatprep.mubr.msk.f32.mxu1 %vm5433_vm0, %v6145_v62  ;;  %4845 = vmatprep.mubr.msk.f32.mxu0 %vm5433_vm0, %v6145_v62  ;;  %v4315_v54 = vpop.f32.mrf.mxu1  ;;  %v6326_v49 = vld [vmem:[#allocation2 + $0xb9] sm:$0xff] }
 0x222   :  { %v4422_v55 = vpop.f32.mrf.mxu0 }
 0x223   :  { %v745_v61 = vpop.f32.mrf.mxu1 }
 0x224   :  { %v1002_v1 = vpop.f32.mrf.mxu0  ;;  %4739 = vmatmul.mubr.f32.gmra.mxu1 %v1733_v18  ;;  %4846 = vmatmul.mubr.f32.gmra.mxu0 %v6299_v59 }
 0x225   :  { %v6302_v20 = vadd.f32 %v1002_v1, %v745_v61  ;;  %4741 = vmatprep.mubr.msk.f32.mxu1 %vm5433_vm0, %v6145_v62  ;;  %4848 = vmatprep.mubr.msk.f32.mxu0 %vm5433_vm0, %v6145_v62  ;;  %v4318_v14 = vpop.f32.mrf.mxu1  ;;  %v1737_v1 = vld [vmem:[#allocation2 + $0xc0] sm:$0xff] }
 0x226   :  { %v4425_v4 = vpop.f32.mrf.mxu0  ;;  %v6335_v14 = vld [vmem:[#allocation2 + $0xc1] sm:$0xff] }
 0x227   :  { %v750_v13 = vpop.f32.mrf.mxu1 }
 0x228   :  { %v1007_v21 = vpop.f32.mrf.mxu0  ;;  %4742 = vmatmul.mubr.f32.gmra.mxu1 %v1734_v5  ;;  %4849 = vmatmul.mubr.f32.gmra.mxu0 %v6308_v12 }
 0x229   :  { %v6311_v25 = vadd.f32 %v1007_v21, %v750_v13  ;;  %4744 = vmatprep.mubr.msk.f32.mxu1 %vm5433_vm0, %v6145_v62  ;;  %4851 = vmatprep.mubr.msk.f32.mxu0 %vm5433_vm0, %v6145_v62  ;;  %v4321_v27 = vpop.f32.mrf.mxu1 }
 0x22a   :  { %v4428_v28 = vpop.f32.mrf.mxu0 }
 0x22b   :  { %v755_v33 = vpop.f32.mrf.mxu1  ;;  %v1738_v28 = vld [vmem:[#allocation2 + $0xc8] sm:$0xff] }
 0x22c   :  { %v1012_v37 = vpop.f32.mrf.mxu0  ;;  %4745 = vmatmul.mubr.f32.gmra.mxu1 %v1735_v31  ;;  %4852 = vmatmul.mubr.f32.gmra.mxu0 %v6317_v32  ;;  %v6344_v31 = vld [vmem:[#allocation2 + $0xc9] sm:$0xff] }
 0x22d   :  { %v6320_v38 = vadd.f32 %v1012_v37, %v755_v33  ;;  %4747 = vmatprep.mubr.msk.f32.mxu1 %vm5433_vm0, %v6145_v62  ;;  %4854 = vmatprep.mubr.msk.f32.mxu0 %vm5433_vm0, %v6145_v62  ;;  %v4324_v41 = vpop.f32.mrf.mxu1 }
 0x22e   :  { %v4431_v43 = vpop.f32.mrf.mxu0 }
 0x22f   :  { %v760_v50 = vpop.f32.mrf.mxu1 }
 0x230   :  { %v1017_v54 = vpop.f32.mrf.mxu0  ;;  %4748 = vmatmul.mubr.f32.gmra.mxu1 %v1736_v44  ;;  %4855 = vmatmul.mubr.f32.gmra.mxu0 %v6326_v49 }
 0x231   :  { %v6329_v55 = vadd.f32 %v1017_v54, %v760_v50  ;;  %4750 = vmatprep.mubr.msk.f32.mxu1 %vm5433_vm0, %v6145_v62  ;;  %4857 = vmatprep.mubr.msk.f32.mxu0 %vm5433_vm0, %v6145_v62  ;;  %v4327_v18 = vpop.f32.mrf.mxu1  ;;  %v1739_v54 = vld [vmem:[#allocation2 + $0xd0] sm:$0xff] }
 0x232   :  { %v4434_v61 = vpop.f32.mrf.mxu0  ;;  %v6354_v18 = vld [vmem:[#allocation2 + $0xd1] sm:$0xff] }
 0x233   :  { %v765_v4 = vpop.f32.mrf.mxu1 }
 0x234   :  { %v1022_v5 = vpop.f32.mrf.mxu0  ;;  %4751 = vmatmul.mubr.f32.gmra.mxu1 %v1737_v1  ;;  %4858 = vmatmul.mubr.f32.gmra.mxu0 %v6335_v14 }
 0x235   :  { %v6338_v13 = vadd.f32 %v1022_v5, %v765_v4  ;;  %4753 = vmatprep.mubr.msk.f32.mxu1 %vm5433_vm0, %v6145_v62  ;;  %4860 = vmatprep.mubr.msk.f32.mxu0 %vm5433_vm0, %v6145_v62  ;;  %v4330_v21 = vpop.f32.mrf.mxu1 }
 0x236   :  { %v4437_v27 = vpop.f32.mrf.mxu0  ;;  %v2984_v21 = vld [vmem:[#allocation7 + $0x478] sm:$0xff] }
 0x237   :  { %v1209_v33 = vpop.f32.mrf.mxu1 }
 0x238   :  { %v1516_v37 = vpop.f32.mrf.mxu0  ;;  %4754 = vmatmul.mubr.f32.gmra.mxu1 %v1738_v28  ;;  %4861 = vmatmul.mubr.f32.gmra.mxu0 %v6344_v31  ;;  %v1358_v41 = vadd.f32 %v1209_v33, %v5938_v22  ;;  %v2636_v28 = vld [vmem:[#allocation2 + $0x1a] sm:$0xff] }
 0x239   :  { %4756 = vmatprep.mubr.msk.f32.mxu1 %vm5433_vm0, %v6145_v62  ;;  %4863 = vmatprep.mubr.msk.f32.mxu0 %vm5433_vm0, %v6145_v62  ;;  %v4472_v43 = vpop.f32.mrf.mxu1 }
 0x23a   :  { %v4579_v44 = vpop.f32.mrf.mxu0  ;;  %v6352_v50 = vadd.f32 %v1516_v37, %v1358_v41  ;;  %v2983_v41 = vld [vmem:[#allocation7 + $0x470] sm:$0xff] }
 0x23c   :  { %v1214_v61 = vpop.f32.mrf.mxu1  ;;  %v1521_v1 = vpop.f32.mrf.mxu0  ;;  %4757 = vmatmul.mubr.f32.gmra.mxu1 %v1739_v54  ;;  %4864 = vmatmul.mubr.f32.gmra.mxu0 %v6354_v18 }
 0x23d   :  { %v1359_v22 = vadd.f32 %v1214_v61, %v6100_v36  ;;  %4898 = vmatprep.mubr.msk.f32.mxu1 %vm5433_vm0, %v6145_v62  ;;  %5005 = vmatprep.mubr.msk.f32.mxu0 %vm5433_vm0, %v6145_v62  ;;  %v2637_v61 = vld [vmem:[#allocation2 + $0x22] sm:$0xff] }
 0x23e   :  { %v4475_v4 = vpop.f32.mrf.mxu1  ;;  %v4582_v5 = vpop.f32.mrf.mxu0 }
 0x23f   :  { %v6362_v27 = vadd.f32 %v1521_v1, %v1359_v22 }
 0x240   :  { %v1219_v33 = vpop.f32.mrf.mxu1  ;;  %v1526_v37 = vpop.f32.mrf.mxu0  ;;  %4899 = vmatmul.mubr.f32.vlgmr.msra.gmra.mxu1 %v6113_v48  ;;  %5006 = vmatmul.mubr.f32.vlgmr.msra.gmra.mxu0 %v2636_v28  ;;  %v2638_v28 = vld [vmem:[#allocation2 + $0x2a] sm:$0xff] }
 0x241   :  { %v1360_v36 = vadd.f32 %v1219_v33, %v6106_v45  ;;  %5081 = vmatpush3.msra.mxu1 %v2984_v21  ;;  %4901 = vmatprep.mubr.msk.f32.mxu1 %vm5433_vm0, %v6145_v62  ;;  %v2982_v45 = vld [vmem:[#allocation7 + $0x468] sm:$0xff] }
 0x242   :  { %v4478_v43 = vpop.f32.mrf.mxu1  ;;  %v4585_v44 = vpop.f32.mrf.mxu0  ;;  %5008 = vmatprep.mubr.msk.f32.mxu0 %vm5433_vm0, %v6145_v62  ;;  %5082 = vmatprep.subr.mxu1 %v6145_v62 }
 0x243   :  { %v6371_v54 = vadd.f32 %v1526_v37, %v1360_v36  ;;  %5083 = vmatpush3.msra.mxu1 %v2983_v41  ;;  %v2639_v44 = vld [vmem:[#allocation2 + $0x32] sm:$0xff] }
 0x244   :  { %v1224_v48 = vpop.f32.mrf.mxu1  ;;  %v1531_v1 = vpop.f32.mrf.mxu0  ;;  %4902 = vmatmul.mubr.f32.gmra.mxu1 %v6124_v56  ;;  %5009 = vmatmul.mubr.f32.gmra.mxu0 %v2637_v61 }
 0x245   :  { %v1361_v22 = vadd.f32 %v1224_v48, %v6116_v11  ;;  %4904 = vmatprep.mubr.msk.f32.mxu1 %vm5433_vm0, %v6145_v62  ;;  %5011 = vmatprep.mubr.msk.f32.mxu0 %vm5433_vm0, %v6145_v62  ;;  %v2981_v11 = vld [vmem:[#allocation7 + $0x460] sm:$0xff] }
 0x246   :  { %v4481_v4 = vpop.f32.mrf.mxu1  ;;  %v4588_v5 = vpop.f32.mrf.mxu0  ;;  %5084 = vmatprep.subr.mxu1 %v6145_v62 }
 0x247   :  { %v6380_v21 = vadd.f32 %v1531_v1, %v1361_v22  ;;  %5085 = vmatpush3.msra.mxu1 %v2982_v45  ;;  %v2640_v4 = vld [vmem:[#allocation2 + $0x3a] sm:$0xff] }
 0x248   :  { %v1229_v33 = vpop.f32.mrf.mxu1  ;;  %v1536_v56 = vpop.f32.mrf.mxu0  ;;  %4905 = vmatmul.mubr.f32.gmra.mxu1 %v6135_v19  ;;  %5012 = vmatmul.mubr.f32.gmra.mxu0 %v2638_v28 }
 0x249   :  { %v1362_v37 = vadd.f32 %v1229_v33, %v6127_v60  ;;  %4907 = vmatprep.mubr.msk.f32.mxu1 %vm5433_vm0, %v6145_v62  ;;  %5014 = vmatprep.mubr.msk.f32.mxu0 %vm5433_vm0, %v6145_v62  ;;  %v2980_v60 = vld [vmem:[#allocation7 + $0x458] sm:$0xff] }
 0x24a   :  { %v4484_v41 = vpop.f32.mrf.mxu1  ;;  %v4591_v36 = vpop.f32.mrf.mxu0  ;;  %5086 = vmatprep.subr.mxu1 %v6145_v62 }
 0x24b   :  { %v6389_v43 = vadd.f32 %v1536_v56, %v1362_v37  ;;  %5087 = vmatpush3.msra.mxu1 %v2981_v11  ;;  %v2641_v37 = vld [vmem:[#allocation2 + $0x42] sm:$0xff] }
 0x24c   :  { %v1234_v61 = vpop.f32.mrf.mxu1  ;;  %v1541_v19 = vpop.f32.mrf.mxu0  ;;  %4908 = vmatmul.mubr.f32.gmra.mxu1 %v6148_v8  ;;  %5015 = vmatmul.mubr.f32.gmra.mxu0 %v2639_v44 }
 0x24d   :  { %v1363_v48 = vadd.f32 %v1234_v61, %v6138_v3  ;;  %4910 = vmatprep.mubr.msk.f32.mxu1 %vm5433_vm0, %v6145_v62  ;;  %5017 = vmatprep.mubr.msk.f32.mxu0 %vm5433_vm0, %v6145_v62  ;;  %v2979_v3 = vld [vmem:[#allocation7 + $0x450] sm:$0xff] }
 0x24e   :  { %v4487_v1 = vpop.f32.mrf.mxu1  ;;  %v4594_v45 = vpop.f32.mrf.mxu0  ;;  %5088 = vmatprep.subr.mxu1 %v6145_v62 }
 0x24f   :  { %v6398_v22 = vadd.f32 %v1541_v19, %v1363_v48  ;;  %5089 = vmatpush3.msra.mxu1 %v2980_v60  ;;  %v2642_v60 = vld [vmem:[#allocation2 + $0x4a] sm:$0xff] }
 0x250   :  { %v1239_v5 = vpop.f32.mrf.mxu1  ;;  %v1546_v8 = vpop.f32.mrf.mxu0  ;;  %4911 = vmatmul.mubr.f32.gmra.mxu1 %v6159_v26  ;;  %5018 = vmatmul.mubr.f32.gmra.mxu0 %v2640_v4 }
 0x251   :  { %v1364_v28 = vadd.f32 %v1239_v5, %v6151_v24  ;;  %4913 = vmatprep.mubr.msk.f32.mxu1 %vm5433_vm0, %v6145_v62  ;;  %5020 = vmatprep.mubr.msk.f32.mxu0 %vm5433_vm0, %v6145_v62  ;;  %v2978_v24 = vld [vmem:[#allocation7 + $0x448] sm:$0xff] }
 0x252   :  { %v4490_v33 = vpop.f32.mrf.mxu1  ;;  %v4597_v56 = vpop.f32.mrf.mxu0  ;;  %5090 = vmatprep.subr.mxu1 %v6145_v62 }
 0x253   :  { %v6407_v11 = vadd.f32 %v1546_v8, %v1364_v28  ;;  %5091 = vmatpush3.msra.mxu1 %v2979_v3  ;;  %v2643_v8 = vld [vmem:[#allocation2 + $0x52] sm:$0xff] }
 0x254   :  { %v1244_v41 = vpop.f32.mrf.mxu1  ;;  %v1551_v26 = vpop.f32.mrf.mxu0  ;;  %4914 = vmatmul.mubr.f32.gmra.mxu1 %v6170_v34  ;;  %5021 = vmatmul.mubr.f32.gmra.mxu0 %v2641_v37 }
 0x255   :  { %v1365_v36 = vadd.f32 %v1244_v41, %v6162_v30  ;;  %4916 = vmatprep.mubr.msk.f32.mxu1 %vm5433_vm0, %v6145_v62  ;;  %5023 = vmatprep.mubr.msk.f32.mxu0 %vm5433_vm0, %v6145_v62  ;;  %v2977_v30 = vld [vmem:[#allocation7 + $0x440] sm:$0xff]  ;;  %v2644_v41 = vld [vmem:[#allocation2 + $0x5a] sm:$0xff] }
 0x256   :  { %v4493_v44 = vpop.f32.mrf.mxu1  ;;  %v4600_v61 = vpop.f32.mrf.mxu0  ;;  %5092 = vmatprep.subr.mxu1 %v6145_v62 }
 0x257   :  { %v6416_v19 = vadd.f32 %v1551_v26, %v1365_v36  ;;  %5093 = vmatpush3.msra.mxu1 %v2978_v24 }
 0x258   :  { %v1249_v48 = vpop.f32.mrf.mxu1  ;;  %v1556_v34 = vpop.f32.mrf.mxu0  ;;  %4917 = vmatmul.mubr.f32.gmra.mxu1 %v6181_v42  ;;  %5024 = vmatmul.mubr.f32.gmra.mxu0 %v2642_v60  ;;  %v2645_v60 = vld [vmem:[#allocation2 + $0x62] sm:$0xff] }
 0x259   :  { %v1366_v1 = vadd.f32 %v1249_v48, %v6173_v39  ;;  %4919 = vmatprep.mubr.msk.f32.mxu1 %vm5433_vm0, %v6145_v62  ;;  %5026 = vmatprep.mubr.msk.f32.mxu0 %vm5433_vm0, %v6145_v62  ;;  %v2976_v39 = vld [vmem:[#allocation7 + $0x438] sm:$0xff] }
 0x25a   :  { %v4496_v45 = vpop.f32.mrf.mxu1  ;;  %v4603_v4 = vpop.f32.mrf.mxu0  ;;  %5094 = vmatprep.subr.mxu1 %v6145_v62 }
 0x25b   :  { %v6425_v5 = vadd.f32 %v1556_v34, %v1366_v1  ;;  %5095 = vmatpush3.msra.mxu1 %v2977_v30  ;;  %v2646_v4 = vld [vmem:[#allocation2 + $0x6a] sm:$0xff] }
 0x25c   :  { %v1254_v3 = vpop.f32.mrf.mxu1  ;;  %v1561_v42 = vpop.f32.mrf.mxu0  ;;  %4920 = vmatmul.mubr.f32.gmra.mxu1 %v6192_v52  ;;  %5027 = vmatmul.mubr.f32.gmra.mxu0 %v2643_v8 }
 0x25d   :  { %v1367_v28 = vadd.f32 %v1254_v3, %v6184_v47  ;;  %4922 = vmatprep.mubr.msk.f32.mxu1 %vm5433_vm0, %v6145_v62  ;;  %5029 = vmatprep.mubr.msk.f32.mxu0 %vm5433_vm0, %v6145_v62  ;;  %v2975_v47 = vld [vmem:[#allocation7 + $0x430] sm:$0xff] }
 0x25e   :  { %v4499_v33 = vpop.f32.mrf.mxu1  ;;  %v4606_v56 = vpop.f32.mrf.mxu0  ;;  %5096 = vmatprep.subr.mxu1 %v6145_v62 }
 0x25f   :  { %v6434_v37 = vadd.f32 %v1561_v42, %v1367_v28  ;;  %5097 = vmatpush3.msra.mxu1 %v2976_v39  ;;  %v2647_v33 = vld [vmem:[#allocation2 + $0x72] sm:$0xff] }
 0x260   :  { %v1259_v26 = vpop.f32.mrf.mxu1  ;;  %v1566_v52 = vpop.f32.mrf.mxu0  ;;  %4923 = vmatmul.mubr.f32.gmra.mxu1 %v6203_v63  ;;  %5030 = vmatmul.mubr.f32.gmra.mxu0 %v2644_v41 }
 0x261   :  { %v1368_v24 = vadd.f32 %v1259_v26, %v6195_v57  ;;  %4925 = vmatprep.mubr.msk.f32.mxu1 %vm5433_vm0, %v6145_v62  ;;  %5032 = vmatprep.mubr.msk.f32.mxu0 %vm5433_vm0, %v6145_v62  ;;  %v2974_v57 = vld [vmem:[#allocation7 + $0x428] sm:$0xff] }
 0x262   :  { %v4502_v36 = vpop.f32.mrf.mxu1  ;;  %v4609_v44 = vpop.f32.mrf.mxu0  ;;  %5098 = vmatprep.subr.mxu1 %v6145_v62 }
 0x263   :  { %v6443_v61 = vadd.f32 %v1566_v52, %v1368_v24  ;;  %5099 = vmatpush3.msra.mxu1 %v2975_v47  ;;  %v2648_v24 = vld [vmem:[#allocation2 + $0x7a] sm:$0xff] }
 0x264   :  { %v1264_v48 = vpop.f32.mrf.mxu1  ;;  %v1571_v63 = vpop.f32.mrf.mxu0  ;;  %4926 = vmatmul.mubr.f32.gmra.mxu1 %v6214_v9  ;;  %5033 = vmatmul.mubr.f32.gmra.mxu0 %v2645_v60 }
 0x265   :  { %v1369_v34 = vadd.f32 %v1264_v48, %v6206_v23  ;;  %4928 = vmatprep.mubr.msk.f32.mxu1 %vm5433_vm0, %v6145_v62  ;;  %5035 = vmatprep.mubr.msk.f32.mxu0 %vm5433_vm0, %v6145_v62  ;;  %v2973_v23 = vld [vmem:[#allocation7 + $0x420] sm:$0xff] }
 0x266   :  { %v4505_v30 = vpop.f32.mrf.mxu1  ;;  %v4612_v1 = vpop.f32.mrf.mxu0  ;;  %5100 = vmatprep.subr.mxu1 %v6145_v62 }
 0x267   :  { %v6452_v45 = vadd.f32 %v1571_v63, %v1369_v34  ;;  %5101 = vmatpush3.msra.mxu1 %v2974_v57  ;;  %v2649_v57 = vld [vmem:[#allocation2 + $0x82] sm:$0xff] }
 0x268   :  { %v1269_v8 = vpop.f32.mrf.mxu1  ;;  %v1576_v9 = vpop.f32.mrf.mxu0  ;;  %4929 = vmatmul.mubr.f32.gmra.mxu1 %v6225_v6  ;;  %5036 = vmatmul.mubr.f32.gmra.mxu0 %v2646_v4 }
 0x269   :  { %v1370_v3 = vadd.f32 %v1269_v8, %v6217_v15  ;;  %4931 = vmatprep.mubr.msk.f32.mxu1 %vm5433_vm0, %v6145_v62  ;;  %5038 = vmatprep.mubr.msk.f32.mxu0 %vm5433_vm0, %v6145_v62  ;;  %v2972_v15 = vld [vmem:[#allocation7 + $0x418] sm:$0xff] }
 0x26a   :  { %v4508_v42 = vpop.f32.mrf.mxu1  ;;  %v4615_v39 = vpop.f32.mrf.mxu0  ;;  %5102 = vmatprep.subr.mxu1 %v6145_v62 }
 0x26b   :  { %v6461_v28 = vadd.f32 %v1576_v9, %v1370_v3  ;;  %5103 = vmatpush3.msra.mxu1 %v2973_v23  ;;  %v2650_v9 = vld [vmem:[#allocation2 + $0x8a] sm:$0xff]  ;;  %v6492_v42 = vld [vmem:[#allocation2] sm:$0xff] }
 0x26c   :  { %v1274_v56 = vpop.f32.mrf.mxu1  ;;  %v1581_v6 = vpop.f32.mrf.mxu0  ;;  %4932 = vmatmul.mubr.f32.gmra.mxu1 %v6236_v0  ;;  %5039 = vmatmul.mubr.f32.gmra.mxu0 %v2647_v33 }
 0x26d   :  { %v1371_v41 = vadd.f32 %v1274_v56, %v6228_v35  ;;  %4934 = vmatprep.mubr.msk.f32.mxu1 %vm5433_vm0, %v6145_v62  ;;  %5041 = vmatprep.mubr.msk.f32.mxu0 %vm5433_vm0, %v6145_v62  ;;  %v2971_v35 = vld [vmem:[#allocation7 + $0x410] sm:$0xff] }
 0x26e   :  { %v4511_v26 = vpop.f32.mrf.mxu1  ;;  %v4618_v52 = vpop.f32.mrf.mxu0  ;;  %5104 = vmatprep.subr.mxu1 %v6145_v62  ;;  %v2651_v56 = vld [vmem:[#allocation2 + $0x92] sm:$0xff] }
 0x26f   :  { %v6470_v47 = vadd.f32 %v1581_v6, %v1371_v41  ;;  %5105 = vmatpush3.msra.mxu1 %v2972_v15  ;;  %v2652_v52 = vld [vmem:[#allocation2 + $0x9a] sm:$0xff] }
 0x270   :  { %v1279_v36 = vpop.f32.mrf.mxu1  ;;  %v1586_v0 = vpop.f32.mrf.mxu0  ;;  %4935 = vmatmul.mubr.f32.gmra.mxu1 %v6247_v51  ;;  %5042 = vmatmul.mubr.f32.gmra.mxu0 %v2648_v24 }
 0x271   :  { %v1372_v44 = vadd.f32 %v1279_v36, %v6239_v46  ;;  %4937 = vmatprep.mubr.msk.f32.mxu1 %vm5433_vm0, %v6145_v62  ;;  %5044 = vmatprep.mubr.msk.f32.mxu0 %vm5433_vm0, %v6145_v62  ;;  %v2970_v46 = vld [vmem:[#allocation7 + $0x408] sm:$0xff] }
 0x272   :  { %v4514_v60 = vpop.f32.mrf.mxu1  ;;  %v4621_v48 = vpop.f32.mrf.mxu0  ;;  %5106 = vmatprep.subr.mxu1 %v6145_v62 }
 0x273   :  { %v6479_v63 = vadd.f32 %v1586_v0, %v1372_v44  ;;  %5107 = vmatpush3.msra.mxu1 %v2971_v35  ;;  %v2653_v44 = vld [vmem:[#allocation2 + $0xa2] sm:$0xff] }
 0x274   :  { %v1284_v34 = vpop.f32.mrf.mxu1  ;;  %v1591_v51 = vpop.f32.mrf.mxu0  ;;  %4938 = vmatmul.mubr.f32.gmra.mxu1 %v6258_v2  ;;  %5045 = vmatmul.mubr.f32.gmra.mxu0 %v2649_v57 }
 0x275   :  { %v1373_v30 = vadd.f32 %v1284_v34, %v6250_v58  ;;  %4940 = vmatprep.mubr.msk.f32.mxu1 %vm5433_vm0, %v6145_v62  ;;  %5047 = vmatprep.mubr.msk.f32.mxu0 %vm5433_vm0, %v6145_v62  ;;  %v2969_v58 = vld [vmem:[#allocation7 + $0x400] sm:$0xff] }
 0x276   :  { %v4517_v1 = vpop.f32.mrf.mxu1  ;;  %v4624_v4 = vpop.f32.mrf.mxu0  ;;  %5108 = vmatprep.subr.mxu1 %v6145_v62 }
 0x277   :  { %v6488_v8 = vadd.f32 %v1591_v51, %v1373_v30  ;;  %5109 = vmatpush3.msra.mxu1 %v2970_v46  ;;  %v2654_v51 = vld [vmem:[#allocation2 + $0xaa] sm:$0xff]  ;;  %v3347_v46 = vld [vmem:[#allocation9 + $0x78] sm:$0xff] }
 0x278   :  { %v1289_v23 = vpop.f32.mrf.mxu1  ;;  %v1596_v2 = vpop.f32.mrf.mxu0  ;;  %4941 = vmatmul.mubr.f32.gmra.mxu1 %v6269_v40  ;;  %5048 = vmatmul.mubr.f32.gmra.mxu0 %v2650_v9 }
 0x279   :  { %v1374_v3 = vadd.f32 %v1289_v23, %v6261_v7  ;;  %4943 = vmatprep.mubr.msk.f32.mxu1 %vm5433_vm0, %v6492_v42  ;;  %5050 = vmatprep.mubr.msk.f32.mxu0 %vm5433_vm0, %v6492_v42  ;;  %v2655_v23 = vld [vmem:[#allocation2 + $0xb2] sm:$0xff] }
 0x27a   :  { %v4520_v62 = vpop.f32.mrf.mxu1  ;;  %v4627_v39 = vpop.f32.mrf.mxu0  ;;  %5110 = vmatprep.subr.mxu1 %v6492_v42  ;;  %5188 = vmatpush3.msra.mxu0 %v3347_v46  ;;  %v2353_v46 = vld [vmem:[#allocation2 + $0xd9] sm:$0xff] }
 0x27b   :  { %v6499_v33 = vadd.f32 %v1596_v2, %v1374_v3  ;;  %5111 = vmatpush3.msra.mxu1 %v2969_v58  ;;  %5189 = vmatprep.subr.mxu0 %v6492_v42  ;;  %v2656_v39 = vld [vmem:[#allocation2 + $0xba] sm:$0xff] }
 0x27c   :  { %v1294_v40 = vpop.f32.mrf.mxu1  ;;  %v1601_v6 = vpop.f32.mrf.mxu0  ;;  %4944 = vmatmul.mubr.f32.gmra.mxu1 %v6280_v16  ;;  %5051 = vmatmul.mubr.f32.gmra.mxu0 %v2651_v56  ;;  %v3346_v56 = vld [vmem:[#allocation9 + $0x70] sm:$0xff] }
 0x27d   :  { %v1375_v7 = vadd.f32 %v1294_v40, %v6272_v29  ;;  %4946 = vmatprep.mubr.msk.f32.mxu1 %vm5433_vm0, %v6492_v42  ;;  %5053 = vmatprep.mubr.msk.f32.mxu0 %vm5433_vm0, %v6492_v42 }
 0x27e   :  { %v4523_v15 = vpop.f32.mrf.mxu1  ;;  %v4630_v41 = vpop.f32.mrf.mxu0  ;;  %5190 = vmatpush3.msra.mxu0 %v3346_v56 }
 0x27f   :  { %v6507_v26 = vadd.f32 %v1601_v6, %v1375_v7  ;;  %v2657_v41 = vld [vmem:[#allocation2 + $0xc2] sm:$0xff]  ;;  %5191 = vmatprep.subr.mxu0 %v6492_v42 }
 0x280   :  { %v1299_v24 = vpop.f32.mrf.mxu1  ;;  %v1606_v36 = vpop.f32.mrf.mxu0  ;;  %4947 = vmatmul.mubr.f32.gmra.mxu1 %v6290_v17  ;;  %5054 = vmatmul.mubr.f32.gmra.mxu0 %v2652_v52 }
 0x281   :  { %v1376_v16 = vadd.f32 %v1299_v24, %v6283_v10  ;;  %4949 = vmatprep.mubr.msk.f32.mxu1 %vm5433_vm0, %v6492_v42  ;;  %5056 = vmatprep.mubr.msk.f32.mxu0 %vm5433_vm0, %v6492_v42 }
 0x282   :  { %v4526_v29 = vpop.f32.mrf.mxu1  ;;  %v4633_v0 = vpop.f32.mrf.mxu0 }
 0x283   :  { %v6515_v35 = vadd.f32 %v1606_v36, %v1376_v16  ;;  %v2658_v29 = vld [vmem:[#allocation2 + $0xca] sm:$0xff] }
 0x284   :  { %v1304_v60 = vpop.f32.mrf.mxu1  ;;  %v1611_v48 = vpop.f32.mrf.mxu0  ;;  %4950 = vmatmul.mubr.f32.gmra.mxu1 %v6299_v59  ;;  %5057 = vmatmul.mubr.f32.gmra.mxu0 %v2653_v44  ;;  %v3345_v0 = vld [vmem:[#allocation9 + $0x68] sm:$0xff] }
 0x285   :  { %v1377_v17 = vadd.f32 %v1304_v60, %v6293_v53  ;;  %4952 = vmatprep.mubr.msk.f32.mxu1 %vm5433_vm0, %v6492_v42  ;;  %5059 = vmatprep.mubr.msk.f32.mxu0 %vm5433_vm0, %v6492_v42 }
 0x286   :  { %v4529_v10 = vpop.f32.mrf.mxu1  ;;  %v4636_v57 = vpop.f32.mrf.mxu0  ;;  %5192 = vmatpush3.msra.mxu0 %v3345_v0 }
 0x287   :  { %v6523_v34 = vadd.f32 %v1611_v48, %v1377_v17  ;;  %v2659_v10 = vld [vmem:[#allocation2 + $0xd2] sm:$0xff]  ;;  %5193 = vmatprep.subr.mxu0 %v6492_v42  ;;  %v3344_v57 = vld [vmem:[#allocation9 + $0x60] sm:$0xff] }
 0x288   :  { %v1309_v30 = vpop.f32.mrf.mxu1  ;;  %v1616_v1 = vpop.f32.mrf.mxu0  ;;  %4953 = vmatmul.mubr.f32.gmra.mxu1 %v6308_v12  ;;  %5060 = vmatmul.mubr.f32.gmra.mxu0 %v2654_v51 }
 0x289   :  { %v1378_v59 = vadd.f32 %v1309_v30, %v6302_v20  ;;  %4955 = vmatprep.mubr.msk.f32.mxu1 %vm5433_vm0, %v6492_v42  ;;  %5062 = vmatprep.mubr.msk.f32.mxu0 %vm5433_vm0, %v6492_v42  ;;  %v2660_v30 = vld [vmem:[#allocation2 + $0xda] sm:$0xff] }
 0x28a   :  { %v4532_v53 = vpop.f32.mrf.mxu1  ;;  %v4639_v4 = vpop.f32.mrf.mxu0  ;;  %5194 = vmatpush3.msra.mxu0 %v3344_v57 }
 0x28b   :  { %v6531_v9 = vadd.f32 %v1616_v1, %v1378_v59  ;;  %5195 = vmatprep.subr.mxu0 %v6492_v42 }
 0x28c   :  { %v1314_v2 = vpop.f32.mrf.mxu1  ;;  %v1621_v58 = vpop.f32.mrf.mxu0  ;;  %4956 = vmatmul.mubr.f32.gmra.mxu1 %v6317_v32  ;;  %5063 = vmatmul.mubr.f32.gmra.mxu0 %v2655_v23 }
 0x28d   :  { %v1379_v20 = vadd.f32 %v1314_v2, %v6311_v25  ;;  %4958 = vmatprep.mubr.msk.f32.mxu1 %vm5433_vm0, %v6492_v42  ;;  %5065 = vmatprep.mubr.msk.f32.mxu0 %vm5433_vm0, %v6492_v42 }
 0x28e   :  { %v4535_v12 = vpop.f32.mrf.mxu1  ;;  %v4642_v3 = vpop.f32.mrf.mxu0 }
 0x28f   :  { %v6540_v62 = vadd.f32 %v1621_v58, %v1379_v20  ;;  %v2943_v20 = vld [vmem:[#allocation2 + $0x1b] sm:$0xff] }
 0x290   :  { %v1319_v40 = vpop.f32.mrf.mxu1  ;;  %v1626_v6 = vpop.f32.mrf.mxu0  ;;  %4959 = vmatmul.mubr.f32.gmra.mxu1 %v6326_v49  ;;  %5066 = vmatmul.mubr.f32.gmra.mxu0 %v2656_v39  ;;  %v3343_v12 = vld [vmem:[#allocation9 + $0x58] sm:$0xff] }
 0x291   :  { %v1380_v32 = vadd.f32 %v1319_v40, %v6320_v38  ;;  %4961 = vmatprep.mubr.msk.f32.mxu1 %vm5433_vm0, %v6492_v42  ;;  %5068 = vmatprep.mubr.msk.f32.mxu0 %vm5433_vm0, %v6492_v42 }
 0x292   :  { %v4538_v25 = vpop.f32.mrf.mxu1  ;;  %v4645_v7 = vpop.f32.mrf.mxu0  ;;  %5196 = vmatpush3.msra.mxu0 %v3343_v12 }
 0x293   :  { %v6548_v15 = vadd.f32 %v1626_v6, %v1380_v32  ;;  %5197 = vmatprep.subr.mxu0 %v6492_v42  ;;  %v2944_v32 = vld [vmem:[#allocation2 + $0x23] sm:$0xff]  ;;  %v3342_v25 = vld [vmem:[#allocation9 + $0x50] sm:$0xff] }
 0x294   :  { %v1324_v52 = vpop.f32.mrf.mxu1  ;;  %v1631_v24 = vpop.f32.mrf.mxu0  ;;  %4962 = vmatmul.mubr.f32.gmra.mxu1 %v6335_v14  ;;  %5069 = vmatmul.mubr.f32.gmra.mxu0 %v2657_v41 }
 0x295   :  { %v1381_v38 = vadd.f32 %v1324_v52, %v6329_v55  ;;  %4964 = vmatprep.mubr.msk.f32.mxu1 %vm5433_vm0, %v6492_v42  ;;  %5071 = vmatprep.mubr.msk.f32.mxu0 %vm5433_vm0, %v6492_v42 }
 0x296   :  { %v4541_v49 = vpop.f32.mrf.mxu1  ;;  %v4648_v36 = vpop.f32.mrf.mxu0  ;;  %5198 = vmatpush3.msra.mxu0 %v3342_v25 }
 0x297   :  { %v6557_v16 = vadd.f32 %v1631_v24, %v1381_v38  ;;  %5199 = vmatprep.subr.mxu0 %v6492_v42  ;;  %v2945_v49 = vld [vmem:[#allocation2 + $0x2b] sm:$0xff] }
 0x298   :  { %v1329_v44 = vpop.f32.mrf.mxu1  ;;  %v1636_v60 = vpop.f32.mrf.mxu0  ;;  %4965 = vmatmul.mubr.f32.gmra.mxu1 %v6344_v31  ;;  %5072 = vmatmul.mubr.f32.gmra.mxu0 %v2658_v29 }
 0x299   :  { %v1382_v14 = vadd.f32 %v1329_v44, %v6338_v13  ;;  %4967 = vmatprep.mubr.msk.f32.mxu1 %vm5433_vm0, %v6492_v42  ;;  %5074 = vmatprep.mubr.msk.f32.mxu0 %vm5433_vm0, %v6492_v42 }
 0x29a   :  { %v4544_v55 = vpop.f32.mrf.mxu1  ;;  %v4651_v48 = vpop.f32.mrf.mxu0 }
 0x29b   :  { %v6565_v17 = vadd.f32 %v1636_v60, %v1382_v14  ;;  %v2946_v14 = vld [vmem:[#allocation2 + $0x33] sm:$0xff] }
 0x29c   :  { %v1823_v51 = vpop.f32.mrf.mxu1  ;;  %v2130_v31 = vpop.f32.mrf.mxu0  ;;  %4968 = vmatmul.mubr.f32.gmra.mxu1 %v6354_v18  ;;  %5075 = vmatmul.mubr.f32.gmra.mxu0 %v2659_v10  ;;  %v3341_v55 = vld [vmem:[#allocation9 + $0x48] sm:$0xff] }
 0x29d   :  { %v1972_v13 = vadd.f32 %v1823_v51, %v6352_v50  ;;  %4970 = vmatprep.mubr.msk.f32.mxu1 %vm5433_vm0, %v6492_v42  ;;  %5077 = vmatprep.mubr.msk.f32.mxu0 %vm5433_vm0, %v6492_v42 }
 0x29e   :  { %v4686_v1 = vpop.f32.mrf.mxu1  ;;  %v4793_v59 = vpop.f32.mrf.mxu0  ;;  %5200 = vmatpush3.msra.mxu0 %v3341_v55 }
 0x29f   :  { %v6574_v53 = vadd.f32 %v2130_v31, %v1972_v13  ;;  %5201 = vmatprep.subr.mxu0 %v6492_v42  ;;  %v2947_v13 = vld [vmem:[#allocation2 + $0x3b] sm:$0xff] }
 0x2a0   :  { %v1828_v4 = vpop.f32.mrf.mxu1  ;;  %v2135_v18 = vpop.f32.mrf.mxu0  ;;  %4971 = vmatmul.mubr.f32.gmra.mxu1 %v2353_v46  ;;  %5078 = vmatmul.mubr.f32.gmra.mxu0 %v2660_v30  ;;  %v3340_v46 = vld [vmem:[#allocation9 + $0x40] sm:$0xff] }
 0x2a1   :  { %v1973_v50 = vadd.f32 %v1828_v4, %v6362_v27  ;;  %5112 = vmatprep.mubr.msk.f32.mxu1 %vm5433_vm0, %v6492_v42  ;;  %5219 = vmatprep.mubr.msk.f32.mxu0 %vm5433_vm0, %v6492_v42 }
 0x2a2   :  { %v4689_v23 = vpop.f32.mrf.mxu1  ;;  %v4796_v2 = vpop.f32.mrf.mxu0  ;;  %5202 = vmatpush3.msra.mxu0 %v3340_v46 }
 0x2a3   :  { %v6582_v58 = vadd.f32 %v2135_v18, %v1973_v50  ;;  %5203 = vmatprep.subr.mxu0 %v6492_v42  ;;  %v2948_v50 = vld [vmem:[#allocation2 + $0x43] sm:$0xff] }
 0x2a4   :  { %v1833_v3 = vpop.f32.mrf.mxu1  ;;  %v2140_v39 = vpop.f32.mrf.mxu0  ;;  %5113 = vmatmul.mubr.f32.vlgmr.msra.gmra.mxu1 %v2943_v20 }
 0x2a5   :  { %v1974_v56 = vadd.f32 %v1833_v3, %v6371_v54  ;;  %5115 = vmatprep.mubr.msk.f32.mxu1 %vm5433_vm0, %v6492_v42 }
 0x2a6   :  { %v4692_v27 = vpop.f32.mrf.mxu1  ;;  %v4799_v40 = vpop.f32.mrf.mxu0 }
 0x2a7   :  { %v6588_v6 = vadd.f32 %v2140_v39, %v1974_v56  ;;  %v2949_v39 = vld [vmem:[#allocation2 + $0x4b] sm:$0xff]  ;;  %v3339_v56 = vld [vmem:[#allocation9 + $0x38] sm:$0xff] }
 0x2a8   :  { %v1838_v7 = vpop.f32.mrf.mxu1  ;;  %v2145_v41 = vpop.f32.mrf.mxu0  ;;  %5116 = vmatmul.mubr.f32.gmra.mxu1 %v2944_v32  ;;  %5204 = vmatpush3.msra.mxu0 %v3339_v56 }
 0x2a9   :  { %v1975_v52 = vadd.f32 %v1838_v7, %v6380_v21  ;;  %5118 = vmatprep.mubr.msk.f32.mxu1 %vm5433_vm0, %v6492_v42  ;;  %5205 = vmatprep.subr.mxu0 %v6492_v42 }
 0x2aa   :  { %v4695_v54 = vpop.f32.mrf.mxu1  ;;  %v4802_v24 = vpop.f32.mrf.mxu0 }
 0x2ab   :  { %v6594_v38 = vadd.f32 %v2145_v41, %v1975_v52  ;;  %v2950_v41 = vld [vmem:[#allocation2 + $0x53] sm:$0xff] }
 0x2ac   :  { %v1843_v36 = vpop.f32.mrf.mxu1  ;;  %v2150_v29 = vpop.f32.mrf.mxu0  ;;  %5119 = vmatmul.mubr.f32.gmra.mxu1 %v2945_v49 }
 0x2ad   :  { %v1976_v0 = vadd.f32 %v1843_v36, %v6389_v43  ;;  %5121 = vmatprep.mubr.msk.f32.mxu1 %vm5433_vm0, %v6492_v42 }
 0x2ae   :  { %v4698_v44 = vpop.f32.mrf.mxu1  ;;  %v4805_v21 = vpop.f32.mrf.mxu0 }
 0x2af   :  { %v6599_v60 = vadd.f32 %v2150_v29, %v1976_v0  ;;  %v2951_v29 = vld [vmem:[#allocation2 + $0x5b] sm:$0xff] }
 0x2b0   :  { %v1848_v48 = vpop.f32.mrf.mxu1  ;;  %v2155_v10 = vpop.f32.mrf.mxu0  ;;  %5122 = vmatmul.mubr.f32.gmra.mxu1 %v2946_v14  ;;  %v3338_v0 = vld [vmem:[#allocation9 + $0x30] sm:$0xff] }
 0x2b1   :  { %v1977_v57 = vadd.f32 %v1848_v48, %v6398_v22  ;;  %5124 = vmatprep.mubr.msk.f32.mxu1 %vm5433_vm0, %v6492_v42  ;;  %5206 = vmatpush3.msra.mxu0 %v3338_v0 }
 0x2b2   :  { %v4701_v43 = vpop.f32.mrf.mxu1  ;;  %v4808_v51 = vpop.f32.mrf.mxu0  ;;  %5207 = vmatprep.subr.mxu0 %v6492_v42 }
 0x2b3   :  { %v6605_v31 = vadd.f32 %v2155_v10, %v1977_v57  ;;  %v2952_v10 = vld [vmem:[#allocation2 + $0x63] sm:$0xff]  ;;  %v3337_v57 = vld [vmem:[#allocation9 + $0x28] sm:$0xff] }
 0x2b4   :  { %v1853_v30 = vpop.f32.mrf.mxu1  ;;  %v2160_v1 = vpop.f32.mrf.mxu0  ;;  %5125 = vmatmul.mubr.f32.gmra.mxu1 %v2947_v13  ;;  %5208 = vmatpush3.msra.mxu0 %v3337_v57 }
 0x2b5   :  { %v1978_v59 = vadd.f32 %v1853_v30, %v6407_v11  ;;  %5127 = vmatprep.mubr.msk.f32.mxu1 %vm5433_vm0, %v6492_v42  ;;  %5209 = vmatprep.subr.mxu0 %v6492_v42 }
 0x2b6   :  { %v4704_v22 = vpop.f32.mrf.mxu1  ;;  %v4811_v4 = vpop.f32.mrf.mxu0 }
 0x2b7   :  { %v6611_v18 = vadd.f32 %v2160_v1, %v1978_v59  ;;  %v2953_v1 = vld [vmem:[#allocation2 + $0x6b] sm:$0xff] }
 0x2b8   :  { %v1858_v23 = vpop.f32.mrf.mxu1  ;;  %v2165_v2 = vpop.f32.mrf.mxu0  ;;  %5128 = vmatmul.mubr.f32.gmra.mxu1 %v2948_v50 }
 0x2b9   :  { %v1979_v20 = vadd.f32 %v1858_v23, %v6416_v19  ;;  %5130 = vmatprep.mubr.msk.f32.mxu1 %vm5433_vm0, %v6492_v42 }
 0x2ba   :  { %v4707_v12 = vpop.f32.mrf.mxu1  ;;  %v4814_v11 = vpop.f32.mrf.mxu0 }
 0x2bb   :  { %v6616_v3 = vadd.f32 %v2165_v2, %v1979_v20  ;;  %v2954_v2 = vld [vmem:[#allocation2 + $0x73] sm:$0xff]  ;;  %v3336_v20 = vld [vmem:[#allocation9 + $0x20] sm:$0xff] }
 0x2bc   :  { %v1863_v27 = vpop.f32.mrf.mxu1  ;;  %v2170_v40 = vpop.f32.mrf.mxu0  ;;  %5131 = vmatmul.mubr.f32.gmra.mxu1 %v2949_v39  ;;  %5210 = vmatpush3.msra.mxu0 %v3336_v20 }
 0x2bd   :  { %v1980_v32 = vadd.f32 %v1863_v27, %v6425_v5  ;;  %5133 = vmatprep.mubr.msk.f32.mxu1 %vm5433_vm0, %v6492_v42  ;;  %5211 = vmatprep.subr.mxu0 %v6492_v42 }
 0x2be   :  { %v4710_v19 = vpop.f32.mrf.mxu1  ;;  %v4817_v25 = vpop.f32.mrf.mxu0 }
 0x2bf   :  { %v6622_v7 = vadd.f32 %v2170_v40, %v1980_v32  ;;  %v2955_v40 = vld [vmem:[#allocation2 + $0x7b] sm:$0xff] }
 0x2c0   :  { %v1868_v52 = vpop.f32.mrf.mxu1  ;;  %v2175_v54 = vpop.f32.mrf.mxu0  ;;  %5134 = vmatmul.mubr.f32.gmra.mxu1 %v2950_v41  ;;  %v3335_v32 = vld [vmem:[#allocation9 + $0x18] sm:$0xff] }
 0x2c1   :  { %v1981_v24 = vadd.f32 %v1868_v52, %v6434_v37  ;;  %5136 = vmatprep.mubr.msk.f32.mxu1 %vm5433_vm0, %v6492_v42  ;;  %5212 = vmatpush3.msra.mxu0 %v3335_v32 }
 0x2c2   :  { %v4713_v49 = vpop.f32.mrf.mxu1  ;;  %v4820_v5 = vpop.f32.mrf.mxu0  ;;  %5213 = vmatprep.subr.mxu0 %v6492_v42 }
 0x2c3   :  { %v6627_v36 = vadd.f32 %v2175_v54, %v1981_v24  ;;  %v2956_v24 = vld [vmem:[#allocation2 + $0x83] sm:$0xff] }
 0x2c4   :  { %v1873_v44 = vpop.f32.mrf.mxu1  ;;  %v2180_v21 = vpop.f32.mrf.mxu0  ;;  %5137 = vmatmul.mubr.f32.gmra.mxu1 %v2951_v29 }
 0x2c5   :  { %v1982_v14 = vadd.f32 %v1873_v44, %v6443_v61  ;;  %5139 = vmatprep.mubr.msk.f32.mxu1 %vm5433_vm0, %v6492_v42 }
 0x2c6   :  { %v4716_v37 = vpop.f32.mrf.mxu1  ;;  %v4823_v55 = vpop.f32.mrf.mxu0 }
 0x2c7   :  { %v6633_v48 = vadd.f32 %v2180_v21, %v1982_v14  ;;  %v2957_v21 = vld [vmem:[#allocation2 + $0x8b] sm:$0xff]  ;;  %v3334_v14 = vld [vmem:[#allocation9 + $0x10] sm:$0xff] }
 0x2c8   :  { %v1878_v43 = vpop.f32.mrf.mxu1  ;;  %v2185_v51 = vpop.f32.mrf.mxu0  ;;  %5140 = vmatmul.mubr.f32.gmra.mxu1 %v2952_v10  ;;  %5214 = vmatpush3.msra.mxu0 %v3334_v14 }
 0x2c9   :  { %v1983_v13 = vadd.f32 %v1878_v43, %v6452_v45  ;;  %5142 = vmatprep.mubr.msk.f32.mxu1 %vm5433_vm0, %v6492_v42  ;;  %5215 = vmatprep.subr.mxu0 %v6492_v42 }
 0x2ca   :  { %v4719_v61 = vpop.f32.mrf.mxu1  ;;  %v4826_v46 = vpop.f32.mrf.mxu0 }
 0x2cb   :  { %v6639_v30 = vadd.f32 %v2185_v51, %v1983_v13  ;;  %v2958_v51 = vld [vmem:[#allocation2 + $0x93] sm:$0xff] }
 0x2cc   :  { %v1883_v59 = vpop.f32.mrf.mxu1  ;;  %v2190_v22 = vpop.f32.mrf.mxu0  ;;  %5143 = vmatmul.mubr.f32.gmra.mxu1 %v2953_v1  ;;  %v3333_v13 = vld [vmem:[#allocation9 + $0x8] sm:$0xff] }
 0x2cd   :  { %v1984_v4 = vadd.f32 %v1883_v59, %v6461_v28  ;;  %5145 = vmatprep.mubr.msk.f32.mxu1 %vm5433_vm0, %v6492_v42  ;;  %5216 = vmatpush3.msra.mxu0 %v3333_v13 }
 0x2ce   :  { %v4722_v50 = vpop.f32.mrf.mxu1  ;;  %v4829_v45 = vpop.f32.mrf.mxu0  ;;  %5217 = vmatprep.subr.mxu0 %v6492_v42 }
 0x2cf   :  { %v6644_v23 = vadd.f32 %v2190_v22, %v1984_v4  ;;  %v2959_v4 = vld [vmem:[#allocation2 + $0x9b] sm:$0xff] }
 0x2d0   :  { %v1888_v12 = vpop.f32.mrf.mxu1  ;;  %v2195_v11 = vpop.f32.mrf.mxu0  ;;  %5146 = vmatmul.mubr.f32.gmra.mxu1 %v2954_v2 }
 0x2d1   :  { %v1985_v39 = vadd.f32 %v1888_v12, %v6470_v47  ;;  %5148 = vmatprep.mubr.msk.f32.mxu1 %vm5433_vm0, %v6492_v42 }
 0x2d2   :  { %v4725_v28 = vpop.f32.mrf.mxu1  ;;  %v4832_v56 = vpop.f32.mrf.mxu0 }
 0x2d3   :  { %v6650_v27 = vadd.f32 %v2195_v11, %v1985_v39  ;;  %v2960_v11 = vld [vmem:[#allocation2 + $0xa3] sm:$0xff] }
 0x2d4   :  { %v1893_v19 = vpop.f32.mrf.mxu1  ;;  %v2200_v25 = vpop.f32.mrf.mxu0  ;;  %5149 = vmatmul.mubr.f32.gmra.mxu1 %v2955_v40  ;;  %v3332_v40 = vld [vmem:[#allocation9] sm:$0xff] }
 0x2d5   :  { %v1986_v41 = vadd.f32 %v1893_v19, %v6479_v63  ;;  %5151 = vmatprep.mubr.msk.f32.mxu1 %vm5433_vm0, %v6492_v42  ;;  %5218 = vmatpush3.msra.mxu0 %v3332_v40  ;;  %v2967_v40 = vld [vmem:[#allocation2 + $0xdb] sm:$0xff] }
 0x2d6   :  { %v4728_v47 = vpop.f32.mrf.mxu1  ;;  %v4835_v52 = vpop.f32.mrf.mxu0 }
 0x2d7   :  { %v6656_v54 = vadd.f32 %v2200_v25, %v1986_v41  ;;  %v2961_v25 = vld [vmem:[#allocation2 + $0xab] sm:$0xff] }
 0x2d8   :  { %v1898_v49 = vpop.f32.mrf.mxu1  ;;  %v2205_v5 = vpop.f32.mrf.mxu0  ;;  %5152 = vmatmul.mubr.f32.gmra.mxu1 %v2956_v24 }
 0x2d9   :  { %v1987_v29 = vadd.f32 %v1898_v49, %v6488_v8  ;;  %5154 = vmatprep.mubr.msk.f32.mxu1 %vm5433_vm0, %v6492_v42 }
 0x2da   :  { %v4731_v0 = vpop.f32.mrf.mxu1  ;;  %v4838_v63 = vpop.f32.mrf.mxu0 }
 0x2db   :  { %v6661_v44 = vadd.f32 %v2205_v5, %v1987_v29  ;;  %v2962_v5 = vld [vmem:[#allocation2 + $0xb3] sm:$0xff] }
 0x2dc   :  { %v1903_v37 = vpop.f32.mrf.mxu1  ;;  %v2210_v55 = vpop.f32.mrf.mxu0  ;;  %5155 = vmatmul.mubr.f32.gmra.mxu1 %v2957_v21 }
 0x2dd   :  { %v1988_v10 = vadd.f32 %v1903_v37, %v6499_v33  ;;  %5157 = vmatprep.mubr.msk.f32.mxu1 %vm5433_vm0, %v6492_v42 }
 0x2de   :  { %v4734_v8 = vpop.f32.mrf.mxu1  ;;  %v4841_v57 = vpop.f32.mrf.mxu0 }
 0x2df   :  { %v6667_v43 = vadd.f32 %v2210_v55, %v1988_v10 }
 0x2e0   :  { %v1908_v61 = vpop.f32.mrf.mxu1  ;;  %v2215_v46 = vpop.f32.mrf.mxu0  ;;  %5158 = vmatmul.mubr.f32.gmra.mxu1 %v2958_v51 }
 0x2e1   :  { %v1989_v1 = vadd.f32 %v1908_v61, %v6507_v26  ;;  %5160 = vmatprep.mubr.msk.f32.mxu1 %vm5433_vm0, %v6492_v42 }
 0x2e2   :  { %v4737_v33 = vpop.f32.mrf.mxu1  ;;  %v4844_v59 = vpop.f32.mrf.mxu0 }
 0x2e3   :  { %v6673_v22 = vadd.f32 %v2215_v46, %v1989_v1 }
 0x2e4   :  { %v1913_v50 = vpop.f32.mrf.mxu1  ;;  %v2220_v45 = vpop.f32.mrf.mxu0  ;;  %5161 = vmatmul.mubr.f32.gmra.mxu1 %v2959_v4 }
 0x2e5   :  { %v1990_v2 = vadd.f32 %v1913_v50, %v6515_v35  ;;  %5163 = vmatprep.mubr.msk.f32.mxu1 %vm5433_vm0, %v6492_v42 }
 0x2e6   :  { %v4740_v20 = vpop.f32.mrf.mxu1  ;;  %v4847_v26 = vpop.f32.mrf.mxu0 }
 0x2e7   :  { %v6678_v12 = vadd.f32 %v2220_v45, %v1990_v2 }
 0x2e8   :  { %v1918_v39 = vpop.f32.mrf.mxu1  ;;  %v2225_v28 = vpop.f32.mrf.mxu0  ;;  %5164 = vmatmul.mubr.f32.gmra.mxu1 %v2960_v11 }
 0x2e9   :  { %v1991_v56 = vadd.f32 %v1918_v39, %v6523_v34  ;;  %5166 = vmatprep.mubr.msk.f32.mxu1 %vm5433_vm0, %v6492_v42 }
 0x2ea   :  { %v4743_v32 = vpop.f32.mrf.mxu1  ;;  %v4850_v19 = vpop.f32.mrf.mxu0 }
 0x2eb   :  { %v6683_v35 = vadd.f32 %v2225_v28, %v1991_v56 }
 0x2ec   :  { %v1923_v41 = vpop.f32.mrf.mxu1  ;;  %v2230_v47 = vpop.f32.mrf.mxu0  ;;  %5167 = vmatmul.mubr.f32.gmra.mxu1 %v2961_v25 }
 0x2ed   :  { %v1992_v52 = vadd.f32 %v1923_v41, %v6531_v9  ;;  %5169 = vmatprep.mubr.msk.f32.mxu1 %vm5433_vm0, %v6492_v42  ;;  %v2963_v9 = vld [vmem:[#allocation2 + $0xbb] sm:$0xff] }
 0x2ee   :  { %v4746_v24 = vpop.f32.mrf.mxu1  ;;  %v4853_v34 = vpop.f32.mrf.mxu0 }
 0x2ef   :  { %v6688_v49 = vadd.f32 %v2230_v47, %v1992_v52 }
 0x2f0   :  { %v1928_v29 = vpop.f32.mrf.mxu1  ;;  %v2235_v0 = vpop.f32.mrf.mxu0  ;;  %5170 = vmatmul.mubr.f32.gmra.mxu1 %v2962_v5 }
 0x2f1   :  { %v1993_v63 = vadd.f32 %v1928_v29, %v6540_v62  ;;  %5172 = vmatprep.mubr.msk.f32.mxu1 %vm5433_vm0, %v6492_v42  ;;  %v2964_v62 = vld [vmem:[#allocation2 + $0xc3] sm:$0xff] }
 0x2f2   :  { %v4749_v21 = vpop.f32.mrf.mxu1  ;;  %v4856_v14 = vpop.f32.mrf.mxu0 }
 0x2f3   :  { %v6693_v37 = vadd.f32 %v2235_v0, %v1993_v63 }
 0x2f4   :  { %v1933_v55 = vpop.f32.mrf.mxu1  ;;  %v2240_v10 = vpop.f32.mrf.mxu0  ;;  %5173 = vmatmul.mubr.f32.gmra.mxu1 %v2963_v9 }
 0x2f5   :  { %v1994_v8 = vadd.f32 %v1933_v55, %v6548_v15  ;;  %5175 = vmatprep.mubr.msk.f32.mxu1 %vm5433_vm0, %v6492_v42  ;;  %v2965_v15 = vld [vmem:[#allocation2 + $0xcb] sm:$0xff] }
 0x2f6   :  { %v4752_v57 = vpop.f32.mrf.mxu1  ;;  %v4859_v51 = vpop.f32.mrf.mxu0 }
 0x2f7   :  { %v6698_v13 = vadd.f32 %v2240_v10, %v1994_v8 }
 0x2f8   :  { %v1938_v61 = vpop.f32.mrf.mxu1  ;;  %v2245_v46 = vpop.f32.mrf.mxu0  ;;  %5176 = vmatmul.mubr.f32.gmra.mxu1 %v2964_v62 }
 0x2f9   :  { %v1995_v1 = vadd.f32 %v1938_v61, %v6557_v16  ;;  %5178 = vmatprep.mubr.msk.f32.mxu1 %vm5433_vm0, %v6492_v42  ;;  %v2966_v16 = vld [vmem:[#allocation2 + $0xd3] sm:$0xff] }
 0x2fa   :  { %v4755_v33 = vpop.f32.mrf.mxu1  ;;  %v4862_v59 = vpop.f32.mrf.mxu0 }
 0x2fb   :  { %v6703_v4 = vadd.f32 %v2245_v46, %v1995_v1 }
 0x2fc   :  { %v1943_v50 = vpop.f32.mrf.mxu1  ;;  %v2250_v45 = vpop.f32.mrf.mxu0  ;;  %5179 = vmatmul.mubr.f32.gmra.mxu1 %v2965_v15 }
 0x2fd   :  { %v1996_v2 = vadd.f32 %v1943_v50, %v6565_v17  ;;  %5181 = vmatprep.mubr.msk.f32.mxu1 %vm5433_vm0, %v6492_v42 }
 0x2fe   :  { %v4758_v20 = vpop.f32.mrf.mxu1  ;;  %v4865_v26 = vpop.f32.mrf.mxu0 }
 0x2ff   :  { %v6708_v11 = vadd.f32 %v2250_v45, %v1996_v2 }
 0x300   :  { %v2437_v39 = vpop.f32.mrf.mxu1  ;;  %v2744_v28 = vpop.f32.mrf.mxu0  ;;  %5182 = vmatmul.mubr.f32.gmra.mxu1 %v2966_v16 }
 0x301   :  { %v2586_v56 = vadd.f32 %v2437_v39, %v6574_v53  ;;  %5184 = vmatprep.mubr.msk.f32.mxu1 %vm5433_vm0, %v6492_v42 }
 0x302   :  { %v4900_v32 = vpop.f32.mrf.mxu1  ;;  %v5007_v19 = vpop.f32.mrf.mxu0 }
 0x303   :  { %v6713_v17 = vadd.f32 %v2744_v28, %v2586_v56 }
 0x304   :  { %v2442_v25 = vpop.f32.mrf.mxu1  ;;  %v2749_v41 = vpop.f32.mrf.mxu0  ;;  %5185 = vmatmul.mubr.f32.gmra.mxu1 %v2967_v40 }
 0x305   :  { %v2587_v47 = vadd.f32 %v2442_v25, %v6582_v58 }
 0x306   :  { %v4903_v52 = vpop.f32.mrf.mxu1  ;;  %v5010_v24 = vpop.f32.mrf.mxu0 }
 0x307   :  { %v6716_v34 = vadd.f32 %v2749_v41, %v2587_v47 }
 0x308   :  { %v2447_v5 = vpop.f32.mrf.mxu1  ;;  %v2754_v29 = vpop.f32.mrf.mxu0 }
 0x309   :  { %v2588_v53 = vadd.f32 %v2447_v5, %v6588_v6 }
 0x30a   :  { %v4906_v0 = vpop.f32.mrf.mxu1  ;;  %v5013_v42 = vpop.f32.mrf.mxu0 }
 0x30b   :  { %v6719_v63 = vadd.f32 %v2754_v29, %v2588_v53 }
 0x30c   :  { %v2452_v21 = vpop.f32.mrf.mxu1  ;;  %v2759_v14 = vpop.f32.mrf.mxu0 }
 0x30d   :  { %v2589_v9 = vadd.f32 %v2452_v21, %v6594_v38 }
 0x30e   :  { %v4909_v55 = vpop.f32.mrf.mxu1  ;;  %v5016_v10 = vpop.f32.mrf.mxu0 }
 0x30f   :  { %v6722_v8 = vadd.f32 %v2759_v14, %v2589_v9 }
 0x310   :  { %v2457_v58 = vpop.f32.mrf.mxu1  ;;  %v2764_v57 = vpop.f32.mrf.mxu0 }
 0x311   :  { %v2590_v51 = vadd.f32 %v2457_v58, %v6599_v60 }
 0x312   :  { %v4912_v62 = vpop.f32.mrf.mxu1  ;;  %v5019_v61 = vpop.f32.mrf.mxu0 }
 0x313   :  { %v6725_v46 = vadd.f32 %v2764_v57, %v2590_v51 }
 0x314   :  { %v2462_v6 = vpop.f32.mrf.mxu1  ;;  %v2769_v1 = vpop.f32.mrf.mxu0 }
 0x315   :  { %v2591_v33 = vadd.f32 %v2462_v6, %v6605_v31 }
 0x316   :  { %v4915_v59 = vpop.f32.mrf.mxu1  ;;  %v5022_v15 = vpop.f32.mrf.mxu0 }
 0x317   :  { %v6728_v50 = vadd.f32 %v2769_v1, %v2591_v33 }
 0x318   :  { %v2467_v38 = vpop.f32.mrf.mxu1  ;;  %v2774_v45 = vpop.f32.mrf.mxu0 }
 0x319   :  { %v2592_v2 = vadd.f32 %v2467_v38, %v6611_v18 }
 0x31a   :  { %v4918_v20 = vpop.f32.mrf.mxu1  ;;  %v5025_v26 = vpop.f32.mrf.mxu0 }
 0x31b   :  { %v6731_v16 = vadd.f32 %v2774_v45, %v2592_v2 }
 0x31c   :  { %v2472_v60 = vpop.f32.mrf.mxu1  ;;  %v2779_v39 = vpop.f32.mrf.mxu0 }
 0x31d   :  { %v2593_v28 = vadd.f32 %v2472_v60, %v6616_v3 }
 0x31e   :  { %v4921_v56 = vpop.f32.mrf.mxu1  ;;  %v5028_v40 = vpop.f32.mrf.mxu0 }
 0x31f   :  { %v6734_v32 = vadd.f32 %v2779_v39, %v2593_v28 }
 0x320   :  { %v2477_v31 = vpop.f32.mrf.mxu1  ;;  %v2784_v19 = vpop.f32.mrf.mxu0 }
 0x321   :  { %v2594_v25 = vadd.f32 %v2477_v31, %v6622_v7 }
 0x322   :  { %v4924_v41 = vpop.f32.mrf.mxu1  ;;  %v5031_v47 = vpop.f32.mrf.mxu0 }
 0x323   :  { %v6737_v52 = vadd.f32 %v2784_v19, %v2594_v25 }
 0x324   :  { %v2482_v18 = vpop.f32.mrf.mxu1  ;;  %v2789_v24 = vpop.f32.mrf.mxu0 }
 0x325   :  { %v2595_v5 = vadd.f32 %v2482_v18, %v6627_v36 }
 0x326   :  { %v4927_v29 = vpop.f32.mrf.mxu1  ;;  %v5034_v53 = vpop.f32.mrf.mxu0 }
 0x327   :  { %v6740_v0 = vadd.f32 %v2789_v24, %v2595_v5 }
 0x328   :  { %v2487_v3 = vpop.f32.mrf.mxu1  ;;  %v2794_v42 = vpop.f32.mrf.mxu0 }
 0x329   :  { %v2596_v21 = vadd.f32 %v2487_v3, %v6633_v48 }
 0x32a   :  { %v4930_v14 = vpop.f32.mrf.mxu1  ;;  %v5037_v9 = vpop.f32.mrf.mxu0 }
 0x32b   :  { %v6743_v55 = vadd.f32 %v2794_v42, %v2596_v21 }
 0x32c   :  { %v2492_v7 = vpop.f32.mrf.mxu1  ;;  %v2799_v10 = vpop.f32.mrf.mxu0 }
 0x32d   :  { %v2597_v58 = vadd.f32 %v2492_v7, %v6639_v30 }
 0x32e   :  { %v4933_v57 = vpop.f32.mrf.mxu1  ;;  %v5040_v51 = vpop.f32.mrf.mxu0 }
 0x32f   :  { %v6746_v62 = vadd.f32 %v2799_v10, %v2597_v58 }
 0x330   :  { %v2497_v36 = vpop.f32.mrf.mxu1  ;;  %v2804_v61 = vpop.f32.mrf.mxu0 }
 0x331   :  { %v2598_v6 = vadd.f32 %v2497_v36, %v6644_v23 }
 0x332   :  { %v4936_v1 = vpop.f32.mrf.mxu1  ;;  %v5043_v33 = vpop.f32.mrf.mxu0 }
 0x333   :  { %v6749_v59 = vadd.f32 %v2804_v61, %v2598_v6 }
 0x334   :  { %v2502_v48 = vpop.f32.mrf.mxu1  ;;  %v2809_v15 = vpop.f32.mrf.mxu0 }
 0x335   :  { %v2599_v38 = vadd.f32 %v2502_v48, %v6650_v27 }
 0x336   :  { %v4939_v45 = vpop.f32.mrf.mxu1  ;;  %v5046_v2 = vpop.f32.mrf.mxu0 }
 0x337   :  { %v6752_v20 = vadd.f32 %v2809_v15, %v2599_v38 }
 0x338   :  { %v2507_v30 = vpop.f32.mrf.mxu1  ;;  %v2814_v26 = vpop.f32.mrf.mxu0 }
 0x339   :  { %v2600_v60 = vadd.f32 %v2507_v30, %v6656_v54 }
 0x33a   :  { %v4942_v39 = vpop.f32.mrf.mxu1  ;;  %v5049_v28 = vpop.f32.mrf.mxu0 }
 0x33b   :  { %v6755_v56 = vadd.f32 %v2814_v26, %v2600_v60 }
 0x33c   :  { %v2512_v23 = vpop.f32.mrf.mxu1  ;;  %v2819_v40 = vpop.f32.mrf.mxu0 }
 0x33d   :  { %v2601_v31 = vadd.f32 %v2512_v23, %v6661_v44 }
 0x33e   :  { %v4945_v19 = vpop.f32.mrf.mxu1  ;;  %v5052_v25 = vpop.f32.mrf.mxu0 }
 0x33f   :  { %v6758_v41 = vadd.f32 %v2819_v40, %v2601_v31 }
 0x340   :  { %v2517_v27 = vpop.f32.mrf.mxu1  ;;  %v2824_v47 = vpop.f32.mrf.mxu0 }
 0x341   :  { %v2602_v18 = vadd.f32 %v2517_v27, %v6667_v43 }
 0x342   :  { %v4948_v24 = vpop.f32.mrf.mxu1  ;;  %v5055_v5 = vpop.f32.mrf.mxu0 }
 0x343   :  { %v6761_v29 = vadd.f32 %v2824_v47, %v2602_v18 }
 0x344   :  { %v2522_v54 = vpop.f32.mrf.mxu1  ;;  %v2829_v53 = vpop.f32.mrf.mxu0 }
 0x345   :  { %v2603_v3 = vadd.f32 %v2522_v54, %v6673_v22 }
 0x346   :  { %v4951_v42 = vpop.f32.mrf.mxu1  ;;  %v5058_v21 = vpop.f32.mrf.mxu0 }
 0x347   :  { %v6764_v14 = vadd.f32 %v2829_v53, %v2603_v3  ;;  %v6790_v21 = vld [vmem:[%s7008_s5] ss:$0 sm:$0xff]  ;;  %s5401_s5 = scalar_lea.vmem %s3651_s28, 3200 }
 0x348   :  { %v2527_v44 = vpop.f32.mrf.mxu1  ;;  %v2834_v9 = vpop.f32.mrf.mxu0  ;;  %p5402_p1 = scmp.ne.s32.totalorder %s3651_s28, %s5401_s5  ;;  %p5407_p3 = scmp.lt.s32.totalorder %s5401_s5, %s5401_s5 }
 0x349   :  { %v2604_v7 = vadd.f32 %v2527_v44, %v6678_v12 }
 0x34a   :  { %v4954_v10 = vpop.f32.mrf.mxu1  ;;  %v5061_v58 = vpop.f32.mrf.mxu0  ;;  %p5408_p4 = por %p5407_p3, %p5406_p2 }
 0x34b   :  { %v6767_v57 = vadd.f32 %v2834_v9, %v2604_v7 }
 0x34c   :  { %v2532_v43 = vpop.f32.mrf.mxu1  ;;  %v2839_v51 = vpop.f32.mrf.mxu0  ;;  %p5409_p5 = pnand %p5408_p4, %p5402_p1 }
 0x34d   :  { %v2605_v36 = vadd.f32 %v2532_v43, %v6683_v35 }
 0x34e   :  { %v4957_v61 = vpop.f32.mrf.mxu1  ;;  %v5064_v6 = vpop.f32.mrf.mxu0 }
 0x34f   :  { %v6770_v1 = vadd.f32 %v2839_v51, %v2605_v36  ;;  %v6796_v36 = vld [vmem:[#allocation2] sm:$0xff] }
 0x350   :  { %v2537_v22 = vpop.f32.mrf.mxu1  ;;  %v2844_v33 = vpop.f32.mrf.mxu0 }
 0x351   :  { %v2606_v48 = vadd.f32 %v2537_v22, %v6688_v49 }
 0x352   :  { %v4960_v15 = vpop.f32.mrf.mxu1  ;;  %v5067_v38 = vpop.f32.mrf.mxu0 }
 0x353   :  { %v6773_v45 = vadd.f32 %v2844_v33, %v2606_v48 }
 0x354   :  { %v2542_v12 = vpop.f32.mrf.mxu1  ;;  %v2849_v2 = vpop.f32.mrf.mxu0 }
 0x355   :  { %v2607_v30 = vadd.f32 %v2542_v12, %v6693_v37 }
 0x356   :  { %v4963_v26 = vpop.f32.mrf.mxu1  ;;  %v5070_v60 = vpop.f32.mrf.mxu0 }
 0x357   :  { %v6776_v39 = vadd.f32 %v2849_v2, %v2607_v30 }
 0x358   :  { %v2547_v35 = vpop.f32.mrf.mxu1  ;;  %v2854_v28 = vpop.f32.mrf.mxu0 }
 0x359   :  { %v2608_v23 = vadd.f32 %v2547_v35, %v6698_v13 }
 0x35a   :  { %v4966_v40 = vpop.f32.mrf.mxu1  ;;  %v5073_v31 = vpop.f32.mrf.mxu0 }
 0x35b   :  { %v6779_v19 = vadd.f32 %v2854_v28, %v2608_v23 }
 0x35c   :  { %v2552_v49 = vpop.f32.mrf.mxu1  ;;  %v2859_v25 = vpop.f32.mrf.mxu0 }
 0x35d   :  { %v2609_v27 = vadd.f32 %v2552_v49, %v6703_v4 }
 0x35e   :  { %v4969_v47 = vpop.f32.mrf.mxu1  ;;  %v5076_v18 = vpop.f32.mrf.mxu0 }
 0x35f   :  { %v6782_v24 = vadd.f32 %v2859_v25, %v2609_v27 }
 0x360   :  { %v2557_v37 = vpop.f32.mrf.mxu1  ;;  %v2864_v5 = vpop.f32.mrf.mxu0 }
 0x361   :  { %v2610_v54 = vadd.f32 %v2557_v37, %v6708_v11 }
 0x362   :  { %v4972_v53 = vpop.f32.mrf.mxu1  ;;  %v5079_v3 = vpop.f32.mrf.mxu0 }
 0x363   :  { %v6785_v42 = vadd.f32 %v2864_v5, %v2610_v54 }
 0x364   :  { %v3051_v13 = vpop.f32.mrf.mxu1 }
 0x365   :  { %v3200_v4 = vadd.f32 %v3051_v13, %v6713_v17 }
 0x366   :  { %v5114_v44 = vpop.f32.mrf.mxu1 }
 0x367   :  { %v3282_v9 = vadd.f32 %v6790_v21, %v3200_v4 }
 0x368   :  { %v3056_v7 = vpop.f32.mrf.mxu1 }
 0x369   :  { %v3307_v10 = vmax.f32 %v3282_v9, 0.0  ;;  %v3201_v58 = vadd.f32 %v3056_v7, %v6716_v34 }
 0x36a   :  { %v5117_v11 = vpop.f32.mrf.mxu1 }
 0x36b   :  { %v3283_v43 = vadd.f32 %v6790_v21, %v3201_v58  ;;  %5220 = vmatmul.mubr.f32.vlgmr.msra.gmra.mxu0 %v3307_v10 }
 0x36c   :  { %v3061_v51 = vpop.f32.mrf.mxu1  ;;  %5222 = vmatprep.mubr.msk.f32.mxu0 %vm5433_vm0, %v6796_v36 }
 0x36d   :  { %v3308_v61 = vmax.f32 %v3283_v43, 0.0  ;;  %v3202_v17 = vadd.f32 %v3061_v51, %v6719_v63 }
 0x36e   :  { %v5120_v6 = vpop.f32.mrf.mxu1 }
 0x36f   :  { %v3284_v22 = vadd.f32 %v6790_v21, %v3202_v17  ;;  %5223 = vmatmul.mubr.f32.gmra.mxu0 %v3308_v61 }
 0x370   :  { %v3066_v33 = vpop.f32.mrf.mxu1  ;;  %5225 = vmatprep.mubr.msk.f32.mxu0 %vm5433_vm0, %v6796_v36 }
 0x371   :  { %v3309_v34 = vmax.f32 %v3284_v22, 0.0  ;;  %v3203_v48 = vadd.f32 %v3066_v33, %v6722_v8 }
 0x372   :  { %v5123_v15 = vpop.f32.mrf.mxu1 }
 0x373   :  { %v3285_v38 = vadd.f32 %v6790_v21, %v3203_v48  ;;  %5226 = vmatmul.mubr.f32.gmra.mxu0 %v3309_v34 }
 0x374   :  { %v3071_v12 = vpop.f32.mrf.mxu1  ;;  %5228 = vmatprep.mubr.msk.f32.mxu0 %vm5433_vm0, %v6796_v36 }
 0x375   :  { %v3310_v63 = vmax.f32 %v3285_v38, 0.0  ;;  %v3204_v2 = vadd.f32 %v3071_v12, %v6725_v46 }
 0x376   :  { %v5126_v30 = vpop.f32.mrf.mxu1 }
 0x377   :  { %v3286_v26 = vadd.f32 %v6790_v21, %v3204_v2  ;;  %5229 = vmatmul.mubr.f32.gmra.mxu0 %v3310_v63 }
 0x378   :  { %v3076_v60 = vpop.f32.mrf.mxu1  ;;  %5231 = vmatprep.mubr.msk.f32.mxu0 %vm5433_vm0, %v6796_v36 }
 0x379   :  { %v3311_v8 = vmax.f32 %v3286_v26, 0.0  ;;  %v3205_v35 = vadd.f32 %v3076_v60, %v6728_v50 }
 0x37a   :  { %v5129_v28 = vpop.f32.mrf.mxu1 }
 0x37b   :  { %v3287_v23 = vadd.f32 %v6790_v21, %v3205_v35  ;;  %5232 = vmatmul.mubr.f32.gmra.mxu0 %v3311_v8 }
 0x37c   :  { %v3081_v40 = vpop.f32.mrf.mxu1  ;;  %5234 = vmatprep.mubr.msk.f32.mxu0 %vm5433_vm0, %v6796_v36 }
 0x37d   :  { %v3312_v46 = vmax.f32 %v3287_v23, 0.0  ;;  %v3206_v31 = vadd.f32 %v3081_v40, %v6731_v16 }
 0x37e   :  { %v5132_v49 = vpop.f32.mrf.mxu1 }
 0x37f   :  { %v3288_v25 = vadd.f32 %v6790_v21, %v3206_v31  ;;  %5235 = vmatmul.mubr.f32.gmra.mxu0 %v3312_v46 }
 0x380   :  { %v3086_v27 = vpop.f32.mrf.mxu1  ;;  %5237 = vmatprep.mubr.msk.f32.mxu0 %vm5433_vm0, %v6796_v36 }
 0x381   :  { %v3313_v50 = vmax.f32 %v3288_v25, 0.0  ;;  %v3207_v47 = vadd.f32 %v3086_v27, %v6734_v32 }
 0x382   :  { %v5135_v18 = vpop.f32.mrf.mxu1 }
 0x383   :  { %v3289_v37 = vadd.f32 %v6790_v21, %v3207_v47  ;;  %5238 = vmatmul.mubr.f32.gmra.mxu0 %v3313_v50 }
 0x384   :  { %v3091_v5 = vpop.f32.mrf.mxu1  ;;  %5240 = vmatprep.mubr.msk.f32.mxu0 %vm5433_vm0, %v6796_v36 }
 0x385   :  { %v3314_v16 = vmax.f32 %v3289_v37, 0.0  ;;  %v3208_v54 = vadd.f32 %v3091_v5, %v6737_v52 }
 0x386   :  { %v5138_v53 = vpop.f32.mrf.mxu1 }
 0x387   :  { %v3290_v3 = vadd.f32 %v6790_v21, %v3208_v54  ;;  %5241 = vmatmul.mubr.f32.gmra.mxu0 %v3314_v16 }
 0x388   :  { %v3096_v13 = vpop.f32.mrf.mxu1  ;;  %5243 = vmatprep.mubr.msk.f32.mxu0 %vm5433_vm0, %v6796_v36 }
 0x389   :  { %v3315_v32 = vmax.f32 %v3290_v3, 0.0  ;;  %v3209_v4 = vadd.f32 %v3096_v13, %v6740_v0 }
 0x38a   :  { %v5141_v44 = vpop.f32.mrf.mxu1 }
 0x38b   :  { %v3291_v9 = vadd.f32 %v6790_v21, %v3209_v4  ;;  %5244 = vmatmul.mubr.f32.gmra.mxu0 %v3315_v32 }
 0x38c   :  { %v3101_v7 = vpop.f32.mrf.mxu1  ;;  %5246 = vmatprep.mubr.msk.f32.mxu0 %vm5433_vm0, %v6796_v36 }
 0x38d   :  { %v3316_v52 = vmax.f32 %v3291_v9, 0.0  ;;  %v3210_v10 = vadd.f32 %v3101_v7, %v6743_v55 }
 0x38e   :  { %v5144_v58 = vpop.f32.mrf.mxu1 }
 0x38f   :  { %v3292_v11 = vadd.f32 %v6790_v21, %v3210_v10  ;;  %5247 = vmatmul.mubr.f32.gmra.mxu0 %v3316_v52 }
 0x390   :  { %v3106_v43 = vpop.f32.mrf.mxu1  ;;  %5249 = vmatprep.mubr.msk.f32.mxu0 %vm5433_vm0, %v6796_v36 }
 0x391   :  { %v3317_v0 = vmax.f32 %v3292_v11, 0.0  ;;  %v3211_v51 = vadd.f32 %v3106_v43, %v6746_v62 }
 0x392   :  { %v5147_v61 = vpop.f32.mrf.mxu1 }
 0x393   :  { %v3293_v17 = vadd.f32 %v6790_v21, %v3211_v51  ;;  %5250 = vmatmul.mubr.f32.gmra.mxu0 %v3317_v0 }
 0x394   :  { %v3111_v6 = vpop.f32.mrf.mxu1  ;;  %5252 = vmatprep.mubr.msk.f32.mxu0 %vm5433_vm0, %v6796_v36 }
 0x395   :  { %v3318_v55 = vmax.f32 %v3293_v17, 0.0  ;;  %v3212_v22 = vadd.f32 %v3111_v6, %v6749_v59 }
 0x396   :  { %v5150_v33 = vpop.f32.mrf.mxu1 }
 0x397   :  { %v3294_v34 = vadd.f32 %v6790_v21, %v3212_v22  ;;  %5253 = vmatmul.mubr.f32.gmra.mxu0 %v3318_v55 }
 0x398   :  { %v3116_v48 = vpop.f32.mrf.mxu1  ;;  %5255 = vmatprep.mubr.msk.f32.mxu0 %vm5433_vm0, %v6796_v36 }
 0x399   :  { %v3319_v62 = vmax.f32 %v3294_v34, 0.0  ;;  %v3213_v15 = vadd.f32 %v3116_v48, %v6752_v20 }
 0x39a   :  { %v5153_v38 = vpop.f32.mrf.mxu1 }
 0x39b   :  { %v3295_v12 = vadd.f32 %v6790_v21, %v3213_v15  ;;  %5256 = vmatmul.mubr.f32.gmra.mxu0 %v3319_v62  ;;  %v3545_v15 = vld [vmem:[%s7003_s0] sm:$0xff] }
 0x39c   :  { %v3121_v63 = vpop.f32.mrf.mxu1  ;;  %5258 = vmatprep.mubr.msk.f32.mxu0 %vm5433_vm0, %v6796_v36 }
 0x39d   :  { %v3320_v59 = vmax.f32 %v3295_v12, 0.0  ;;  %v3214_v2 = vadd.f32 %v3121_v63, %v6755_v56 }
 0x39e   :  { %v5156_v30 = vpop.f32.mrf.mxu1 }
 0x39f   :  { %v3296_v26 = vadd.f32 %v6790_v21, %v3214_v2  ;;  %5259 = vmatmul.mubr.f32.gmra.mxu0 %v3320_v59 }
 0x3a0   :  { %v3126_v60 = vpop.f32.mrf.mxu1  ;;  %5261 = vmatprep.mubr.msk.f32.mxu0 %vm5433_vm0, %v6796_v36 }
 0x3a1   :  { %v3321_v20 = vmax.f32 %v3296_v26, 0.0  ;;  %v3215_v8 = vadd.f32 %v3126_v60, %v6758_v41  ;;  %v3547_v60 = vld [vmem:[%s7003_s0 + $0x10] sm:$0xff] }
 0x3a2   :  { %v5159_v35 = vpop.f32.mrf.mxu1 }
 0x3a3   :  { %v3297_v28 = vadd.f32 %v6790_v21, %v3215_v8  ;;  %5262 = vmatmul.mubr.f32.gmra.mxu0 %v3321_v20 }
 0x3a4   :  { %v3131_v23 = vpop.f32.mrf.mxu1  ;;  %5264 = vmatprep.mubr.msk.f32.mxu0 %vm5433_vm0, %v6796_v36 }
 0x3a5   :  { %v3322_v56 = vmax.f32 %v3297_v28, 0.0  ;;  %v3216_v40 = vadd.f32 %v3131_v23, %v6761_v29 }
 0x3a6   :  { %v5162_v46 = vpop.f32.mrf.mxu1 }
 0x3a7   :  { %v3298_v31 = vadd.f32 %v6790_v21, %v3216_v40  ;;  %5265 = vmatmul.mubr.f32.gmra.mxu0 %v3322_v56  ;;  %v3548_v56 = vld [vmem:[%s7003_s0 + $0x18] sm:$0xff] }
 0x3a8   :  { %v3136_v49 = vpop.f32.mrf.mxu1  ;;  %5267 = vmatprep.mubr.msk.f32.mxu0 %vm5433_vm0, %v6796_v36 }
 0x3a9   :  { %v3323_v41 = vmax.f32 %v3298_v31, 0.0  ;;  %v3217_v25 = vadd.f32 %v3136_v49, %v6764_v14 }
 0x3aa   :  { %v5165_v27 = vpop.f32.mrf.mxu1 }
 0x3ab   :  { %v3299_v50 = vadd.f32 %v6790_v21, %v3217_v25  ;;  %5268 = vmatmul.mubr.f32.gmra.mxu0 %v3323_v41  ;;  %v3549_v25 = vld [vmem:[%s7003_s0 + $0x20] sm:$0xff] }
 0x3ac   :  { %v3141_v47 = vpop.f32.mrf.mxu1  ;;  %5270 = vmatprep.mubr.msk.f32.mxu0 %vm5433_vm0, %v6796_v36 }
 0x3ad   :  { %v3324_v29 = vmax.f32 %v3299_v50, 0.0  ;;  %v3218_v18 = vadd.f32 %v3141_v47, %v6767_v57 }
 0x3ae   :  { %v5168_v37 = vpop.f32.mrf.mxu1 }
 0x3af   :  { %v3300_v5 = vadd.f32 %v6790_v21, %v3218_v18  ;;  %5271 = vmatmul.mubr.f32.gmra.mxu0 %v3324_v29  ;;  %v3550_v37 = vld [vmem:[%s7003_s0 + $0x28] sm:$0xff] }
 0x3b0   :  { %v3146_v16 = vpop.f32.mrf.mxu1  ;;  %5273 = vmatprep.mubr.msk.f32.mxu0 %vm5433_vm0, %v6796_v36 }
 0x3b1   :  { %v3325_v14 = vmax.f32 %v3300_v5, 0.0  ;;  %v3219_v54 = vadd.f32 %v3146_v16, %v6770_v1 }
 0x3b2   :  { %v5171_v53 = vpop.f32.mrf.mxu1 }
 0x3b3   :  { %v3301_v3 = vadd.f32 %v6790_v21, %v3219_v54  ;;  %5274 = vmatmul.mubr.f32.gmra.mxu0 %v3325_v14 }
 0x3b4   :  { %v3151_v13 = vpop.f32.mrf.mxu1  ;;  %5276 = vmatprep.mubr.msk.f32.mxu0 %vm5433_vm0, %v6796_v36 }
 0x3b5   :  { %v3326_v57 = vmax.f32 %v3301_v3, 0.0  ;;  %v3220_v32 = vadd.f32 %v3151_v13, %v6773_v45  ;;  %v3551_v3 = vld [vmem:[%s7003_s0 + $0x30] sm:$0xff] }
 0x3b6   :  { %v5174_v4 = vpop.f32.mrf.mxu1 }
 0x3b7   :  { %v3302_v44 = vadd.f32 %v6790_v21, %v3220_v32  ;;  %5277 = vmatmul.mubr.f32.gmra.mxu0 %v3326_v57 }
 0x3b8   :  { %v3156_v9 = vpop.f32.mrf.mxu1  ;;  %5279 = vmatprep.mubr.msk.f32.mxu0 %vm5433_vm0, %v6796_v36 }
 0x3b9   :  { %v3327_v1 = vmax.f32 %v3302_v44, 0.0  ;;  %v3221_v7 = vadd.f32 %v3156_v9, %v6776_v39  ;;  %v3552_v9 = vld [vmem:[%s7003_s0 + $0x38] sm:$0xff] }
 0x3ba   :  { %v5177_v52 = vpop.f32.mrf.mxu1 }
 0x3bb   :  { %v3303_v10 = vadd.f32 %v6790_v21, %v3221_v7  ;;  %5280 = vmatmul.mubr.f32.gmra.mxu0 %v3327_v1 }
 0x3bc   :  { %v3161_v58 = vpop.f32.mrf.mxu1  ;;  %5282 = vmatprep.mubr.msk.f32.mxu0 %vm5433_vm0, %v6796_v36 }
 0x3bd   :  { %v3328_v45 = vmax.f32 %v3303_v10, 0.0  ;;  %v3222_v11 = vadd.f32 %v3161_v58, %v6779_v19 }
 0x3be   :  { %v5180_v43 = vpop.f32.mrf.mxu1 }
 0x3bf   :  { %v3304_v0 = vadd.f32 %v6790_v21, %v3222_v11  ;;  %5283 = vmatmul.mubr.f32.gmra.mxu0 %v3328_v45  ;;  %v3553_v45 = vld [vmem:[%s7003_s0 + $0x40] sm:$0xff] }
 0x3c0   :  { %v3166_v51 = vpop.f32.mrf.mxu1  ;;  %5285 = vmatprep.mubr.msk.f32.mxu0 %vm5433_vm0, %v6796_v36 }
 0x3c1   :  { %v3329_v39 = vmax.f32 %v3304_v0, 0.0  ;;  %v3223_v61 = vadd.f32 %v3166_v51, %v6782_v24  ;;  %v6895_v24 = vld [vmem:[%s7010_s7] ss:$0 sm:$0xff] }
 0x3c2   :  { %v5183_v17 = vpop.f32.mrf.mxu1 }
 0x3c3   :  { %v3305_v6 = vadd.f32 %v6790_v21, %v3223_v61  ;;  %5286 = vmatmul.mubr.f32.gmra.mxu0 %v3329_v39  ;;  %v3554_v61 = vld [vmem:[%s7003_s0 + $0x48] sm:$0xff] }
 0x3c4   :  { %v3171_v55 = vpop.f32.mrf.mxu1  ;;  %5288 = vmatprep.mubr.msk.f32.mxu0 %vm5433_vm0, %v6796_v36 }
 0x3c5   :  { %v3330_v19 = vmax.f32 %v3305_v6, 0.0  ;;  %v3224_v22 = vadd.f32 %v3171_v55, %v6785_v42 }
 0x3c6   :  { %v5186_v33 = vpop.f32.mrf.mxu1 }
 0x3c7   :  { %v3306_v34 = vadd.f32 %v6790_v21, %v3224_v22  ;;  %5289 = vmatmul.mubr.f32.gmra.mxu0 %v3330_v19  ;;  %v3555_v33 = vld [vmem:[%s7003_s0 + $0x50] sm:$0xff] }
 0x3c8   :  { %5291 = vmatprep.mubr.msk.f32.mxu0 %vm5433_vm0, %v6796_v36  ;;  %v3546_v36 = vld [vmem:[%s7003_s0 + $0x8] sm:$0xff] }
 0x3c9   :  { %v3331_v48 = vmax.f32 %v3306_v34, 0.0 }
 0x3cb   :  { %5292 = vmatmul.mubr.f32.gmra.mxu0 %v3331_v48 }
 0x42b   :  { %v3421_v62 = vpop.f32.mrf.mxu0 }
 0x42c   :  { %v3422_v42 = vadd.f32 %v6895_v24, %v3421_v62 }
 0x42d   :  { %v5221_v38 = vpop.f32.mrf.mxu0 }
 0x42e   :  { %v3570_v21 = vadd.f32 %v3545_v15, %v3422_v42  ;;  %v3556_v38 = vld [vmem:[%s7003_s0 + $0x58] sm:$0xff] }
 0x42f   :  { %v3426_v12 = vpop.f32.mrf.mxu0 }
 0x430   :  { %v3595_v63 = vmax.f32 %v3570_v21, 0.0  ;;  %v3427_v59 = vadd.f32 %v6895_v24, %v3426_v12 }
 0x431   :  { %v5224_v2 = vpop.f32.mrf.mxu0 }
 0x432   :  { %3620 = vst [vmem:[#allocation10] sm:$0xff] %v3595_v63  ;;  %v3571_v30 = vadd.f32 %v3546_v36, %v3427_v59  ;;  %v3557_v2 = vld [vmem:[%s7003_s0 + $0x60] sm:$0xff] }
 0x433   :  { %v3431_v26 = vpop.f32.mrf.mxu0 }
 0x434   :  { %v3596_v20 = vmax.f32 %v3571_v30, 0.0  ;;  %v3432_v8 = vadd.f32 %v6895_v24, %v3431_v26 }
 0x435   :  { %v5227_v35 = vpop.f32.mrf.mxu0 }
 0x436   :  { %3621 = vst [vmem:[#allocation10 + $0x8] sm:$0xff] %v3596_v20  ;;  %v3572_v28 = vadd.f32 %v3547_v60, %v3432_v8  ;;  %v3558_v35 = vld [vmem:[%s7003_s0 + $0x68] sm:$0xff] }
 0x437   :  { %v3436_v23 = vpop.f32.mrf.mxu0 }
 0x438   :  { %v3597_v40 = vmax.f32 %v3572_v28, 0.0  ;;  %v3437_v46 = vadd.f32 %v6895_v24, %v3436_v23 }
 0x439   :  { %v5230_v31 = vpop.f32.mrf.mxu0 }
 0x43a   :  { %3622 = vst [vmem:[#allocation10 + $0x10] sm:$0xff] %v3597_v40  ;;  %v3573_v49 = vadd.f32 %v3548_v56, %v3437_v46  ;;  %v3559_v31 = vld [vmem:[%s7003_s0 + $0x70] sm:$0xff] }
 0x43b   :  { %v3441_v41 = vpop.f32.mrf.mxu0 }
 0x43c   :  { %v3598_v27 = vmax.f32 %v3573_v49, 0.0  ;;  %v3442_v50 = vadd.f32 %v6895_v24, %v3441_v41 }
 0x43d   :  { %v5233_v47 = vpop.f32.mrf.mxu0 }
 0x43e   :  { %3623 = vst [vmem:[#allocation10 + $0x18] sm:$0xff] %v3598_v27  ;;  %v3574_v29 = vadd.f32 %v3549_v25, %v3442_v50  ;;  %v3560_v47 = vld [vmem:[%s7003_s0 + $0x78] sm:$0xff] }
 0x43f   :  { %v3446_v18 = vpop.f32.mrf.mxu0 }
 0x440   :  { %v3599_v5 = vmax.f32 %v3574_v29, 0.0  ;;  %v3447_v16 = vadd.f32 %v6895_v24, %v3446_v18 }
 0x441   :  { %v5236_v14 = vpop.f32.mrf.mxu0 }
 0x442   :  { %3624 = vst [vmem:[#allocation10 + $0x20] sm:$0xff] %v3599_v5  ;;  %v3575_v54 = vadd.f32 %v3550_v37, %v3447_v16  ;;  %v3561_v14 = vld [vmem:[%s7003_s0 + $0x80] sm:$0xff] }
 0x443   :  { %v3451_v53 = vpop.f32.mrf.mxu0 }
 0x444   :  { %v3600_v13 = vmax.f32 %v3575_v54, 0.0  ;;  %v3452_v57 = vadd.f32 %v6895_v24, %v3451_v53 }
 0x445   :  { %v5239_v32 = vpop.f32.mrf.mxu0 }
 0x446   :  { %3625 = vst [vmem:[#allocation10 + $0x28] sm:$0xff] %v3600_v13  ;;  %v3576_v4 = vadd.f32 %v3551_v3, %v3452_v57  ;;  %v3562_v32 = vld [vmem:[%s7003_s0 + $0x88] sm:$0xff] }
 0x447   :  { %v3456_v44 = vpop.f32.mrf.mxu0 }
 0x448   :  { %v3601_v1 = vmax.f32 %v3576_v4, 0.0  ;;  %v3457_v7 = vadd.f32 %v6895_v24, %v3456_v44 }
 0x449   :  { %v5242_v52 = vpop.f32.mrf.mxu0 }
 0x44a   :  { %3626 = vst [vmem:[#allocation10 + $0x30] sm:$0xff] %v3601_v1  ;;  %v3577_v10 = vadd.f32 %v3552_v9, %v3457_v7  ;;  %v3563_v52 = vld [vmem:[%s7003_s0 + $0x90] sm:$0xff] }
 0x44b   :  { %v3461_v58 = vpop.f32.mrf.mxu0 }
 0x44c   :  { %v3602_v11 = vmax.f32 %v3577_v10, 0.0  ;;  %v3462_v43 = vadd.f32 %v6895_v24, %v3461_v58 }
 0x44d   :  { %v5245_v0 = vpop.f32.mrf.mxu0 }
 0x44e   :  { %3627 = vst [vmem:[#allocation10 + $0x38] sm:$0xff] %v3602_v11  ;;  %v3578_v51 = vadd.f32 %v3553_v45, %v3462_v43  ;;  %v3564_v0 = vld [vmem:[%s7003_s0 + $0x98] sm:$0xff] }
 0x44f   :  { %v3466_v39 = vpop.f32.mrf.mxu0 }
 0x450   :  { %v3603_v17 = vmax.f32 %v3578_v51, 0.0  ;;  %v3467_v6 = vadd.f32 %v6895_v24, %v3466_v39 }
 0x451   :  { %v5248_v55 = vpop.f32.mrf.mxu0 }
 0x452   :  { %3628 = vst [vmem:[#allocation10 + $0x40] sm:$0xff] %v3603_v17  ;;  %v3579_v19 = vadd.f32 %v3554_v61, %v3467_v6  ;;  %v3565_v55 = vld [vmem:[%s7003_s0 + $0xa0] sm:$0xff] }
 0x453   :  { %v3471_v22 = vpop.f32.mrf.mxu0 }
 0x454   :  { %v3604_v34 = vmax.f32 %v3579_v19, 0.0  ;;  %v3472_v48 = vadd.f32 %v6895_v24, %v3471_v22 }
 0x455   :  { %v5251_v62 = vpop.f32.mrf.mxu0 }
 0x456   :  { %3629 = vst [vmem:[#allocation10 + $0x48] sm:$0xff] %v3604_v34  ;;  %v3580_v15 = vadd.f32 %v3555_v33, %v3472_v48  ;;  %v3566_v62 = vld [vmem:[%s7003_s0 + $0xa8] sm:$0xff] }
 0x457   :  { %v3476_v42 = vpop.f32.mrf.mxu0 }
 0x458   :  { %v3605_v21 = vmax.f32 %v3580_v15, 0.0  ;;  %v3477_v12 = vadd.f32 %v6895_v24, %v3476_v42 }
 0x459   :  { %v5254_v36 = vpop.f32.mrf.mxu0 }
 0x45a   :  { %3630 = vst [vmem:[#allocation10 + $0x50] sm:$0xff] %v3605_v21  ;;  %v3581_v63 = vadd.f32 %v3556_v38, %v3477_v12  ;;  %v3567_v36 = vld [vmem:[%s7003_s0 + $0xb0] sm:$0xff] }
 0x45b   :  { %v3481_v59 = vpop.f32.mrf.mxu0 }
 0x45c   :  { %v3606_v30 = vmax.f32 %v3581_v63, 0.0  ;;  %v3482_v26 = vadd.f32 %v6895_v24, %v3481_v59 }
 0x45d   :  { %v5257_v60 = vpop.f32.mrf.mxu0 }
 0x45e   :  { %3631 = vst [vmem:[#allocation10 + $0x58] sm:$0xff] %v3606_v30  ;;  %v3582_v20 = vadd.f32 %v3557_v2, %v3482_v26  ;;  %v3568_v60 = vld [vmem:[%s7003_s0 + $0xb8] sm:$0xff] }
 0x45f   :  { %v3486_v8 = vpop.f32.mrf.mxu0 }
 0x460   :  { %v3607_v28 = vmax.f32 %v3582_v20, 0.0  ;;  %v3487_v23 = vadd.f32 %v6895_v24, %v3486_v8 }
 0x461   :  { %v5260_v56 = vpop.f32.mrf.mxu0 }
 0x462   :  { %3632 = vst [vmem:[#allocation10 + $0x60] sm:$0xff] %v3607_v28  ;;  %v3583_v40 = vadd.f32 %v3558_v35, %v3487_v23  ;;  %v3569_v56 = vld [vmem:[%s7003_s0 + $0xc0] sm:$0xff] }
 0x463   :  { %v3491_v46 = vpop.f32.mrf.mxu0 }
 0x464   :  { %v3608_v49 = vmax.f32 %v3583_v40, 0.0  ;;  %v3492_v41 = vadd.f32 %v6895_v24, %v3491_v46 }
 0x465   :  { %v5263_v25 = vpop.f32.mrf.mxu0 }
 0x466   :  { %3633 = vst [vmem:[#allocation10 + $0x68] sm:$0xff] %v3608_v49  ;;  %v3584_v27 = vadd.f32 %v3559_v31, %v3492_v41 }
 0x467   :  { %v3496_v50 = vpop.f32.mrf.mxu0 }
 0x468   :  { %v3609_v29 = vmax.f32 %v3584_v27, 0.0  ;;  %v3497_v18 = vadd.f32 %v6895_v24, %v3496_v50 }
 0x469   :  { %v5266_v37 = vpop.f32.mrf.mxu0 }
 0x46a   :  { %3634 = vst [vmem:[#allocation10 + $0x70] sm:$0xff] %v3609_v29  ;;  %v3585_v5 = vadd.f32 %v3560_v47, %v3497_v18 }
 0x46b   :  { %v3501_v16 = vpop.f32.mrf.mxu0 }
 0x46c   :  { %v3610_v54 = vmax.f32 %v3585_v5, 0.0  ;;  %v3502_v53 = vadd.f32 %v6895_v24, %v3501_v16 }
 0x46d   :  { %v5269_v3 = vpop.f32.mrf.mxu0 }
 0x46e   :  { %3635 = vst [vmem:[#allocation10 + $0x78] sm:$0xff] %v3610_v54  ;;  %v3586_v13 = vadd.f32 %v3561_v14, %v3502_v53 }
 0x46f   :  { %v3506_v57 = vpop.f32.mrf.mxu0 }
 0x470   :  { %v3611_v4 = vmax.f32 %v3586_v13, 0.0  ;;  %v3507_v44 = vadd.f32 %v6895_v24, %v3506_v57 }
 0x471   :  { %v5272_v9 = vpop.f32.mrf.mxu0 }
 0x472   :  { %3636 = vst [vmem:[#allocation10 + $0x80] sm:$0xff] %v3611_v4  ;;  %v3587_v1 = vadd.f32 %v3562_v32, %v3507_v44 }
 0x473   :  { %v3511_v7 = vpop.f32.mrf.mxu0 }
 0x474   :  { %v3612_v10 = vmax.f32 %v3587_v1, 0.0  ;;  %v3512_v58 = vadd.f32 %v6895_v24, %v3511_v7 }
 0x475   :  { %v5275_v45 = vpop.f32.mrf.mxu0 }
 0x476   :  { %3637 = vst [vmem:[#allocation10 + $0x88] sm:$0xff] %v3612_v10  ;;  %v3588_v11 = vadd.f32 %v3563_v52, %v3512_v58 }
 0x477   :  { %v3516_v43 = vpop.f32.mrf.mxu0 }
 0x478   :  { %v3613_v51 = vmax.f32 %v3588_v11, 0.0  ;;  %v3517_v39 = vadd.f32 %v6895_v24, %v3516_v43 }
 0x479   :  { %v5278_v61 = vpop.f32.mrf.mxu0 }
 0x47a   :  { %3638 = vst [vmem:[#allocation10 + $0x90] sm:$0xff] %v3613_v51  ;;  %v3589_v17 = vadd.f32 %v3564_v0, %v3517_v39 }
 0x47b   :  { %v3521_v6 = vpop.f32.mrf.mxu0 }
 0x47c   :  { %v3614_v19 = vmax.f32 %v3589_v17, 0.0  ;;  %v3522_v22 = vadd.f32 %v6895_v24, %v3521_v6 }
 0x47d   :  { %v5281_v33 = vpop.f32.mrf.mxu0 }
 0x47e   :  { %3639 = vst [vmem:[#allocation10 + $0x98] sm:$0xff] %v3614_v19  ;;  %v3590_v34 = vadd.f32 %v3565_v55, %v3522_v22 }
 0x47f   :  { %v3526_v48 = vpop.f32.mrf.mxu0 }
 0x480   :  { %v3615_v15 = vmax.f32 %v3590_v34, 0.0  ;;  %v3527_v42 = vadd.f32 %v6895_v24, %v3526_v48 }
 0x481   :  { %v5284_v38 = vpop.f32.mrf.mxu0 }
 0x482   :  { %3640 = vst [vmem:[#allocation10 + $0xa0] sm:$0xff] %v3615_v15  ;;  %v3591_v21 = vadd.f32 %v3566_v62, %v3527_v42 }
 0x483   :  { %v3531_v12 = vpop.f32.mrf.mxu0 }
 0x484   :  { %v3616_v63 = vmax.f32 %v3591_v21, 0.0  ;;  %v3532_v59 = vadd.f32 %v6895_v24, %v3531_v12 }
 0x485   :  { %v5287_v2 = vpop.f32.mrf.mxu0 }
 0x486   :  { %3641 = vst [vmem:[#allocation10 + $0xa8] sm:$0xff] %v3616_v63  ;;  %v3592_v30 = vadd.f32 %v3567_v36, %v3532_v59 }
 0x487   :  { %v3536_v26 = vpop.f32.mrf.mxu0 }
 0x488   :  { %v3617_v20 = vmax.f32 %v3592_v30, 0.0  ;;  %v3537_v8 = vadd.f32 %v6895_v24, %v3536_v26 }
 0x489   :  { %v5290_v35 = vpop.f32.mrf.mxu0 }
 0x48a   :  { %3642 = vst [vmem:[#allocation10 + $0xb0] sm:$0xff] %v3617_v20  ;;  %v3593_v28 = vadd.f32 %v3568_v60, %v3537_v8 }
 0x48b   :  { %v3541_v23 = vpop.f32.mrf.mxu0 }
 0x48c   :  { %v3618_v40 = vmax.f32 %v3593_v28, 0.0  ;;  %v3542_v46 = vadd.f32 %v6895_v24, %v3541_v23 }
 0x48d   :  { %v5293_v31 = vpop.f32.mrf.mxu0 }
 0x48e   :  { %3643 = vst [vmem:[#allocation10 + $0xb8] sm:$0xff] %v3618_v40  ;;  %v3594_v49 = vadd.f32 %v3569_v56, %v3542_v46 }
 0x490   :  { %v3619_v41 = vmax.f32 %v3594_v49, 0.0 }
 0x492   :  { %3644 = vst [vmem:[#allocation10 + $0xc0] sm:$0xff] %v3619_v41 }
 0x493   :  { %5412 = shalt.err (!%p5409_p5)
}
 0x494   :  { %3656 = dma.vmem_to_hbm [thread:$0]  %s3651_s28, 3200, %s7011_s8, [#allocation6], %s5429_s10, %s5429_s10, %s5430_s11  }
 0x495   :  { %5425 = dma.done.wait [#allocation6], 3200  }
 0x496   :  { %5426 = vsyncadd [#allocation6], 4294964096 }
 0x497   :  { %3660 = vsyncpa [#allocation5], 1 }
 0x498   :  { %3661 = vsyncpa [#allocation8], 1 }
 0x499   :  { %3662 = vsyncpa [#allocation6], 1 }

</bundles_post_ra>
